<compile_context>
chip_gen: v7x
topology: tpu7x:2x2x1
jax: 0.10.0
libtpu: 0.0.40
codegen_flags: <defaults>
</compile_context>

<pallas_src>
import jax
import jax.numpy as jnp
from jax.experimental import pallas as pl
from jax.experimental.pallas import tpu as pltpu

TB = 8          # images per grid step (batch tile)
NCLS = 10
OUT_PAD = 128   # lane-dense padded output width


# ------------------------------ Pallas kernel --------------------------------
def net_kernel(x_ref, selx_ref, a1_ref, b1_ref, pw1_ref, l1_ref,
               sel2_ref, a2_ref, b2_ref, pw2_ref, l2_ref,
               gph_ref, wf1_ref, bf1_ref, wf2_ref, bf2_ref, out_ref):
    f32 = jnp.float32
    x = x_ref[...]                                                 # (TB*28, 28), rows=(b, h)

    # conv1 (1->10, 5x5 valid): shifted-row selections x banded weight matmuls.
    y1 = None                                                      # (TB*24, 240), cols=ow*10+co
    for ki in range(5):
        xk = jnp.dot(selx_ref[ki], x, preferred_element_type=f32)        # (TB*24, 28)
        t = jnp.dot(xk, a1_ref[ki], preferred_element_type=f32)          # (TB*24, 240)
        y1 = t if y1 is None else y1 + t
    y1 = jnp.maximum(y1 + b1_ref[...], 0.0)                        # bias+ReLU (commutes with maxpool)

    # 2x2 max-pool #1: lane (ow) direction via selection matmul + VPU max,
    # row (oh) direction via block-diagonal selection matmuls + VPU max.
    u = jnp.dot(y1, pw1_ref[...], preferred_element_type=f32)             # (TB*24, 240)
    v = jnp.maximum(u[:, :120], u[:, 120:])                               # (TB*24, 120)
    fm1 = jnp.maximum(jnp.dot(l1_ref[0], v, preferred_element_type=f32),
                      jnp.dot(l1_ref[1], v, preferred_element_type=f32))  # (TB*12, 120)

    # conv2 (10->20, 5x5 valid).
    # TODO(synk): training-mode Dropout2d / F.dropout (RNG masking) not implemented;
    # this reproduces the eval-mode forward where both dropouts are identity.
    y2 = None                                                      # (TB*8, 160), cols=ow*20+co
    for ki in range(5):
        fk = jnp.dot(sel2_ref[ki], fm1, preferred_element_type=f32)       # (TB*8, 120)
        t = jnp.dot(fk, a2_ref[ki], preferred_element_type=f32)           # (TB*8, 160)
        y2 = t if y2 is None else y2 + t
    y2 = jnp.maximum(y2 + b2_ref[...], 0.0)

    # 2x2 max-pool #2.
    u = jnp.dot(y2, pw2_ref[...], preferred_element_type=f32)             # (TB*8, 160)
    v = jnp.maximum(u[:, :80], u[:, 80:])                                 # (TB*8, 80)
    fm2 = jnp.maximum(jnp.dot(l2_ref[0], v, preferred_element_type=f32),
                      jnp.dot(l2_ref[1], v, preferred_element_type=f32))  # (TB*4, 80)

    # fc1 + ReLU: the 320-wide contraction split into 4 per-pooled-row matmuls.
    h = None                                                              # (TB, 50)
    for ph in range(4):
        slab = jnp.dot(gph_ref[ph], fm2, preferred_element_type=f32)      # (TB, 80)
        t = jnp.dot(slab, wf1_ref[ph], preferred_element_type=f32)        # (TB, 50)
        h = t if h is None else h + t
    h = jnp.maximum(h + bf1_ref[...], 0.0)

    # fc2 (padded to 128 lanes for an unmasked store) + stable log_softmax(10).
    logits = jnp.dot(h, wf2_ref[...], preferred_element_type=f32) + bf2_ref[...]   # (TB, 128)
    col = jax.lax.broadcasted_iota(jnp.int32, logits.shape, 1)
    valid = col < NCLS
    z = jnp.where(valid, logits, -1e30)
    m = jnp.max(z, axis=-1, keepdims=True)
    e = jnp.where(valid, jnp.exp(z - m), 0.0)
    lse = jnp.log(jnp.sum(e, axis=-1, keepdims=True))
    out_ref[...] = jnp.where(valid, z - m - lse, 0.0)


# --------------------- wrapper-side constant construction --------------------
def _shift_select(n_out, n_in, shift):
    """(n_out, n_in) 0/1 matrix: row r picks input row r + shift."""
    return (jnp.arange(n_in)[None, :] ==
            jnp.arange(n_out)[:, None] + shift).astype(jnp.float32)


def _pool_pick(n_in, d):
    """(n_in, n_in//2) 0/1 matrix: column p picks input element 2p + d."""
    return (jnp.arange(n_in)[:, None] ==
            2 * jnp.arange(n_in // 2)[None, :] + d).astype(jnp.float32)


def _bdiag(m, nb):
    """Block-diagonal repetition of m, nb times (per-image selector for a tile)."""
    return jnp.kron(jnp.eye(nb, dtype=m.dtype), m)


def _make_consts(params):
    f32 = jnp.float32
    w1 = params["conv1_w"].astype(f32)        # (10, 1, 5, 5)
    w2 = params["conv2_w"].astype(f32)        # (20, 10, 5, 5)

    # conv1 banded weights A1[ki]: (28, 240), cols = ow*10 + co
    w1s = jnp.transpose(w1[:, 0], (1, 2, 0))                      # (ki, kj, co)
    d = jnp.arange(28)[:, None] - jnp.arange(24)[None, :]          # w_in - ow
    valid = (d >= 0) & (d <= 4)
    a1 = w1s[:, jnp.clip(d, 0, 4), :]                              # (5, 28, 24, 10)
    a1 = jnp.where(valid[None, :, :, None], a1, 0.0).reshape(5, 28, 240)

    # conv2 banded weights A2[ki]: (120, 160), rows = pw_in*10+ci, cols = ow*20+co
    w2t = jnp.transpose(w2, (2, 3, 1, 0))                          # (ki, kj, ci, co)
    d2 = jnp.arange(12)[:, None] - jnp.arange(8)[None, :]
    valid2 = (d2 >= 0) & (d2 <= 4)
    a2 = w2t[:, jnp.clip(d2, 0, 4), :, :]                          # (5, 12, 8, 10, 20)
    a2 = jnp.where(valid2[None, :, :, None, None], a2, 0.0)
    a2 = jnp.transpose(a2, (0, 1, 3, 2, 4)).reshape(5, 120, 160)

    # shifted-row selectors (block-diagonal over the batch tile, batch-independent)
    selx = jnp.stack([_bdiag(_shift_select(24, 28, k), TB) for k in range(5)])  # (5,192,224)
    sel2 = jnp.stack([_bdiag(_shift_select(8, 12, k), TB) for k in range(5)])   # (5, 64, 96)

    # 2x2 max-pool selectors
    eye10 = jnp.eye(10, dtype=f32)
    eye20 = jnp.eye(20, dtype=f32)
    pw1 = jnp.concatenate([jnp.kron(_pool_pick(24, 0), eye10),
                           jnp.kron(_pool_pick(24, 1), eye10)], axis=1)          # (240, 240)
    pw2 = jnp.concatenate([jnp.kron(_pool_pick(8, 0), eye20),
                           jnp.kron(_pool_pick(8, 1), eye20)], axis=1)           # (160, 160)
    l1 = jnp.stack([_bdiag(_pool_pick(24, dd).T, TB) for dd in range(2)])        # (2, 96, 192)
    l2 = jnp.stack([_bdiag(_pool_pick(8, dd).T, TB) for dd in range(2)])         # (2, 32, 64)

    # fc1 row-slab selectors + fc1 weights reordered to the (ph, pw*20+co) layout
    gph = jnp.stack([_bdiag(jnp.eye(4, dtype=f32)[ph][None, :], TB)
                     for ph in range(4)])                                        # (4, 8, 32)
    wf1 = params["fc1_w"].reshape(50, 20, 4, 4)                    # (j, co, ph, pw)
    wf1 = jnp.transpose(wf1, (2, 3, 1, 0)).reshape(4, 80, 50)      # (ph, pw*20+co, j)

    # biases (tiled to the lane layouts) and fc2 padded to 128 lanes
    b1row = jnp.tile(params["conv1_b"], 24)[None, :]               # (1, 240)
    b2row = jnp.tile(params["conv2_b"], 8)[None, :]                # (1, 160)
    bf1 = params["fc1_b"][None, :]                                 # (1, 50)
    wf2 = jnp.pad(params["fc2_w"].T, ((0, 0), (0, OUT_PAD - NCLS)))        # (50, 128)
    bf2 = jnp.pad(params["fc2_b"], (0, OUT_PAD - NCLS))[None, :]           # (1, 128)

    return (selx, a1, b1row, pw1, l1, sel2, a2, b2row, pw2, l2,
            gph, wf1, bf1, wf2, bf2)


# -------------------------------- forward ------------------------------------
def net_forward(x, params):
    B = x.shape[0]
    x2 = x[:, 0, :, :]                                             # (B, 28, 28)
    b_pad = ((B + TB - 1) // TB) * TB
    x2 = jnp.pad(x2, ((0, b_pad - B), (0, 0), (0, 0)))
    x2d = x2.reshape(b_pad * 28, 28)                               # rows = (b, h)

    consts = _make_consts(params)
    # Constant index maps -> weight/constant blocks stay resident across steps.
    const_specs = [pl.BlockSpec(c.shape, lambda i, _n=c.ndim: (0,) * _n)
                   for c in consts]

    out = pl.pallas_call(
        net_kernel,
        out_shape=jax.ShapeDtypeStruct((b_pad, OUT_PAD), jnp.float32),
        grid=(b_pad // TB,),
        in_specs=[pl.BlockSpec((TB * 28, 28), lambda i: (i, 0))] + const_specs,
        out_specs=pl.BlockSpec((TB, OUT_PAD), lambda i: (i, 0)),
        compiler_params=pltpu.CompilerParams(
            dimension_semantics=("parallel",),
            vmem_limit_bytes=48 * 1024 * 1024,
        ),
    )(x2d, *consts)
    return out[:B, :NCLS]


# --------------------------- pure-JAX reference -------------------------------
def net_forward_ref(x, params):
    hp = jax.lax.Precision.HIGHEST
    y = jax.lax.conv_general_dilated(
        x, params["conv1_w"], (1, 1), "VALID",
        dimension_numbers=("NCHW", "OIHW", "NCHW"), precision=hp)
    y = y + params["conv1_b"][None, :, None, None]
    y = y.reshape(y.shape[0], 10, 12, 2, 12, 2).max(axis=(3, 5))
    y = jnp.maximum(y, 0.0)
    y = jax.lax.conv_general_dilated(
        y, params["conv2_w"], (1, 1), "VALID",
        dimension_numbers=("NCHW", "OIHW", "NCHW"), precision=hp)
    y = y + params["conv2_b"][None, :, None, None]
    y = y.reshape(y.shape[0], 20, 4, 2, 4, 2).max(axis=(3, 5))
    y = jnp.maximum(y, 0.0)
    flat = y.reshape(y.shape[0], 320)
    h = jnp.maximum(jnp.dot(flat, params["fc1_w"].T, precision=hp) + params["fc1_b"], 0.0)
    logits = jnp.dot(h, params["fc2_w"].T, precision=hp) + params["fc2_b"]
    return jax.nn.log_softmax(logits, axis=1)


def init_params(key):
    """Deterministic synthetic parameters with the PyTorch module's shapes."""
    def uniform(k, shape, fan_in):
        bound = 1.0 / jnp.sqrt(jnp.float32(fan_in))
        return jax.random.uniform(k, shape, jnp.float32, -bound, bound)

    ks = jax.random.split(key, 8)
    return dict(
        conv1_w=uniform(ks[0], (10, 1, 5, 5), 25),
        conv1_b=uniform(ks[1], (10,), 25),
        conv2_w=uniform(ks[2], (20, 10, 5, 5), 250),
        conv2_b=uniform(ks[3], (20,), 250),
        fc1_w=uniform(ks[4], (50, 320), 320),
        fc1_b=uniform(ks[5], (50,), 320),
        fc2_w=uniform(ks[6], (10, 50), 50),
        fc2_b=uniform(ks[7], (10,), 50),
    )


if __name__ == "__main__":
    key = jax.random.PRNGKey(0)
    pkey, xkey = jax.random.split(key)
    params = init_params(pkey)
    # fc1 expects 320 = 20*4*4 features => 1x28x28 input.
    x = jax.random.normal(xkey, (2, 1, 28, 28), dtype=jnp.float32)

    out = jax.block_until_ready(jax.jit(net_forward)(x, params))
    ref = jax.block_until_ready(jax.jit(net_forward_ref)(x, params))

    assert out.shape == (2, 10)
    assert bool(jnp.all(jnp.isfinite(out)))
    # rows of log_softmax must exponentiate-sum to ~1
    assert bool(jnp.allclose(jnp.sum(jnp.exp(out), axis=1), 1.0, atol=1e-3))
    # numerical agreement with the pure-JAX reference forward pass
    assert bool(jnp.allclose(out, ref, atol=2e-2, rtol=2e-2)), (
        "max abs err vs reference: %f" % float(jnp.max(jnp.abs(out - ref))))
    print("KERNEL_OK")
</pallas_src>

<mosaic_0001>
module attributes {stable_mosaic.version = 11 : i64} {
  func.func @net_kernel(%arg0: i32, %arg1: memref<224x28xf32, #tpu.memory_space<vmem>>, %arg2: memref<5x192x224xf32, #tpu.memory_space<vmem>>, %arg3: memref<5x28x240xf32, #tpu.memory_space<vmem>>, %arg4: memref<1x240xf32, #tpu.memory_space<vmem>>, %arg5: memref<240x240xf32, #tpu.memory_space<vmem>>, %arg6: memref<2x96x192xf32, #tpu.memory_space<vmem>>, %arg7: memref<5x64x96xf32, #tpu.memory_space<vmem>>, %arg8: memref<5x120x160xf32, #tpu.memory_space<vmem>>, %arg9: memref<1x160xf32, #tpu.memory_space<vmem>>, %arg10: memref<160x160xf32, #tpu.memory_space<vmem>>, %arg11: memref<2x32x64xf32, #tpu.memory_space<vmem>>, %arg12: memref<4x8x32xf32, #tpu.memory_space<vmem>>, %arg13: memref<4x80x50xf32, #tpu.memory_space<vmem>>, %arg14: memref<1x50xf32, #tpu.memory_space<vmem>>, %arg15: memref<50x128xf32, #tpu.memory_space<vmem>>, %arg16: memref<1x128xf32, #tpu.memory_space<vmem>>, %arg17: memref<8x128xf32, #tpu.memory_space<vmem>>) attributes {dimension_semantics = [#tpu.dimension_semantics<parallel>], iteration_bounds = array<i64: 1>, scalar_prefetch = 0 : i64, scratch_operands = 0 : i64, tpu.core_type = #tpu.core_type<tc>, window_params = [{transform_indices = @transform_0, window_bounds = array<i64: 224, 28>}, {pipeline_mode = #tpu.pipeline_mode<synchronous>, transform_indices = @transform_1, window_bounds = array<i64: 5, 192, 224>}, {pipeline_mode = #tpu.pipeline_mode<synchronous>, transform_indices = @transform_2, window_bounds = array<i64: 5, 28, 240>}, {pipeline_mode = #tpu.pipeline_mode<synchronous>, transform_indices = @transform_3, window_bounds = array<i64: 1, 240>}, {pipeline_mode = #tpu.pipeline_mode<synchronous>, transform_indices = @transform_4, window_bounds = array<i64: 240, 240>}, {pipeline_mode = #tpu.pipeline_mode<synchronous>, transform_indices = @transform_5, window_bounds = array<i64: 2, 96, 192>}, {pipeline_mode = #tpu.pipeline_mode<synchronous>, transform_indices = @transform_6, window_bounds = array<i64: 5, 64, 96>}, {pipeline_mode = #tpu.pipeline_mode<synchronous>, transform_indices = @transform_7, window_bounds = array<i64: 5, 120, 160>}, {pipeline_mode = #tpu.pipeline_mode<synchronous>, transform_indices = @transform_8, window_bounds = array<i64: 1, 160>}, {pipeline_mode = #tpu.pipeline_mode<synchronous>, transform_indices = @transform_9, window_bounds = array<i64: 160, 160>}, {pipeline_mode = #tpu.pipeline_mode<synchronous>, transform_indices = @transform_10, window_bounds = array<i64: 2, 32, 64>}, {pipeline_mode = #tpu.pipeline_mode<synchronous>, transform_indices = @transform_11, window_bounds = array<i64: 4, 8, 32>}, {pipeline_mode = #tpu.pipeline_mode<synchronous>, transform_indices = @transform_12, window_bounds = array<i64: 4, 80, 50>}, {pipeline_mode = #tpu.pipeline_mode<synchronous>, transform_indices = @transform_13, window_bounds = array<i64: 1, 50>}, {pipeline_mode = #tpu.pipeline_mode<synchronous>, transform_indices = @transform_14, window_bounds = array<i64: 50, 128>}, {pipeline_mode = #tpu.pipeline_mode<synchronous>, transform_indices = @transform_15, window_bounds = array<i64: 1, 128>}, {transform_indices = @transform_16, window_bounds = array<i64: 8, 128>}]} {
    %c0 = arith.constant 0 : index
    %c0_0 = arith.constant 0 : index
    %0 = vector.load %arg1[%c0, %c0_0] : memref<224x28xf32, #tpu.memory_space<vmem>>, vector<224x28xf32>
    %c0_1 = arith.constant 0 : index
    %c0_2 = arith.constant 0 : index
    %c0_3 = arith.constant 0 : index
    %1 = vector.load %arg2[%c0_1, %c0_2, %c0_3] : memref<5x192x224xf32, #tpu.memory_space<vmem>>, vector<1x192x224xf32>
    %2 = vector.shape_cast %1 : vector<1x192x224xf32> to vector<192x224xf32>
    %cst = arith.constant dense<0.000000e+00> : vector<192x28xf32>
    %3 = tpu.matmul %2, %0, %cst {dimension_numbers = #tpu.dot_dimension_numbers<[1], [0], [0], [1], [0, 0, 1, 1], [], []>} : vector<192x224xf32>, vector<224x28xf32>, vector<192x28xf32> -> vector<192x28xf32>
    %c0_4 = arith.constant 0 : index
    %c0_5 = arith.constant 0 : index
    %c0_6 = arith.constant 0 : index
    %4 = vector.load %arg3[%c0_4, %c0_5, %c0_6] : memref<5x28x240xf32, #tpu.memory_space<vmem>>, vector<1x28x240xf32>
    %5 = vector.shape_cast %4 : vector<1x28x240xf32> to vector<28x240xf32>
    %cst_7 = arith.constant dense<0.000000e+00> : vector<192x240xf32>
    %6 = tpu.matmul %3, %5, %cst_7 {dimension_numbers = #tpu.dot_dimension_numbers<[1], [0], [0], [1], [0, 0, 1, 1], [], []>} : vector<192x28xf32>, vector<28x240xf32>, vector<192x240xf32> -> vector<192x240xf32>
    %c1 = arith.constant 1 : index
    %c0_8 = arith.constant 0 : index
    %c0_9 = arith.constant 0 : index
    %7 = vector.load %arg2[%c1, %c0_8, %c0_9] : memref<5x192x224xf32, #tpu.memory_space<vmem>>, vector<1x192x224xf32>
    %8 = vector.shape_cast %7 : vector<1x192x224xf32> to vector<192x224xf32>
    %cst_10 = arith.constant dense<0.000000e+00> : vector<192x28xf32>
    %9 = tpu.matmul %8, %0, %cst_10 {dimension_numbers = #tpu.dot_dimension_numbers<[1], [0], [0], [1], [0, 0, 1, 1], [], []>} : vector<192x224xf32>, vector<224x28xf32>, vector<192x28xf32> -> vector<192x28xf32>
    %c1_11 = arith.constant 1 : index
    %c0_12 = arith.constant 0 : index
    %c0_13 = arith.constant 0 : index
    %10 = vector.load %arg3[%c1_11, %c0_12, %c0_13] : memref<5x28x240xf32, #tpu.memory_space<vmem>>, vector<1x28x240xf32>
    %11 = vector.shape_cast %10 : vector<1x28x240xf32> to vector<28x240xf32>
    %cst_14 = arith.constant dense<0.000000e+00> : vector<192x240xf32>
    %12 = tpu.matmul %9, %11, %cst_14 {dimension_numbers = #tpu.dot_dimension_numbers<[1], [0], [0], [1], [0, 0, 1, 1], [], []>} : vector<192x28xf32>, vector<28x240xf32>, vector<192x240xf32> -> vector<192x240xf32>
    %13 = arith.addf %6, %12 : vector<192x240xf32>
    %c2 = arith.constant 2 : index
    %c0_15 = arith.constant 0 : index
    %c0_16 = arith.constant 0 : index
    %14 = vector.load %arg2[%c2, %c0_15, %c0_16] : memref<5x192x224xf32, #tpu.memory_space<vmem>>, vector<1x192x224xf32>
    %15 = vector.shape_cast %14 : vector<1x192x224xf32> to vector<192x224xf32>
    %cst_17 = arith.constant dense<0.000000e+00> : vector<192x28xf32>
    %16 = tpu.matmul %15, %0, %cst_17 {dimension_numbers = #tpu.dot_dimension_numbers<[1], [0], [0], [1], [0, 0, 1, 1], [], []>} : vector<192x224xf32>, vector<224x28xf32>, vector<192x28xf32> -> vector<192x28xf32>
    %c2_18 = arith.constant 2 : index
    %c0_19 = arith.constant 0 : index
    %c0_20 = arith.constant 0 : index
    %17 = vector.load %arg3[%c2_18, %c0_19, %c0_20] : memref<5x28x240xf32, #tpu.memory_space<vmem>>, vector<1x28x240xf32>
    %18 = vector.shape_cast %17 : vector<1x28x240xf32> to vector<28x240xf32>
    %cst_21 = arith.constant dense<0.000000e+00> : vector<192x240xf32>
    %19 = tpu.matmul %16, %18, %cst_21 {dimension_numbers = #tpu.dot_dimension_numbers<[1], [0], [0], [1], [0, 0, 1, 1], [], []>} : vector<192x28xf32>, vector<28x240xf32>, vector<192x240xf32> -> vector<192x240xf32>
    %20 = arith.addf %13, %19 : vector<192x240xf32>
    %c3 = arith.constant 3 : index
    %c0_22 = arith.constant 0 : index
    %c0_23 = arith.constant 0 : index
    %21 = vector.load %arg2[%c3, %c0_22, %c0_23] : memref<5x192x224xf32, #tpu.memory_space<vmem>>, vector<1x192x224xf32>
    %22 = vector.shape_cast %21 : vector<1x192x224xf32> to vector<192x224xf32>
    %cst_24 = arith.constant dense<0.000000e+00> : vector<192x28xf32>
    %23 = tpu.matmul %22, %0, %cst_24 {dimension_numbers = #tpu.dot_dimension_numbers<[1], [0], [0], [1], [0, 0, 1, 1], [], []>} : vector<192x224xf32>, vector<224x28xf32>, vector<192x28xf32> -> vector<192x28xf32>
    %c3_25 = arith.constant 3 : index
    %c0_26 = arith.constant 0 : index
    %c0_27 = arith.constant 0 : index
    %24 = vector.load %arg3[%c3_25, %c0_26, %c0_27] : memref<5x28x240xf32, #tpu.memory_space<vmem>>, vector<1x28x240xf32>
    %25 = vector.shape_cast %24 : vector<1x28x240xf32> to vector<28x240xf32>
    %cst_28 = arith.constant dense<0.000000e+00> : vector<192x240xf32>
    %26 = tpu.matmul %23, %25, %cst_28 {dimension_numbers = #tpu.dot_dimension_numbers<[1], [0], [0], [1], [0, 0, 1, 1], [], []>} : vector<192x28xf32>, vector<28x240xf32>, vector<192x240xf32> -> vector<192x240xf32>
    %27 = arith.addf %20, %26 : vector<192x240xf32>
    %c4 = arith.constant 4 : index
    %c0_29 = arith.constant 0 : index
    %c0_30 = arith.constant 0 : index
    %28 = vector.load %arg2[%c4, %c0_29, %c0_30] : memref<5x192x224xf32, #tpu.memory_space<vmem>>, vector<1x192x224xf32>
    %29 = vector.shape_cast %28 : vector<1x192x224xf32> to vector<192x224xf32>
    %cst_31 = arith.constant dense<0.000000e+00> : vector<192x28xf32>
    %30 = tpu.matmul %29, %0, %cst_31 {dimension_numbers = #tpu.dot_dimension_numbers<[1], [0], [0], [1], [0, 0, 1, 1], [], []>} : vector<192x224xf32>, vector<224x28xf32>, vector<192x28xf32> -> vector<192x28xf32>
    %c4_32 = arith.constant 4 : index
    %c0_33 = arith.constant 0 : index
    %c0_34 = arith.constant 0 : index
    %31 = vector.load %arg3[%c4_32, %c0_33, %c0_34] : memref<5x28x240xf32, #tpu.memory_space<vmem>>, vector<1x28x240xf32>
    %32 = vector.shape_cast %31 : vector<1x28x240xf32> to vector<28x240xf32>
    %cst_35 = arith.constant dense<0.000000e+00> : vector<192x240xf32>
    %33 = tpu.matmul %30, %32, %cst_35 {dimension_numbers = #tpu.dot_dimension_numbers<[1], [0], [0], [1], [0, 0, 1, 1], [], []>} : vector<192x28xf32>, vector<28x240xf32>, vector<192x240xf32> -> vector<192x240xf32>
    %34 = arith.addf %27, %33 : vector<192x240xf32>
    %c0_36 = arith.constant 0 : index
    %c0_37 = arith.constant 0 : index
    %35 = vector.load %arg4[%c0_36, %c0_37] : memref<1x240xf32, #tpu.memory_space<vmem>>, vector<1x240xf32>
    %36 = vector.broadcast %35 : vector<1x240xf32> to vector<192x240xf32>
    %37 = arith.addf %34, %36 : vector<192x240xf32>
    %cst_38 = arith.constant 0.000000e+00 : f32
    %38 = vector.broadcast %cst_38 : f32 to vector<192x240xf32>
    %39 = arith.maximumf %37, %38 : vector<192x240xf32>
    %c0_39 = arith.constant 0 : index
    %c0_40 = arith.constant 0 : index
    %40 = vector.load %arg5[%c0_39, %c0_40] : memref<240x240xf32, #tpu.memory_space<vmem>>, vector<240x240xf32>
    %cst_41 = arith.constant dense<0.000000e+00> : vector<192x240xf32>
    %41 = tpu.matmul %39, %40, %cst_41 {dimension_numbers = #tpu.dot_dimension_numbers<[1], [0], [0], [1], [0, 0, 1, 1], [], []>} : vector<192x240xf32>, vector<240x240xf32>, vector<192x240xf32> -> vector<192x240xf32>
    %42 = vector.extract_strided_slice %41 {offsets = [0, 0], sizes = [192, 120], strides = [1, 1]} : vector<192x240xf32> to vector<192x120xf32>
    %43 = vector.extract_strided_slice %41 {offsets = [0, 120], sizes = [192, 120], strides = [1, 1]} : vector<192x240xf32> to vector<192x120xf32>
    %44 = arith.maximumf %42, %43 : vector<192x120xf32>
    %c0_42 = arith.constant 0 : index
    %c0_43 = arith.constant 0 : index
    %c0_44 = arith.constant 0 : index
    %45 = vector.load %arg6[%c0_42, %c0_43, %c0_44] : memref<2x96x192xf32, #tpu.memory_space<vmem>>, vector<1x96x192xf32>
    %46 = vector.shape_cast %45 : vector<1x96x192xf32> to vector<96x192xf32>
    %cst_45 = arith.constant dense<0.000000e+00> : vector<96x120xf32>
    %47 = tpu.matmul %46, %44, %cst_45 {dimension_numbers = #tpu.dot_dimension_numbers<[1], [0], [0], [1], [0, 0, 1, 1], [], []>} : vector<96x192xf32>, vector<192x120xf32>, vector<96x120xf32> -> vector<96x120xf32>
    %c1_46 = arith.constant 1 : index
    %c0_47 = arith.constant 0 : index
    %c0_48 = arith.constant 0 : index
    %48 = vector.load %arg6[%c1_46, %c0_47, %c0_48] : memref<2x96x192xf32, #tpu.memory_space<vmem>>, vector<1x96x192xf32>
    %49 = vector.shape_cast %48 : vector<1x96x192xf32> to vector<96x192xf32>
    %cst_49 = arith.constant dense<0.000000e+00> : vector<96x120xf32>
    %50 = tpu.matmul %49, %44, %cst_49 {dimension_numbers = #tpu.dot_dimension_numbers<[1], [0], [0], [1], [0, 0, 1, 1], [], []>} : vector<96x192xf32>, vector<192x120xf32>, vector<96x120xf32> -> vector<96x120xf32>
    %51 = arith.maximumf %47, %50 : vector<96x120xf32>
    %c0_50 = arith.constant 0 : index
    %c0_51 = arith.constant 0 : index
    %c0_52 = arith.constant 0 : index
    %52 = vector.load %arg7[%c0_50, %c0_51, %c0_52] : memref<5x64x96xf32, #tpu.memory_space<vmem>>, vector<1x64x96xf32>
    %53 = vector.shape_cast %52 : vector<1x64x96xf32> to vector<64x96xf32>
    %cst_53 = arith.constant dense<0.000000e+00> : vector<64x120xf32>
    %54 = tpu.matmul %53, %51, %cst_53 {dimension_numbers = #tpu.dot_dimension_numbers<[1], [0], [0], [1], [0, 0, 1, 1], [], []>} : vector<64x96xf32>, vector<96x120xf32>, vector<64x120xf32> -> vector<64x120xf32>
    %c0_54 = arith.constant 0 : index
    %c0_55 = arith.constant 0 : index
    %c0_56 = arith.constant 0 : index
    %55 = vector.load %arg8[%c0_54, %c0_55, %c0_56] : memref<5x120x160xf32, #tpu.memory_space<vmem>>, vector<1x120x160xf32>
    %56 = vector.shape_cast %55 : vector<1x120x160xf32> to vector<120x160xf32>
    %cst_57 = arith.constant dense<0.000000e+00> : vector<64x160xf32>
    %57 = tpu.matmul %54, %56, %cst_57 {dimension_numbers = #tpu.dot_dimension_numbers<[1], [0], [0], [1], [0, 0, 1, 1], [], []>} : vector<64x120xf32>, vector<120x160xf32>, vector<64x160xf32> -> vector<64x160xf32>
    %c1_58 = arith.constant 1 : index
    %c0_59 = arith.constant 0 : index
    %c0_60 = arith.constant 0 : index
    %58 = vector.load %arg7[%c1_58, %c0_59, %c0_60] : memref<5x64x96xf32, #tpu.memory_space<vmem>>, vector<1x64x96xf32>
    %59 = vector.shape_cast %58 : vector<1x64x96xf32> to vector<64x96xf32>
    %cst_61 = arith.constant dense<0.000000e+00> : vector<64x120xf32>
    %60 = tpu.matmul %59, %51, %cst_61 {dimension_numbers = #tpu.dot_dimension_numbers<[1], [0], [0], [1], [0, 0, 1, 1], [], []>} : vector<64x96xf32>, vector<96x120xf32>, vector<64x120xf32> -> vector<64x120xf32>
    %c1_62 = arith.constant 1 : index
    %c0_63 = arith.constant 0 : index
    %c0_64 = arith.constant 0 : index
    %61 = vector.load %arg8[%c1_62, %c0_63, %c0_64] : memref<5x120x160xf32, #tpu.memory_space<vmem>>, vector<1x120x160xf32>
    %62 = vector.shape_cast %61 : vector<1x120x160xf32> to vector<120x160xf32>
    %cst_65 = arith.constant dense<0.000000e+00> : vector<64x160xf32>
    %63 = tpu.matmul %60, %62, %cst_65 {dimension_numbers = #tpu.dot_dimension_numbers<[1], [0], [0], [1], [0, 0, 1, 1], [], []>} : vector<64x120xf32>, vector<120x160xf32>, vector<64x160xf32> -> vector<64x160xf32>
    %64 = arith.addf %57, %63 : vector<64x160xf32>
    %c2_66 = arith.constant 2 : index
    %c0_67 = arith.constant 0 : index
    %c0_68 = arith.constant 0 : index
    %65 = vector.load %arg7[%c2_66, %c0_67, %c0_68] : memref<5x64x96xf32, #tpu.memory_space<vmem>>, vector<1x64x96xf32>
    %66 = vector.shape_cast %65 : vector<1x64x96xf32> to vector<64x96xf32>
    %cst_69 = arith.constant dense<0.000000e+00> : vector<64x120xf32>
    %67 = tpu.matmul %66, %51, %cst_69 {dimension_numbers = #tpu.dot_dimension_numbers<[1], [0], [0], [1], [0, 0, 1, 1], [], []>} : vector<64x96xf32>, vector<96x120xf32>, vector<64x120xf32> -> vector<64x120xf32>
    %c2_70 = arith.constant 2 : index
    %c0_71 = arith.constant 0 : index
    %c0_72 = arith.constant 0 : index
    %68 = vector.load %arg8[%c2_70, %c0_71, %c0_72] : memref<5x120x160xf32, #tpu.memory_space<vmem>>, vector<1x120x160xf32>
    %69 = vector.shape_cast %68 : vector<1x120x160xf32> to vector<120x160xf32>
    %cst_73 = arith.constant dense<0.000000e+00> : vector<64x160xf32>
    %70 = tpu.matmul %67, %69, %cst_73 {dimension_numbers = #tpu.dot_dimension_numbers<[1], [0], [0], [1], [0, 0, 1, 1], [], []>} : vector<64x120xf32>, vector<120x160xf32>, vector<64x160xf32> -> vector<64x160xf32>
    %71 = arith.addf %64, %70 : vector<64x160xf32>
    %c3_74 = arith.constant 3 : index
    %c0_75 = arith.constant 0 : index
    %c0_76 = arith.constant 0 : index
    %72 = vector.load %arg7[%c3_74, %c0_75, %c0_76] : memref<5x64x96xf32, #tpu.memory_space<vmem>>, vector<1x64x96xf32>
    %73 = vector.shape_cast %72 : vector<1x64x96xf32> to vector<64x96xf32>
    %cst_77 = arith.constant dense<0.000000e+00> : vector<64x120xf32>
    %74 = tpu.matmul %73, %51, %cst_77 {dimension_numbers = #tpu.dot_dimension_numbers<[1], [0], [0], [1], [0, 0, 1, 1], [], []>} : vector<64x96xf32>, vector<96x120xf32>, vector<64x120xf32> -> vector<64x120xf32>
    %c3_78 = arith.constant 3 : index
    %c0_79 = arith.constant 0 : index
    %c0_80 = arith.constant 0 : index
    %75 = vector.load %arg8[%c3_78, %c0_79, %c0_80] : memref<5x120x160xf32, #tpu.memory_space<vmem>>, vector<1x120x160xf32>
    %76 = vector.shape_cast %75 : vector<1x120x160xf32> to vector<120x160xf32>
    %cst_81 = arith.constant dense<0.000000e+00> : vector<64x160xf32>
    %77 = tpu.matmul %74, %76, %cst_81 {dimension_numbers = #tpu.dot_dimension_numbers<[1], [0], [0], [1], [0, 0, 1, 1], [], []>} : vector<64x120xf32>, vector<120x160xf32>, vector<64x160xf32> -> vector<64x160xf32>
    %78 = arith.addf %71, %77 : vector<64x160xf32>
    %c4_82 = arith.constant 4 : index
    %c0_83 = arith.constant 0 : index
    %c0_84 = arith.constant 0 : index
    %79 = vector.load %arg7[%c4_82, %c0_83, %c0_84] : memref<5x64x96xf32, #tpu.memory_space<vmem>>, vector<1x64x96xf32>
    %80 = vector.shape_cast %79 : vector<1x64x96xf32> to vector<64x96xf32>
    %cst_85 = arith.constant dense<0.000000e+00> : vector<64x120xf32>
    %81 = tpu.matmul %80, %51, %cst_85 {dimension_numbers = #tpu.dot_dimension_numbers<[1], [0], [0], [1], [0, 0, 1, 1], [], []>} : vector<64x96xf32>, vector<96x120xf32>, vector<64x120xf32> -> vector<64x120xf32>
    %c4_86 = arith.constant 4 : index
    %c0_87 = arith.constant 0 : index
    %c0_88 = arith.constant 0 : index
    %82 = vector.load %arg8[%c4_86, %c0_87, %c0_88] : memref<5x120x160xf32, #tpu.memory_space<vmem>>, vector<1x120x160xf32>
    %83 = vector.shape_cast %82 : vector<1x120x160xf32> to vector<120x160xf32>
    %cst_89 = arith.constant dense<0.000000e+00> : vector<64x160xf32>
    %84 = tpu.matmul %81, %83, %cst_89 {dimension_numbers = #tpu.dot_dimension_numbers<[1], [0], [0], [1], [0, 0, 1, 1], [], []>} : vector<64x120xf32>, vector<120x160xf32>, vector<64x160xf32> -> vector<64x160xf32>
    %85 = arith.addf %78, %84 : vector<64x160xf32>
    %c0_90 = arith.constant 0 : index
    %c0_91 = arith.constant 0 : index
    %86 = vector.load %arg9[%c0_90, %c0_91] : memref<1x160xf32, #tpu.memory_space<vmem>>, vector<1x160xf32>
    %87 = vector.broadcast %86 : vector<1x160xf32> to vector<64x160xf32>
    %88 = arith.addf %85, %87 : vector<64x160xf32>
    %cst_92 = arith.constant 0.000000e+00 : f32
    %89 = vector.broadcast %cst_92 : f32 to vector<64x160xf32>
    %90 = arith.maximumf %88, %89 : vector<64x160xf32>
    %c0_93 = arith.constant 0 : index
    %c0_94 = arith.constant 0 : index
    %91 = vector.load %arg10[%c0_93, %c0_94] : memref<160x160xf32, #tpu.memory_space<vmem>>, vector<160x160xf32>
    %cst_95 = arith.constant dense<0.000000e+00> : vector<64x160xf32>
    %92 = tpu.matmul %90, %91, %cst_95 {dimension_numbers = #tpu.dot_dimension_numbers<[1], [0], [0], [1], [0, 0, 1, 1], [], []>} : vector<64x160xf32>, vector<160x160xf32>, vector<64x160xf32> -> vector<64x160xf32>
    %93 = vector.extract_strided_slice %92 {offsets = [0, 0], sizes = [64, 80], strides = [1, 1]} : vector<64x160xf32> to vector<64x80xf32>
    %94 = vector.extract_strided_slice %92 {offsets = [0, 80], sizes = [64, 80], strides = [1, 1]} : vector<64x160xf32> to vector<64x80xf32>
    %95 = arith.maximumf %93, %94 : vector<64x80xf32>
    %c0_96 = arith.constant 0 : index
    %c0_97 = arith.constant 0 : index
    %c0_98 = arith.constant 0 : index
    %96 = vector.load %arg11[%c0_96, %c0_97, %c0_98] : memref<2x32x64xf32, #tpu.memory_space<vmem>>, vector<1x32x64xf32>
    %97 = vector.shape_cast %96 : vector<1x32x64xf32> to vector<32x64xf32>
    %cst_99 = arith.constant dense<0.000000e+00> : vector<32x80xf32>
    %98 = tpu.matmul %97, %95, %cst_99 {dimension_numbers = #tpu.dot_dimension_numbers<[1], [0], [0], [1], [0, 0, 1, 1], [], []>} : vector<32x64xf32>, vector<64x80xf32>, vector<32x80xf32> -> vector<32x80xf32>
    %c1_100 = arith.constant 1 : index
    %c0_101 = arith.constant 0 : index
    %c0_102 = arith.constant 0 : index
    %99 = vector.load %arg11[%c1_100, %c0_101, %c0_102] : memref<2x32x64xf32, #tpu.memory_space<vmem>>, vector<1x32x64xf32>
    %100 = vector.shape_cast %99 : vector<1x32x64xf32> to vector<32x64xf32>
    %cst_103 = arith.constant dense<0.000000e+00> : vector<32x80xf32>
    %101 = tpu.matmul %100, %95, %cst_103 {dimension_numbers = #tpu.dot_dimension_numbers<[1], [0], [0], [1], [0, 0, 1, 1], [], []>} : vector<32x64xf32>, vector<64x80xf32>, vector<32x80xf32> -> vector<32x80xf32>
    %102 = arith.maximumf %98, %101 : vector<32x80xf32>
    %c0_104 = arith.constant 0 : index
    %c0_105 = arith.constant 0 : index
    %c0_106 = arith.constant 0 : index
    %103 = vector.load %arg12[%c0_104, %c0_105, %c0_106] : memref<4x8x32xf32, #tpu.memory_space<vmem>>, vector<1x8x32xf32>
    %104 = vector.shape_cast %103 : vector<1x8x32xf32> to vector<8x32xf32>
    %cst_107 = arith.constant dense<0.000000e+00> : vector<8x80xf32>
    %105 = tpu.matmul %104, %102, %cst_107 {dimension_numbers = #tpu.dot_dimension_numbers<[1], [0], [0], [1], [0, 0, 1, 1], [], []>} : vector<8x32xf32>, vector<32x80xf32>, vector<8x80xf32> -> vector<8x80xf32>
    %c0_108 = arith.constant 0 : index
    %c0_109 = arith.constant 0 : index
    %c0_110 = arith.constant 0 : index
    %106 = vector.load %arg13[%c0_108, %c0_109, %c0_110] : memref<4x80x50xf32, #tpu.memory_space<vmem>>, vector<1x80x50xf32>
    %107 = vector.shape_cast %106 : vector<1x80x50xf32> to vector<80x50xf32>
    %cst_111 = arith.constant dense<0.000000e+00> : vector<8x50xf32>
    %108 = tpu.matmul %105, %107, %cst_111 {dimension_numbers = #tpu.dot_dimension_numbers<[1], [0], [0], [1], [0, 0, 1, 1], [], []>} : vector<8x80xf32>, vector<80x50xf32>, vector<8x50xf32> -> vector<8x50xf32>
    %c1_112 = arith.constant 1 : index
    %c0_113 = arith.constant 0 : index
    %c0_114 = arith.constant 0 : index
    %109 = vector.load %arg12[%c1_112, %c0_113, %c0_114] : memref<4x8x32xf32, #tpu.memory_space<vmem>>, vector<1x8x32xf32>
    %110 = vector.shape_cast %109 : vector<1x8x32xf32> to vector<8x32xf32>
    %cst_115 = arith.constant dense<0.000000e+00> : vector<8x80xf32>
    %111 = tpu.matmul %110, %102, %cst_115 {dimension_numbers = #tpu.dot_dimension_numbers<[1], [0], [0], [1], [0, 0, 1, 1], [], []>} : vector<8x32xf32>, vector<32x80xf32>, vector<8x80xf32> -> vector<8x80xf32>
    %c1_116 = arith.constant 1 : index
    %c0_117 = arith.constant 0 : index
    %c0_118 = arith.constant 0 : index
    %112 = vector.load %arg13[%c1_116, %c0_117, %c0_118] : memref<4x80x50xf32, #tpu.memory_space<vmem>>, vector<1x80x50xf32>
    %113 = vector.shape_cast %112 : vector<1x80x50xf32> to vector<80x50xf32>
    %cst_119 = arith.constant dense<0.000000e+00> : vector<8x50xf32>
    %114 = tpu.matmul %111, %113, %cst_119 {dimension_numbers = #tpu.dot_dimension_numbers<[1], [0], [0], [1], [0, 0, 1, 1], [], []>} : vector<8x80xf32>, vector<80x50xf32>, vector<8x50xf32> -> vector<8x50xf32>
    %115 = arith.addf %108, %114 : vector<8x50xf32>
    %c2_120 = arith.constant 2 : index
    %c0_121 = arith.constant 0 : index
    %c0_122 = arith.constant 0 : index
    %116 = vector.load %arg12[%c2_120, %c0_121, %c0_122] : memref<4x8x32xf32, #tpu.memory_space<vmem>>, vector<1x8x32xf32>
    %117 = vector.shape_cast %116 : vector<1x8x32xf32> to vector<8x32xf32>
    %cst_123 = arith.constant dense<0.000000e+00> : vector<8x80xf32>
    %118 = tpu.matmul %117, %102, %cst_123 {dimension_numbers = #tpu.dot_dimension_numbers<[1], [0], [0], [1], [0, 0, 1, 1], [], []>} : vector<8x32xf32>, vector<32x80xf32>, vector<8x80xf32> -> vector<8x80xf32>
    %c2_124 = arith.constant 2 : index
    %c0_125 = arith.constant 0 : index
    %c0_126 = arith.constant 0 : index
    %119 = vector.load %arg13[%c2_124, %c0_125, %c0_126] : memref<4x80x50xf32, #tpu.memory_space<vmem>>, vector<1x80x50xf32>
    %120 = vector.shape_cast %119 : vector<1x80x50xf32> to vector<80x50xf32>
    %cst_127 = arith.constant dense<0.000000e+00> : vector<8x50xf32>
    %121 = tpu.matmul %118, %120, %cst_127 {dimension_numbers = #tpu.dot_dimension_numbers<[1], [0], [0], [1], [0, 0, 1, 1], [], []>} : vector<8x80xf32>, vector<80x50xf32>, vector<8x50xf32> -> vector<8x50xf32>
    %122 = arith.addf %115, %121 : vector<8x50xf32>
    %c3_128 = arith.constant 3 : index
    %c0_129 = arith.constant 0 : index
    %c0_130 = arith.constant 0 : index
    %123 = vector.load %arg12[%c3_128, %c0_129, %c0_130] : memref<4x8x32xf32, #tpu.memory_space<vmem>>, vector<1x8x32xf32>
    %124 = vector.shape_cast %123 : vector<1x8x32xf32> to vector<8x32xf32>
    %cst_131 = arith.constant dense<0.000000e+00> : vector<8x80xf32>
    %125 = tpu.matmul %124, %102, %cst_131 {dimension_numbers = #tpu.dot_dimension_numbers<[1], [0], [0], [1], [0, 0, 1, 1], [], []>} : vector<8x32xf32>, vector<32x80xf32>, vector<8x80xf32> -> vector<8x80xf32>
    %c3_132 = arith.constant 3 : index
    %c0_133 = arith.constant 0 : index
    %c0_134 = arith.constant 0 : index
    %126 = vector.load %arg13[%c3_132, %c0_133, %c0_134] : memref<4x80x50xf32, #tpu.memory_space<vmem>>, vector<1x80x50xf32>
    %127 = vector.shape_cast %126 : vector<1x80x50xf32> to vector<80x50xf32>
    %cst_135 = arith.constant dense<0.000000e+00> : vector<8x50xf32>
    %128 = tpu.matmul %125, %127, %cst_135 {dimension_numbers = #tpu.dot_dimension_numbers<[1], [0], [0], [1], [0, 0, 1, 1], [], []>} : vector<8x80xf32>, vector<80x50xf32>, vector<8x50xf32> -> vector<8x50xf32>
    %129 = arith.addf %122, %128 : vector<8x50xf32>
    %c0_136 = arith.constant 0 : index
    %c0_137 = arith.constant 0 : index
    %130 = vector.load %arg14[%c0_136, %c0_137] : memref<1x50xf32, #tpu.memory_space<vmem>>, vector<1x50xf32>
    %131 = vector.broadcast %130 : vector<1x50xf32> to vector<8x50xf32>
    %132 = arith.addf %129, %131 : vector<8x50xf32>
    %cst_138 = arith.constant 0.000000e+00 : f32
    %133 = vector.broadcast %cst_138 : f32 to vector<8x50xf32>
    %134 = arith.maximumf %132, %133 : vector<8x50xf32>
    %c0_139 = arith.constant 0 : index
    %c0_140 = arith.constant 0 : index
    %135 = vector.load %arg15[%c0_139, %c0_140] : memref<50x128xf32, #tpu.memory_space<vmem>>, vector<50x128xf32>
    %cst_141 = arith.constant dense<0.000000e+00> : vector<8x128xf32>
    %136 = tpu.matmul %134, %135, %cst_141 {dimension_numbers = #tpu.dot_dimension_numbers<[1], [0], [0], [1], [0, 0, 1, 1], [], []>} : vector<8x50xf32>, vector<50x128xf32>, vector<8x128xf32> -> vector<8x128xf32>
    %c0_142 = arith.constant 0 : index
    %c0_143 = arith.constant 0 : index
    %137 = vector.load %arg16[%c0_142, %c0_143] : memref<1x128xf32, #tpu.memory_space<vmem>>, vector<1x128xf32>
    %138 = vector.broadcast %137 : vector<1x128xf32> to vector<8x128xf32>
    %139 = arith.addf %136, %138 : vector<8x128xf32>
    %140 = tpu.iota {dimensions = array<i32: 1>} : vector<8x128xi32>
    %c10_i32 = arith.constant 10 : i32
    %141 = vector.broadcast %c10_i32 : i32 to vector<8x128xi32>
    %142 = arith.cmpi slt, %140, %141 : vector<8x128xi32>
    %cst_144 = arith.constant -1.000000e+30 : f32
    %143 = vector.broadcast %cst_144 : f32 to vector<8x128xf32>
    %144 = arith.select %142, %139, %143 : vector<8x128xi1>, vector<8x128xf32>
    %cst_145 = arith.constant dense<0xFF800000> : vector<8xf32>
    %145 = vector.multi_reduction <maximumf>, %144, %cst_145 [1] : vector<8x128xf32> to vector<8xf32>
    %146 = vector.shape_cast %145 : vector<8xf32> to vector<8x1xf32>
    %147 = vector.broadcast %146 : vector<8x1xf32> to vector<8x128xf32>
    %148 = arith.subf %144, %147 : vector<8x128xf32>
    %149 = math.exp %148 : vector<8x128xf32>
    %cst_146 = arith.constant 0.000000e+00 : f32
    %150 = vector.broadcast %cst_146 : f32 to vector<8x128xf32>
    %151 = arith.select %142, %149, %150 : vector<8x128xi1>, vector<8x128xf32>
    %cst_147 = arith.constant dense<0.000000e+00> : vector<8xf32>
    %152 = vector.multi_reduction <add>, %151, %cst_147 [1] : vector<8x128xf32> to vector<8xf32>
    %153 = vector.shape_cast %152 : vector<8xf32> to vector<8x1xf32>
    %154 = math.log %153 : vector<8x1xf32>
    %155 = vector.broadcast %146 : vector<8x1xf32> to vector<8x128xf32>
    %156 = arith.subf %144, %155 : vector<8x128xf32>
    %157 = vector.broadcast %154 : vector<8x1xf32> to vector<8x128xf32>
    %158 = arith.subf %156, %157 : vector<8x128xf32>
    %cst_148 = arith.constant 0.000000e+00 : f32
    %159 = vector.broadcast %cst_148 : f32 to vector<8x128xf32>
    %160 = arith.select %142, %158, %159 : vector<8x128xi1>, vector<8x128xf32>
    %c0_149 = arith.constant 0 : index
    %c0_150 = arith.constant 0 : index
    %161 = vector.load %arg17[%c0_149, %c0_150] : memref<8x128xf32, #tpu.memory_space<vmem>>, vector<8x128xf32>
    tpu.vector_store %arg17[%c0_149, %c0_150], %160 {strides = array<i32>} : memref<8x128xf32, #tpu.memory_space<vmem>>, vector<8x128xf32>,
    return
  }
  func.func @transform_0(%arg0: i32) -> (i32, i32) {
    %c0_i32 = arith.constant 0 : i32
    %c0_i32_0 = arith.constant 0 : i32
    return %arg0, %c0_i32 : i32, i32
  }
  func.func @transform_1(%arg0: i32) -> (i32, i32, i32) {
    %c0_i32 = arith.constant 0 : i32
    %c0_i32_0 = arith.constant 0 : i32
    %c0_i32_1 = arith.constant 0 : i32
    %c0_i32_2 = arith.constant 0 : i32
    return %c0_i32, %c0_i32_0, %c0_i32_1 : i32, i32, i32
  }
  func.func @transform_2(%arg0: i32) -> (i32, i32, i32) {
    %c0_i32 = arith.constant 0 : i32
    %c0_i32_0 = arith.constant 0 : i32
    %c0_i32_1 = arith.constant 0 : i32
    %c0_i32_2 = arith.constant 0 : i32
    return %c0_i32, %c0_i32_0, %c0_i32_1 : i32, i32, i32
  }
  func.func @transform_3(%arg0: i32) -> (i32, i32) {
    %c0_i32 = arith.constant 0 : i32
    %c0_i32_0 = arith.constant 0 : i32
    %c0_i32_1 = arith.constant 0 : i32
    return %c0_i32, %c0_i32_0 : i32, i32
  }
  func.func @transform_4(%arg0: i32) -> (i32, i32) {
    %c0_i32 = arith.constant 0 : i32
    %c0_i32_0 = arith.constant 0 : i32
    %c0_i32_1 = arith.constant 0 : i32
    return %c0_i32, %c0_i32_0 : i32, i32
  }
  func.func @transform_5(%arg0: i32) -> (i32, i32, i32) {
    %c0_i32 = arith.constant 0 : i32
    %c0_i32_0 = arith.constant 0 : i32
    %c0_i32_1 = arith.constant 0 : i32
    %c0_i32_2 = arith.constant 0 : i32
    return %c0_i32, %c0_i32_0, %c0_i32_1 : i32, i32, i32
  }
  func.func @transform_6(%arg0: i32) -> (i32, i32, i32) {
    %c0_i32 = arith.constant 0 : i32
    %c0_i32_0 = arith.constant 0 : i32
    %c0_i32_1 = arith.constant 0 : i32
    %c0_i32_2 = arith.constant 0 : i32
    return %c0_i32, %c0_i32_0, %c0_i32_1 : i32, i32, i32
  }
  func.func @transform_7(%arg0: i32) -> (i32, i32, i32) {
    %c0_i32 = arith.constant 0 : i32
    %c0_i32_0 = arith.constant 0 : i32
    %c0_i32_1 = arith.constant 0 : i32
    %c0_i32_2 = arith.constant 0 : i32
    return %c0_i32, %c0_i32_0, %c0_i32_1 : i32, i32, i32
  }
  func.func @transform_8(%arg0: i32) -> (i32, i32) {
    %c0_i32 = arith.constant 0 : i32
    %c0_i32_0 = arith.constant 0 : i32
    %c0_i32_1 = arith.constant 0 : i32
    return %c0_i32, %c0_i32_0 : i32, i32
  }
  func.func @transform_9(%arg0: i32) -> (i32, i32) {
    %c0_i32 = arith.constant 0 : i32
    %c0_i32_0 = arith.constant 0 : i32
    %c0_i32_1 = arith.constant 0 : i32
    return %c0_i32, %c0_i32_0 : i32, i32
  }
  func.func @transform_10(%arg0: i32) -> (i32, i32, i32) {
    %c0_i32 = arith.constant 0 : i32
    %c0_i32_0 = arith.constant 0 : i32
    %c0_i32_1 = arith.constant 0 : i32
    %c0_i32_2 = arith.constant 0 : i32
    return %c0_i32, %c0_i32_0, %c0_i32_1 : i32, i32, i32
  }
  func.func @transform_11(%arg0: i32) -> (i32, i32, i32) {
    %c0_i32 = arith.constant 0 : i32
    %c0_i32_0 = arith.constant 0 : i32
    %c0_i32_1 = arith.constant 0 : i32
    %c0_i32_2 = arith.constant 0 : i32
    return %c0_i32, %c0_i32_0, %c0_i32_1 : i32, i32, i32
  }
  func.func @transform_12(%arg0: i32) -> (i32, i32, i32) {
    %c0_i32 = arith.constant 0 : i32
    %c0_i32_0 = arith.constant 0 : i32
    %c0_i32_1 = arith.constant 0 : i32
    %c0_i32_2 = arith.constant 0 : i32
    return %c0_i32, %c0_i32_0, %c0_i32_1 : i32, i32, i32
  }
  func.func @transform_13(%arg0: i32) -> (i32, i32) {
    %c0_i32 = arith.constant 0 : i32
    %c0_i32_0 = arith.constant 0 : i32
    %c0_i32_1 = arith.constant 0 : i32
    return %c0_i32, %c0_i32_0 : i32, i32
  }
  func.func @transform_14(%arg0: i32) -> (i32, i32) {
    %c0_i32 = arith.constant 0 : i32
    %c0_i32_0 = arith.constant 0 : i32
    %c0_i32_1 = arith.constant 0 : i32
    return %c0_i32, %c0_i32_0 : i32, i32
  }
  func.func @transform_15(%arg0: i32) -> (i32, i32) {
    %c0_i32 = arith.constant 0 : i32
    %c0_i32_0 = arith.constant 0 : i32
    %c0_i32_1 = arith.constant 0 : i32
    return %c0_i32, %c0_i32_0 : i32, i32
  }
  func.func @transform_16(%arg0: i32) -> (i32, i32) {
    %c0_i32 = arith.constant 0 : i32
    %c0_i32_0 = arith.constant 0 : i32
    return %arg0, %c0_i32 : i32, i32
  }
}

</mosaic_0001>

<bundles_post_ra>
// kernel: tile.18
= control target key start
LH: loop header
LB: loop body
LE: loop exit
PB: predicated region body
PF: predicated region fallthrough
CT: control target
= control target key end

     0   :  { %2 = vsyncpa [#allocation1], 0  ;;  %s44_s6 = smov [#allocation0]   ;;  %s70_s0 = inlined_call_operand.hbm [shape: f32[20], index: 0, kind: input, shape index: {}]   ;;  %s71_s1 = inlined_call_operand.vmem [shape: f32[8,20], index: 1, kind: output, shape index: {}]  }
   0x1   :  { %s9_s7 = sshll.u32 %s44_s6, 4  ;;  %s20_s10 = scalar_lea.hbm %s70_s0, 16  ;;  %s10_s7 = int_to_ptr.vmem [resolvable:$true] %s9_s7 }
   0x2   :  { %p21_p0 = scmp.ne.s32.totalorder %s70_s0, %s20_s10  ;;  %p24_p1 = scmp.lt.u32.totalorder %s20_s10, %s70_s0 }
   0x4   :  { %p26_p2 = pnand %p24_p1, %p21_p0 }
   0x6   :  { %29 = shalt.err (!%p26_p2)
}
   0x7   :  { %s30_s15 = scalar_lea.vmem %s10_s7, 16  ;;  %s34_s16 = scalar_lea.vmem %s10_s7, 32 }
   0x8   :  { %p31_p3 = scmp.ne.s32.totalorder %s10_s7, %s30_s15  ;;  %p35_p4 = scmp.lt.s32.totalorder %s10_s7, %s10_s7 }
   0x9   :  { %p36_p5 = scmp.lt.s32.totalorder %s34_s16, %s30_s15 }
   0xb   :  { %p37_p6 = por %p36_p5, %p35_p4 }
   0xd   :  { %p38_p7 = pnand %p37_p6, %p31_p3 }
   0xf   :  { %41 = shalt.err (!%p38_p7)
}
  0x10   :  { %12 = dma.hbm_to_vmem [thread:$0]  %s70_s0, 16, %s10_s7, [#allocation1]  }
  0x11   :  { %42 = dma.done.wait [#allocation1], 16  }
  0x12   :  { %43 = vsyncadd [#allocation1], 4294967280  ;;  %v16_v0 = vld [vmem:[#allocation0] ss:$0 sm:$0xff] }
  0x13   :  { %17 = vst [vmem:[%s71_s1] sm:$0xff] %v16_v0 }
  0x14   :  { %18 = vsyncpa [#allocation1], 1 }

// kernel: tile.19
= control target key start
LH: loop header
LB: loop body
LE: loop exit
PB: predicated region body
PF: predicated region fallthrough
CT: control target
= control target key end

     0   :  { %vm9_vm0 = vcmask 64512   ;;  %s82_s12 = smov 120   ;;  %s83_s13 = smov 80   ;;  %vm3_vm1 = vcmask 162816   ;;  %vm13_vm2 = vcmask 97280   ;;  %vm16_vm3 = vcmask 1048512   ;;  %s132_s0 = inlined_call_operand.vmem [shape: f32[8,20], index: 0, kind: input, shape index: {}]   ;;  %s133_s1 = inlined_call_operand.vmem [shape: f32[1,160], index: 1, kind: output, shape index: {}]  }
   0x1   :  { %v66_v0 = vld [vmem:[%s132_s0 + $0x6] sm:$0x1]   ;;  %v69_v3 = vld [vmem:[%s132_s0 + $0x4] sm:$0x1]   ;;  %v68_v4 = vld [vmem:[%s132_s0 + $0x5] sm:$0x1]  }
   0x2   :  { %v67_v1 = vld [vmem:[%s132_s0 + $0x6] sm:$0x1]   ;;  %26 = vrot.lane.b32.xlu1 %v69_v3, %s83_s13  ;;  %v70_v5 = vld [vmem:[%s132_s0 + $0x3] sm:$0x1]   ;;  %v2_v6 = vld [vmem:[%s132_s0] sm:$0x1]  }
   0x3   :  { %v10_v2 = vsel %vm9_vm0, %v67_v1, %v66_v0  ;;  %4 = vst.msk [vmem:[#allocation0] sm:$0x1] %vm3_vm1, %v2_v6   ;;  %s84_s20 = smov 100   ;;  %s85_s21 = smov 60   ;;  %v71_v7 = vld [vmem:[%s132_s0 + $0x2] sm:$0x1]  }
   0x4   :  { %11 = vrot.lane.b32.xlu0 %v10_v2, %s82_s12  ;;  %v72_v8 = vld [vmem:[%s132_s0 + $0x1] sm:$0x1]   ;;  %s86_s26 = smov 40   ;;  %s87_s27 = smov 20   ;;  %v73_v9 = vld [vmem:[%s132_s0 + $0x7] sm:$0x1]  }
   0x5   :  { %s88_s0 = smov 12   ;;  %vm22_vm4 = vcmask 982816   ;;  %vm28_vm5 = vcmask 818816   ;;  %vm34_vm6 = vcmask 654816   ;;  %vm40_vm7 = vcmask 490816  }
   0x6   :  { %32 = vrot.lane.b32.xlu1 %v70_v5, %s85_s21  ;;  %vm46_vm8 = vcmask 326816   ;;  %vm52_vm9 = vcmask 261216  }
   0x8   :  { %20 = vrot.lane.b32.xlu0 %v68_v4, %s84_s20 }
   0xa   :  { %44 = vrot.lane.b32.xlu1 %v72_v8, %s87_s27 }
   0xc   :  { %38 = vrot.lane.b32.xlu0 %v71_v7, %s86_s26 }
  0x10   :  { %50 = vrot.lane.b32.xlu0 %v73_v9, %s88_s0 }
  0x74   :  { %v27_v11 = vpop.permute.xlu1 %26  }
  0x76   :  { %v12_v10 = vpop.permute.xlu0 %11  }
  0x77   :  { %15 = vst.msk [vmem:[#allocation0 + $0x8] sm:$0x1] %vm13_vm2, %v12_v10  }
  0x78   :  { %17 = vst.msk [vmem:[#allocation0] sm:$0x1] %vm16_vm3, %v12_v10   ;;  %v33_v13 = vpop.permute.xlu1 %32  }
  0x7a   :  { %v21_v12 = vpop.permute.xlu0 %20  }
  0x7b   :  { %23 = vst.msk [vmem:[#allocation0] sm:$0x1] %vm22_vm4, %v21_v12  }
  0x7c   :  { %29 = vst.msk [vmem:[#allocation0] sm:$0x1] %vm28_vm5, %v27_v11   ;;  %v45_v15 = vpop.permute.xlu1 %44  }
  0x7d   :  { %35 = vst.msk [vmem:[#allocation0] sm:$0x1] %vm34_vm6, %v33_v13  }
  0x7e   :  { %v39_v14 = vpop.permute.xlu0 %38  }
  0x7f   :  { %41 = vst.msk [vmem:[#allocation0] sm:$0x1] %vm40_vm7, %v39_v14  }
  0x80   :  { %47 = vst.msk [vmem:[#allocation0] sm:$0x1] %vm46_vm8, %v45_v15  }
  0x82   :  { %v51_v16 = vpop.permute.xlu0 %50  }
  0x83   :  { %54 = vst.msk [vmem:[#allocation0 + $0x8] sm:$0x1] %vm52_vm9, %v51_v16  }
  0x87   :  { %v58_v17 = vld [vmem:[#allocation0] sm:$0x1] }
  0x88   :  { %60 = vst [vmem:[%s133_s1] sm:$0x1] %v58_v17 }
  0x8a   :  { %v62_v18 = vld [vmem:[#allocation0 + $0x8] sm:$0x1] }
  0x8b   :  { %74 = vst [vmem:[%s133_s1 + $0x1] sm:$0x1] %v62_v18 }

// kernel: tile.13
= control target key start
LH: loop header
LB: loop body
LE: loop exit
PB: predicated region body
PF: predicated region fallthrough
CT: control target
= control target key end

     0   :  { %2 = vsyncpa [#allocation1], 0  ;;  %s50_s6 = smov [#allocation0]   ;;  %s82_s0 = inlined_call_operand.hbm [shape: f32[10], index: 0, kind: input, shape index: {}]   ;;  %s83_s1 = inlined_call_operand.vmem [shape: f32[24,10], index: 1, kind: output, shape index: {}]  }
   0x1   :  { %s9_s7 = sshll.u32 %s50_s6, 4  ;;  %s26_s10 = scalar_lea.hbm %s82_s0, 16  ;;  %s10_s7 = int_to_ptr.vmem [resolvable:$true] %s9_s7 }
   0x2   :  { %p27_p0 = scmp.ne.s32.totalorder %s82_s0, %s26_s10  ;;  %p30_p1 = scmp.lt.u32.totalorder %s26_s10, %s82_s0 }
   0x4   :  { %p32_p2 = pnand %p30_p1, %p27_p0 }
   0x6   :  { %35 = shalt.err (!%p32_p2)
}
   0x7   :  { %s36_s15 = scalar_lea.vmem %s10_s7, 16  ;;  %s40_s16 = scalar_lea.vmem %s10_s7, 32 }
   0x8   :  { %p37_p3 = scmp.ne.s32.totalorder %s10_s7, %s36_s15  ;;  %p41_p4 = scmp.lt.s32.totalorder %s10_s7, %s10_s7 }
   0x9   :  { %p42_p5 = scmp.lt.s32.totalorder %s40_s16, %s36_s15 }
   0xb   :  { %p43_p6 = por %p42_p5, %p41_p4 }
   0xd   :  { %p44_p7 = pnand %p43_p6, %p37_p3 }
   0xf   :  { %47 = shalt.err (!%p44_p7)
}
  0x10   :  { %12 = dma.hbm_to_vmem [thread:$0]  %s82_s0, 16, %s10_s7, [#allocation1]  }
  0x11   :  { %48 = dma.done.wait [#allocation1], 16  }
  0x12   :  { %49 = vsyncadd [#allocation1], 4294967280  ;;  %v16_v0 = vld [vmem:[#allocation0] ss:$0 sm:$0xff] }
  0x13   :  { %17 = vst [vmem:[%s83_s1] sm:$0xff] %v16_v0  ;;  %23 = vst [vmem:[%s83_s1 + $0x8] sm:$0xff] %v16_v0 }
  0x14   :  { %24 = vst [vmem:[%s83_s1 + $0x10] sm:$0xff] %v16_v0 }
  0x15   :  { %22 = vsyncpa [#allocation1], 1 }

// kernel: tile.14
= control target key start
LH: loop header
LB: loop body
LE: loop exit
PB: predicated region body
PF: predicated region fallthrough
CT: control target
= control target key end

     0   :  { %vm9_vm0 = vcmask 64512   ;;  %s220_s12 = smov 120   ;;  %s221_s13 = smov 102   ;;  %vm3_vm1 = vcmask 80896   ;;  %vm13_vm2 = vcmask 15360   ;;  %vm16_vm3 = vcmask 1048512   ;;  %s334_s0 = inlined_call_operand.vmem [shape: f32[24,10], index: 0, kind: input, shape index: {}]   ;;  %s335_s1 = inlined_call_operand.vmem [shape: f32[1,240], index: 1, kind: output, shape index: {}]  }
   0x1   :  { %v172_v0 = vld [vmem:[%s334_s0 + $0xc] sm:$0x1]   ;;  %v175_v3 = vld [vmem:[%s334_s0 + $0x17] sm:$0x1]   ;;  %v174_v4 = vld [vmem:[%s334_s0 + $0xb] sm:$0x1]  }
   0x2   :  { %v173_v1 = vld [vmem:[%s334_s0 + $0xc] sm:$0x1]   ;;  %26 = vrot.lane.b32.xlu1 %v175_v3, %s221_s13  ;;  %v176_v5 = vld [vmem:[%s334_s0 + $0xa] sm:$0x1]   ;;  %s222_s18 = smov 110   ;;  %s223_s19 = smov 100  }
   0x3   :  { %v10_v2 = vsel %vm9_vm0, %v173_v1, %v172_v0  ;;  %v177_v6 = vld [vmem:[%s334_s0 + $0x16] sm:$0x1]   ;;  %v178_v7 = vld [vmem:[%s334_s0 + $0x9] sm:$0x1]   ;;  %s224_s24 = smov 92   ;;  %s225_s25 = smov 90  }
   0x4   :  { %11 = vrot.lane.b32.xlu0 %v10_v2, %s220_s12  ;;  %v179_v8 = vld [vmem:[%s334_s0 + $0x15] sm:$0x1]   ;;  %v180_v9 = vld [vmem:[%s334_s0 + $0x8] sm:$0x1]   ;;  %v2_v10 = vld [vmem:[%s334_s0] sm:$0x1]  }
   0x5   :  { %4 = vst.msk [vmem:[#allocation0] sm:$0x1] %vm3_vm1, %v2_v10   ;;  %s226_s3 = smov 82   ;;  %s227_s4 = smov 80   ;;  %v181_v11 = vld [vmem:[%s334_s0 + $0x14] sm:$0x1]  }
   0x6   :  { %33 = vrot.lane.b32.xlu1 %v176_v5, %s223_s19  ;;  %v182_v12 = vld [vmem:[%s334_s0 + $0x7] sm:$0x1]   ;;  %s228_s9 = smov 72   ;;  %s229_s10 = smov 70   ;;  %v183_v13 = vld [vmem:[%s334_s0 + $0x13] sm:$0x1]  }
   0x7   :  { %v184_v14 = vld [vmem:[%s334_s0 + $0x6] sm:$0x1]   ;;  %s230_s15 = smov 62   ;;  %s231_s16 = smov 60   ;;  %v185_v15 = vld [vmem:[%s334_s0 + $0x12] sm:$0x1]  }
   0x8   :  { %20 = vrot.lane.b32.xlu0 %v174_v4, %s222_s18  ;;  %v186_v16 = vld [vmem:[%s334_s0 + $0x5] sm:$0x1]   ;;  %s232_s21 = smov 52   ;;  %s233_s22 = smov 50   ;;  %v187_v17 = vld [vmem:[%s334_s0 + $0x11] sm:$0x1]  }
   0x9   :  { %v188_v18 = vld [vmem:[%s334_s0 + $0x4] sm:$0x1]   ;;  %s234_s27 = smov 42   ;;  %s235_s28 = smov 40   ;;  %v189_v19 = vld [vmem:[%s334_s0 + $0x10] sm:$0x1]  }
   0xa   :  { %46 = vrot.lane.b32.xlu1 %v178_v7, %s225_s25  ;;  %v190_v20 = vld [vmem:[%s334_s0 + $0x3] sm:$0x1]   ;;  %s237_s5 = smov 30   ;;  %v191_v21 = vld [vmem:[%s334_s0 + $0xf] sm:$0x1]   ;;  %s239_s11 = smov 20  }
   0xb   :  { %v192_v22 = vld [vmem:[%s334_s0 + $0x2] sm:$0x1]   ;;  %v193_v23 = vld [vmem:[%s334_s0 + $0xe] sm:$0x1]   ;;  %v194_v24 = vld [vmem:[%s334_s0 + $0x1] sm:$0x1]  }
   0xc   :  { %39 = vrot.lane.b32.xlu0 %v177_v6, %s224_s24  ;;  %s241_s17 = smov 10   ;;  %v195_v25 = vld [vmem:[%s334_s0 + $0xd] sm:$0x1]   ;;  %s242_s0 = smov 2   ;;  %vm28_vm4 = vcmask 917296   ;;  %vm22_vm5 = vcmask 982896  }
   0xd   :  { %vm35_vm6 = vcmask 900896   ;;  %vm41_vm7 = vcmask 835296   ;;  %vm48_vm8 = vcmask 818896   ;;  %vm54_vm9 = vcmask 753296  }
   0xe   :  { %59 = vrot.lane.b32.xlu1 %v180_v9, %s227_s4  ;;  %s236_s4 = smov 32   ;;  %vm61_vm10 = vcmask 736896   ;;  %vm67_vm11 = vcmask 671296   ;;  %vm74_vm12 = vcmask 654896   ;;  %vm80_vm13 = vcmask 589296  }
   0xf   :  { %vm87_vm14 = vcmask 572896   ;;  %vm93_vm15 = vcmask 507296   ;;  %vm100_vm0 = vcmask 490896   ;;  %vm106_vm1 = vcmask 425296  }
  0x10   :  { %52 = vrot.lane.b32.xlu0 %v179_v8, %s226_s3 }
  0x12   :  { %72 = vrot.lane.b32.xlu1 %v182_v12, %s229_s10  ;;  %s238_s10 = smov 22  }
  0x14   :  { %65 = vrot.lane.b32.xlu0 %v181_v11, %s228_s9 }
  0x16   :  { %85 = vrot.lane.b32.xlu1 %v184_v14, %s231_s16  ;;  %s240_s16 = smov 12  }
  0x18   :  { %78 = vrot.lane.b32.xlu0 %v183_v13, %s230_s15 }
  0x1a   :  { %98 = vrot.lane.b32.xlu1 %v186_v16, %s233_s22 }
  0x1c   :  { %91 = vrot.lane.b32.xlu0 %v185_v15, %s232_s21 }
  0x1e   :  { %111 = vrot.lane.b32.xlu1 %v188_v18, %s235_s28 }
  0x20   :  { %104 = vrot.lane.b32.xlu0 %v187_v17, %s234_s27 }
  0x22   :  { %124 = vrot.lane.b32.xlu1 %v190_v20, %s237_s5 }
  0x24   :  { %117 = vrot.lane.b32.xlu0 %v189_v19, %s236_s4 }
  0x26   :  { %137 = vrot.lane.b32.xlu1 %v192_v22, %s239_s11 }
  0x28   :  { %130 = vrot.lane.b32.xlu0 %v191_v21, %s238_s10 }
  0x2a   :  { %150 = vrot.lane.b32.xlu1 %v194_v24, %s241_s17 }
  0x2c   :  { %143 = vrot.lane.b32.xlu0 %v193_v23, %s240_s16 }
  0x30   :  { %156 = vrot.lane.b32.xlu0 %v195_v25, %s242_s0 }
  0x74   :  { %v27_v27 = vpop.permute.xlu1 %26  }
  0x76   :  { %v12_v26 = vpop.permute.xlu0 %11  }
  0x77   :  { %15 = vst.msk [vmem:[#allocation0 + $0x8] sm:$0x1] %vm13_vm2, %v12_v26   ;;  %vm113_vm2 = vcmask 408896  }
  0x78   :  { %17 = vst.msk [vmem:[#allocation0] sm:$0x1] %vm16_vm3, %v12_v26   ;;  %v34_v29 = vpop.permute.xlu1 %33   ;;  %vm119_vm3 = vcmask 343296  }
  0x79   :  { %30 = vst.msk [vmem:[#allocation0 + $0x8] sm:$0x1] %vm28_vm4, %v27_v27   ;;  %vm126_vm4 = vcmask 326896  }
  0x7a   :  { %v21_v28 = vpop.permute.xlu0 %20  }
  0x7b   :  { %23 = vst.msk [vmem:[#allocation0] sm:$0x1] %vm22_vm5, %v21_v28   ;;  %vm132_vm5 = vcmask 261296  }
  0x7c   :  { %36 = vst.msk [vmem:[#allocation0] sm:$0x1] %vm35_vm6, %v34_v29   ;;  %v47_v31 = vpop.permute.xlu1 %46   ;;  %vm139_vm6 = vcmask 244896  }
  0x7d   :  { %49 = vst.msk [vmem:[#allocation0] sm:$0x1] %vm48_vm8, %v47_v31   ;;  %vm152_vm8 = vcmask 162896  }
  0x7e   :  { %v40_v30 = vpop.permute.xlu0 %39  }
  0x7f   :  { %43 = vst.msk [vmem:[#allocation0 + $0x8] sm:$0x1] %vm41_vm7, %v40_v30   ;;  %vm145_vm7 = vcmask 179296  }
  0x80   :  { %v60_v33 = vpop.permute.xlu1 %59  }
  0x81   :  { %62 = vst.msk [vmem:[#allocation0] sm:$0x1] %vm61_vm10, %v60_v33  }
  0x82   :  { %v53_v32 = vpop.permute.xlu0 %52  }
  0x83   :  { %56 = vst.msk [vmem:[#allocation0 + $0x8] sm:$0x1] %vm54_vm9, %v53_v32   ;;  %vm158_vm9 = vcmask 97296  }
  0x84   :  { %v73_v35 = vpop.permute.xlu1 %72  }
  0x85   :  { %75 = vst.msk [vmem:[#allocation0] sm:$0x1] %vm74_vm12, %v73_v35  }
  0x86   :  { %v66_v34 = vpop.permute.xlu0 %65  }
  0x87   :  { %69 = vst.msk [vmem:[#allocation0 + $0x8] sm:$0x1] %vm67_vm11, %v66_v34  }
  0x88   :  { %v86_v37 = vpop.permute.xlu1 %85  }
  0x89   :  { %88 = vst.msk [vmem:[#allocation0] sm:$0x1] %vm87_vm14, %v86_v37  }
  0x8a   :  { %v79_v36 = vpop.permute.xlu0 %78  }
  0x8b   :  { %82 = vst.msk [vmem:[#allocation0 + $0x8] sm:$0x1] %vm80_vm13, %v79_v36  }
  0x8c   :  { %v99_v39 = vpop.permute.xlu1 %98  }
  0x8d   :  { %101 = vst.msk [vmem:[#allocation0] sm:$0x1] %vm100_vm0, %v99_v39  }
  0x8e   :  { %v92_v38 = vpop.permute.xlu0 %91  }
  0x8f   :  { %95 = vst.msk [vmem:[#allocation0 + $0x8] sm:$0x1] %vm93_vm15, %v92_v38  }
  0x90   :  { %v112_v41 = vpop.permute.xlu1 %111  }
  0x91   :  { %114 = vst.msk [vmem:[#allocation0] sm:$0x1] %vm113_vm2, %v112_v41  }
  0x92   :  { %v105_v40 = vpop.permute.xlu0 %104  }
  0x93   :  { %108 = vst.msk [vmem:[#allocation0 + $0x8] sm:$0x1] %vm106_vm1, %v105_v40  }
  0x94   :  { %v125_v43 = vpop.permute.xlu1 %124  }
  0x95   :  { %127 = vst.msk [vmem:[#allocation0] sm:$0x1] %vm126_vm4, %v125_v43  }
  0x96   :  { %v118_v42 = vpop.permute.xlu0 %117  }
  0x97   :  { %121 = vst.msk [vmem:[#allocation0 + $0x8] sm:$0x1] %vm119_vm3, %v118_v42  }
  0x98   :  { %v138_v45 = vpop.permute.xlu1 %137  }
  0x99   :  { %140 = vst.msk [vmem:[#allocation0] sm:$0x1] %vm139_vm6, %v138_v45  }
  0x9a   :  { %v131_v44 = vpop.permute.xlu0 %130  }
  0x9b   :  { %134 = vst.msk [vmem:[#allocation0 + $0x8] sm:$0x1] %vm132_vm5, %v131_v44  }
  0x9c   :  { %v151_v47 = vpop.permute.xlu1 %150  }
  0x9d   :  { %153 = vst.msk [vmem:[#allocation0] sm:$0x1] %vm152_vm8, %v151_v47  }
  0x9e   :  { %v144_v46 = vpop.permute.xlu0 %143  }
  0x9f   :  { %147 = vst.msk [vmem:[#allocation0 + $0x8] sm:$0x1] %vm145_vm7, %v144_v46  }
  0xa2   :  { %v157_v48 = vpop.permute.xlu0 %156  }
  0xa3   :  { %160 = vst.msk [vmem:[#allocation0 + $0x8] sm:$0x1] %vm158_vm9, %v157_v48  }
  0xa4   :  { %v164_v49 = vld [vmem:[#allocation0] sm:$0x1] }
  0xa5   :  { %166 = vst [vmem:[%s335_s1] sm:$0x1] %v164_v49 }
  0xaa   :  { %v168_v50 = vld [vmem:[#allocation0 + $0x8] sm:$0x1] }
  0xab   :  { %196 = vst [vmem:[%s335_s1 + $0x1] sm:$0x1] %v168_v50 }

// kernel: net_forward.1
= control target key start
LH: loop header
LB: loop body
LE: loop exit
PB: predicated region body
PF: predicated region fallthrough
CT: control target
= control target key end

     0   :  { %v9784_v0 = vmov 0.0|0.0   ;;  %vm129_vm0 = vcmask 785408   ;;  %vm783_vm1 = vcmask 1043456   ;;  %vm9785_vm2 = vmmov 1   ;;  %s13574_s0 = inlined_call_operand.vmem [shape: f32[224,28], index: 0, kind: input, shape index: {}]   ;;  %s13575_s1 = inlined_call_operand.vmem [shape: f32[5,192,224], index: 1, kind: input, shape index: {}]   ;;  %s13576_s2 = inlined_call_operand.vmem [shape: f32[5,28,240], index: 2, kind: input, shape index: {}]   ;;  %s13577_s4 = inlined_call_operand.vmem [shape: f32[240,240], index: 4, kind: input, shape index: {}]   ;;  %s13578_s3 = inlined_call_operand.vmem [shape: f32[1,240], index: 3, kind: input, shape index: {}]   ;;  %s13579_s5 = inlined_call_operand.vmem [shape: f32[2,96,192], index: 5, kind: input, shape index: {}]   ;;  %s13580_s6 = inlined_call_operand.vmem [shape: f32[5,64,96], index: 6, kind: input, shape index: {}]   ;;  %s13581_s7 = inlined_call_operand.vmem [shape: f32[5,120,160], index: 7, kind: input, shape index: {}]   ;;  %s13582_s9 = inlined_call_operand.vmem [shape: f32[160,160], index: 9, kind: input, shape index: {}]   ;;  %s13583_s8 = inlined_call_operand.vmem [shape: f32[1,160], index: 8, kind: input, shape index: {}]   ;;  %s13584_s10 = inlined_call_operand.vmem [shape: f32[2,32,64], index: 10, kind: input, shape index: {}]   ;;  %s13585_s12 = inlined_call_operand.vmem [shape: f32[4,80,50], index: 12, kind: input, shape index: {}]   ;;  %s13586_s11 = inlined_call_operand.vmem [shape: f32[4,8,32], index: 11, kind: input, shape index: {}]   ;;  %s13587_s14 = inlined_call_operand.vmem [shape: f32[50,128], index: 14, kind: input, shape index: {}]   ;;  %s13588_s13 = inlined_call_operand.vmem [shape: f32[1,50], index: 13, kind: input, shape index: {}]   ;;  %s13589_s15 = inlined_call_operand.vmem [shape: f32[1,128], index: 15, kind: input, shape index: {}]   ;;  %s13590_s16 = inlined_call_operand.vmem [shape: f32[8,128], index: 16, kind: output, shape index: {}]  }
   0x1   :  { %13592 = sst [smem:[#allocation2_spill]] %s13574_s0  ;;  %8583 = vmatprep.subr.bf16.mxu1 %v9784_v0  ;;  %8541 = vmatprep.subr.bf16.mxu0 %v9784_v0  ;;  %v7150_v12 = vld [vmem:[%s13575_s1 + $0x188] sm:$0xff]  ;;  %v7224_v45 = vld [vmem:[%s13576_s2 + $0x58] sm:$0xff]  ;;  %v7221_v48 = vld [vmem:[%s13576_s2 + $0x40] sm:$0xff]  ;;  %vm710_vm4 = vcmask 228352   ;;  %vm3404_vm5 = vcmask 916480  }
   0x2   :  { %s13593_s23 = sld [smem:[#allocation2_spill]]  ;;  %7197 = vmatprep.mubr.msk.f32.mxu1 %vm129_vm0, %v7150_v12  ;;  %v82_v25 = vld [vmem:[%s13575_s1 + $0x8] sm:$0xff]  ;;  %v7223_v49 = vld [vmem:[%s13576_s2 + $0x50] sm:$0xff]  ;;  %v7228_v51 = vld [vmem:[%s13576_s2 + $0x78] sm:$0xf]  ;;  %vm3927_vm6 = vcmask 523264  }
   0x3   :  { %7125 = vmatprep.mubr.msk.f32.mxu0 %vm129_vm0, %v82_v25  ;;  %v7222_v44 = vld [vmem:[%s13576_s2 + $0x48] sm:$0xff]  ;;  %v7149_v52 = vld [vmem:[%s13575_s1 + $0x180] sm:$0xff]  ;;  %v7152_v54 = vld [vmem:[%s13575_s1 + $0x198] sm:$0xff]  ;;  %v8627_v56 = vpack.c.bf16 %v7223_v49, %v7221_v48  ;;  %vm3830_vm7 = vcmask 64512   ;;  %vm4623_vm8 = vcmask 982016   ;;  %vm5948_vm9 = vcmask 261120  }
   0x4   :  { %v8625_v47 = vpack.c.bf16 %v7224_v45, %v7222_v44  ;;  %v7226_v50 = vld [vmem:[%s13576_s2 + $0x68] sm:$0xff]  ;;  %v81_v53 = vld [vmem:[%s13575_s1] sm:$0xff]  ;;  %v84_v55 = vld [vmem:[%s13575_s1 + $0x18] sm:$0xff]  ;;  %vm6134_vm10 = vcmask 392192   ;;  %vm9789_vm11 = vmmov 0   ;;  %vm6536_vm12 = vcmask 654336  }
   0x5   :  { %v8629_v57 = vpack.c.bf16 %v7228_v51, %v7226_v50  ;;  %v7225_v58 = vld [vmem:[%s13576_s2 + $0x60] sm:$0xff]  ;;  %v7227_v59 = vld [vmem:[%s13576_s2 + $0x70] sm:$0xf]  ;;  %vm10088_vm3 = vmpackc.low %vm783_vm1, %vm9785_vm2  ;;  %vm7030_vm13 = vcmask 1041408   ;;  %vm7026_vm14 = vcmask 408576  }
   0x6   :  { %v7151_v61 = vld [vmem:[%s13575_s1 + $0x190] sm:$0xff]  ;;  %v7154_v63 = vld [vmem:[%s13575_s1 + $0x1a8] sm:$0xff]  ;;  %v7169_v49 = vld [vmem:[%s13575_s1 + $0x220] sm:$0xff] }
   0x7   :  { %v83_v62 = vld [vmem:[%s13575_s1 + $0x10] sm:$0xff]  ;;  %v7158_v12 = vld [vmem:[%s13575_s1 + $0x1c8] sm:$0xff]  ;;  %v101_v50 = vld [vmem:[%s13575_s1 + $0xa0] sm:$0xff] }
   0x8   :  { %v53_v1 = vld [vmem:[%s13593_s23] sm:$0xff]  ;;  %v54_v2 = vld [vmem:[%s13593_s23 + $0x8] sm:$0xff]  ;;  %v55_v3 = vld [vmem:[%s13593_s23 + $0x10] sm:$0xff] }
   0x9   :  { %v9886_v4 = vpack.c.bf16 %v54_v2, %v53_v1  ;;  %v56_v5 = vld [vmem:[%s13593_s23 + $0x18] sm:$0xff]  ;;  %v57_v7 = vld [vmem:[%s13593_s23 + $0x20] sm:$0xff]  ;;  %v58_v8 = vld [vmem:[%s13593_s23 + $0x28] sm:$0xff]  ;;  %v8632_v2 = vpack.c.bf16 %v7227_v59, %v7225_v58 }
   0xa   :  { %v9892_v6 = vpack.c.bf16 %v56_v5, %v55_v3  ;;  %v9904_v9 = vpack.c.bf16 %v58_v8, %v57_v7  ;;  %v59_v10 = vld [vmem:[%s13593_s23 + $0x30] sm:$0xff]  ;;  %v60_v11 = vld [vmem:[%s13593_s23 + $0x38] sm:$0xff]  ;;  %v61_v14 = vld [vmem:[%s13593_s23 + $0x40] sm:$0xff] }
   0xb   :  { %8585 = vmatpush1.bf16.msra.mxu1 %v9886_v4  ;;  %8543 = vmatpush1.bf16.msra.mxu0 %v9886_v4  ;;  %v9920_v13 = vpack.c.bf16 %v60_v11, %v59_v10  ;;  %v62_v15 = vld [vmem:[%s13593_s23 + $0x48] sm:$0xff]  ;;  %v63_v17 = vld [vmem:[%s13593_s23 + $0x50] sm:$0xff]  ;;  %v64_v18 = vld [vmem:[%s13593_s23 + $0x58] sm:$0xff] }
   0xc   :  { %8586 = vmatprep.subr.bf16.mxu1 %v9784_v0  ;;  %8544 = vmatprep.subr.bf16.mxu0 %v9784_v0  ;;  %v9932_v16 = vpack.c.bf16 %v62_v15, %v61_v14  ;;  %v9944_v19 = vpack.c.bf16 %v64_v18, %v63_v17  ;;  %v65_v20 = vld [vmem:[%s13593_s23 + $0x60] sm:$0xff]  ;;  %v66_v21 = vld [vmem:[%s13593_s23 + $0x68] sm:$0xff]  ;;  %v67_v23 = vld [vmem:[%s13593_s23 + $0x70] sm:$0xff] }
   0xd   :  { %v9956_v22 = vpack.c.bf16 %v66_v21, %v65_v20  ;;  %v68_v24 = vld [vmem:[%s13593_s23 + $0x78] sm:$0xff]  ;;  %v69_v27 = vld [vmem:[%s13593_s23 + $0x80] sm:$0xff]  ;;  %v70_v28 = vld [vmem:[%s13593_s23 + $0x88] sm:$0xff] }
   0xe   :  { %v9972_v26 = vpack.c.bf16 %v68_v24, %v67_v23  ;;  %v9984_v29 = vpack.c.bf16 %v70_v28, %v69_v27  ;;  %v71_v30 = vld [vmem:[%s13593_s23 + $0x90] sm:$0xff]  ;;  %v72_v31 = vld [vmem:[%s13593_s23 + $0x98] sm:$0xff]  ;;  %v73_v33 = vld [vmem:[%s13593_s23 + $0xa0] sm:$0xff] }
   0xf   :  { %8588 = vmatpush1.bf16.msra.mxu1 %v9892_v6  ;;  %8546 = vmatpush1.bf16.msra.mxu0 %v9892_v6  ;;  %v9996_v32 = vpack.c.bf16 %v72_v31, %v71_v30  ;;  %v74_v34 = vld [vmem:[%s13593_s23 + $0xa8] sm:$0xff]  ;;  %v75_v36 = vld [vmem:[%s13593_s23 + $0xb0] sm:$0xff]  ;;  %v76_v37 = vld [vmem:[%s13593_s23 + $0xb8] sm:$0xff] }
  0x10   :  { %8589 = vmatprep.subr.bf16.mxu1 %v9784_v0  ;;  %8547 = vmatprep.subr.bf16.mxu0 %v9784_v0  ;;  %v10008_v35 = vpack.c.bf16 %v74_v34, %v73_v33  ;;  %v10020_v38 = vpack.c.bf16 %v76_v37, %v75_v36  ;;  %v77_v39 = vld [vmem:[%s13593_s23 + $0xc0] sm:$0xff]  ;;  %v78_v40 = vld [vmem:[%s13593_s23 + $0xc8] sm:$0xff]  ;;  %v79_v42 = vld [vmem:[%s13593_s23 + $0xd0] sm:$0xff] }
  0x11   :  { %v10032_v41 = vpack.c.bf16 %v78_v40, %v77_v39  ;;  %v80_v43 = vld [vmem:[%s13593_s23 + $0xd8] sm:$0xff]  ;;  %v86_v1 = vld [vmem:[%s13575_s1 + $0x28] sm:$0xff]  ;;  %v7153_v3 = vld [vmem:[%s13575_s1 + $0x1a0] sm:$0xff] }
  0x12   :  { %v10050_v46 = vpack.c.bf16 %v80_v43, %v79_v42  ;;  %v85_v5 = vld [vmem:[%s13575_s1 + $0x20] sm:$0xff]  ;;  %v7156_v7 = vld [vmem:[%s13575_s1 + $0x1b8] sm:$0xff]  ;;  %v7155_v10 = vld [vmem:[%s13575_s1 + $0x1b0] sm:$0xff] }
  0x13   :  { %8591 = vmatpush1.bf16.msra.mxu1 %v9904_v9  ;;  %8549 = vmatpush1.bf16.msra.mxu0 %v9904_v9  ;;  %v88_v8 = vld [vmem:[%s13575_s1 + $0x38] sm:$0xff]  ;;  %v87_v11 = vld [vmem:[%s13575_s1 + $0x30] sm:$0xff]  ;;  %v90_v14 = vld [vmem:[%s13575_s1 + $0x48] sm:$0xff] }
  0x14   :  { %8592 = vmatprep.subr.bf16.mxu1 %v9784_v0  ;;  %8550 = vmatprep.subr.bf16.mxu0 %v9784_v0  ;;  %v7157_v15 = vld [vmem:[%s13575_s1 + $0x1c0] sm:$0xff]  ;;  %v7160_v18 = vld [vmem:[%s13575_s1 + $0x1d8] sm:$0xff]  ;;  %v7159_v21 = vld [vmem:[%s13575_s1 + $0x1d0] sm:$0xff] }
  0x15   :  { %v89_v17 = vld [vmem:[%s13575_s1 + $0x40] sm:$0xff]  ;;  %v92_v20 = vld [vmem:[%s13575_s1 + $0x58] sm:$0xff]  ;;  %v91_v23 = vld [vmem:[%s13575_s1 + $0x50] sm:$0xff] }
  0x16   :  { %v7162_v24 = vld [vmem:[%s13575_s1 + $0x1e8] sm:$0xff]  ;;  %v7161_v27 = vld [vmem:[%s13575_s1 + $0x1e0] sm:$0xff]  ;;  %v7164_v30 = vld [vmem:[%s13575_s1 + $0x1f8] sm:$0xff] }
  0x17   :  { %8594 = vmatpush1.bf16.msra.mxu1 %v9920_v13  ;;  %8552 = vmatpush1.bf16.msra.mxu0 %v9920_v13  ;;  %v94_v25 = vld [vmem:[%s13575_s1 + $0x68] sm:$0xff]  ;;  %v93_v28 = vld [vmem:[%s13575_s1 + $0x60] sm:$0xff]  ;;  %v96_v31 = vld [vmem:[%s13575_s1 + $0x78] sm:$0xff] }
  0x18   :  { %8595 = vmatprep.subr.bf16.mxu1 %v9784_v0  ;;  %8553 = vmatprep.subr.bf16.mxu0 %v9784_v0  ;;  %v7163_v33 = vld [vmem:[%s13575_s1 + $0x1f0] sm:$0xff]  ;;  %v7166_v36 = vld [vmem:[%s13575_s1 + $0x208] sm:$0xff]  ;;  %v7165_v39 = vld [vmem:[%s13575_s1 + $0x200] sm:$0xff] }
  0x19   :  { %v95_v34 = vld [vmem:[%s13575_s1 + $0x70] sm:$0xff]  ;;  %v98_v37 = vld [vmem:[%s13575_s1 + $0x88] sm:$0xff]  ;;  %v97_v40 = vld [vmem:[%s13575_s1 + $0x80] sm:$0xff] }
  0x1a   :  { %v7168_v42 = vld [vmem:[%s13575_s1 + $0x218] sm:$0xff]  ;;  %v7167_v44 = vld [vmem:[%s13575_s1 + $0x210] sm:$0xff]  ;;  %v102_v48 = vld [vmem:[%s13575_s1 + $0xa8] sm:$0xff] }
  0x1b   :  { %8597 = vmatpush1.bf16.msra.mxu1 %v9932_v16  ;;  %8555 = vmatpush1.bf16.msra.mxu0 %v9932_v16  ;;  %v100_v43 = vld [vmem:[%s13575_s1 + $0x98] sm:$0xff]  ;;  %v99_v45 = vld [vmem:[%s13575_s1 + $0x90] sm:$0xff]  ;;  %v105_v58 = vld [vmem:[%s13575_s1 + $0xc0] sm:$0xff] }
  0x1c   :  { %8598 = vmatprep.subr.bf16.mxu1 %v9784_v0  ;;  %8556 = vmatprep.subr.bf16.mxu0 %v9784_v0  ;;  %v7172_v51 = vld [vmem:[%s13575_s1 + $0x238] sm:$0xff] }
  0x1d   :  { %v7176_v59 = vld [vmem:[%s13575_s1 + $0x258] sm:$0xff] }
  0x1f   :  { %8600 = vmatpush1.bf16.msra.mxu1 %v9944_v19  ;;  %8558 = vmatpush1.bf16.msra.mxu0 %v9944_v19 }
  0x20   :  { %8601 = vmatprep.subr.bf16.mxu1 %v9784_v0  ;;  %8559 = vmatprep.subr.bf16.mxu0 %v9784_v0 }
  0x23   :  { %8603 = vmatpush1.bf16.msra.mxu1 %v9956_v22  ;;  %8561 = vmatpush1.bf16.msra.mxu0 %v9956_v22 }
  0x24   :  { %8604 = vmatprep.subr.bf16.mxu1 %v9784_v0  ;;  %8562 = vmatprep.subr.bf16.mxu0 %v9784_v0 }
  0x27   :  { %8606 = vmatpush1.bf16.msra.mxu1 %v9972_v26  ;;  %8564 = vmatpush1.bf16.msra.mxu0 %v9972_v26 }
  0x28   :  { %8607 = vmatprep.subr.bf16.mxu1 %v9784_v0  ;;  %8565 = vmatprep.subr.bf16.mxu0 %v9784_v0 }
  0x2b   :  { %8609 = vmatpush1.bf16.msra.mxu1 %v9984_v29  ;;  %8567 = vmatpush1.bf16.msra.mxu0 %v9984_v29 }
  0x2c   :  { %8610 = vmatprep.subr.bf16.mxu1 %v9784_v0  ;;  %8568 = vmatprep.subr.bf16.mxu0 %v9784_v0 }
  0x2f   :  { %8612 = vmatpush1.bf16.msra.mxu1 %v9996_v32  ;;  %8570 = vmatpush1.bf16.msra.mxu0 %v9996_v32 }
  0x30   :  { %8613 = vmatprep.subr.bf16.mxu1 %v9784_v0  ;;  %8571 = vmatprep.subr.bf16.mxu0 %v9784_v0 }
  0x33   :  { %8615 = vmatpush1.bf16.msra.mxu1 %v10008_v35  ;;  %8573 = vmatpush1.bf16.msra.mxu0 %v10008_v35 }
  0x34   :  { %8616 = vmatprep.subr.bf16.mxu1 %v9784_v0  ;;  %8574 = vmatprep.subr.bf16.mxu0 %v9784_v0 }
  0x37   :  { %8618 = vmatpush1.bf16.msra.mxu1 %v10020_v38  ;;  %8576 = vmatpush1.bf16.msra.mxu0 %v10020_v38 }
  0x38   :  { %8619 = vmatprep.subr.bf16.mxu1 %v9784_v0  ;;  %8577 = vmatprep.subr.bf16.mxu0 %v9784_v0 }
  0x3b   :  { %8621 = vmatpush1.bf16.msra.mxu1 %v10032_v41  ;;  %8579 = vmatpush1.bf16.msra.mxu0 %v10032_v41 }
  0x3c   :  { %8622 = vmatprep.subr.bf16.mxu1 %v9784_v0  ;;  %8580 = vmatprep.subr.bf16.mxu0 %v9784_v0 }
  0x3f   :  { %8624 = vmatpush1.bf16.msra.mxu1 %v10050_v46  ;;  %8582 = vmatpush1.bf16.msra.mxu0 %v10050_v46 }
  0x40   :  { %8645 = vmatprep.subr.bf16.mxu1 %v9784_v0  ;;  %8626 = vmatprep.subr.bf16.mxu0 %v8625_v47  ;;  %v7170_v47 = vld [vmem:[%s13575_s1 + $0x228] sm:$0xff] }
  0x42   :  { %581 = vmatmul.mubr.f32.vlgmr.msra.gmra.mrb[0].mxu1 %v7149_v52  ;;  %267 = vmatmul.mubr.f32.vlgmr.msra.gmra.mrb[0].mxu0 %v81_v53  ;;  %v104_v52 = vld [vmem:[%s13575_s1 + $0xb8] sm:$0xff]  ;;  %v7171_v53 = vld [vmem:[%s13575_s1 + $0x230] sm:$0xff] }
  0x43   :  { %7198 = vmatprep.mubr.msk.f32.mxu1 %vm129_vm0, %v7152_v54  ;;  %7126 = vmatprep.mubr.msk.f32.mxu0 %vm129_vm0, %v84_v55  ;;  %v103_v54 = vld [vmem:[%s13575_s1 + $0xb0] sm:$0xff]  ;;  %v7174_v55 = vld [vmem:[%s13575_s1 + $0x248] sm:$0xff] }
  0x44   :  { %8647 = vmatpush1.bf16.msra.mxu1 %v9886_v4  ;;  %8628 = vmatpush1.bf16.msra.mxu0 %v8627_v56  ;;  %v106_v56 = vld [vmem:[%s13575_s1 + $0xc8] sm:$0xff] }
  0x45   :  { %8648 = vmatprep.subr.bf16.mxu1 %v9784_v0  ;;  %8631 = vmatprep.subr.msk.bf16.mxu0 %vm10088_vm3, %v8629_v57  ;;  %v7173_v57 = vld [vmem:[%s13575_s1 + $0x240] sm:$0xff] }
  0x46   :  { %586 = vmatmul.mubr.f32.gmra.mrb[2].mxu1 %v7151_v61  ;;  %272 = vmatmul.mubr.f32.gmra.mrb[2].mxu0 %v83_v62  ;;  %v108_v61 = vld [vmem:[%s13575_s1 + $0xd8] sm:$0xff]  ;;  %v7175_v62 = vld [vmem:[%s13575_s1 + $0x250] sm:$0xff] }
  0x47   :  { %7199 = vmatprep.mubr.msk.f32.mxu1 %vm129_vm0, %v7154_v63  ;;  %7127 = vmatprep.mubr.msk.f32.mxu0 %vm129_vm0, %v86_v1  ;;  %v107_v63 = vld [vmem:[%s13575_s1 + $0xd0] sm:$0xff]  ;;  %v7178_v1 = vld [vmem:[%s13575_s1 + $0x268] sm:$0xff] }
  0x48   :  { %8650 = vmatpush1.bf16.msra.mxu1 %v9892_v6  ;;  %8634 = vmatpush1.bf16.msk.msra.mxu0 %vm10088_vm3, %v8632_v2  ;;  %v110_v2 = vld [vmem:[%s13575_s1 + $0xe8] sm:$0xff] }
  0x49   :  { %8651 = vmatprep.subr.bf16.mxu1 %v9784_v0 }
  0x4a   :  { %591 = vmatmul.mubr.f32.gmra.mrb[4].mxu1 %v7153_v3  ;;  %277 = vmatmul.mubr.f32.gmra.mrb[4].mxu0 %v85_v5  ;;  %v7177_v3 = vld [vmem:[%s13575_s1 + $0x260] sm:$0xff] }
  0x4b   :  { %7200 = vmatprep.mubr.msk.f32.mxu1 %vm129_vm0, %v7156_v7  ;;  %7128 = vmatprep.mubr.msk.f32.mxu0 %vm129_vm0, %v88_v8  ;;  %v109_v5 = vld [vmem:[%s13575_s1 + $0xe0] sm:$0xff]  ;;  %v7180_v7 = vld [vmem:[%s13575_s1 + $0x278] sm:$0xff] }
  0x4c   :  { %8653 = vmatpush1.bf16.msra.mxu1 %v9904_v9  ;;  %v112_v8 = vld [vmem:[%s13575_s1 + $0xf8] sm:$0xff] }
  0x4d   :  { %8654 = vmatprep.subr.bf16.mxu1 %v9784_v0 }
  0x4e   :  { %596 = vmatmul.mubr.f32.gmra.mrb[6].mxu1 %v7155_v10  ;;  %282 = vmatmul.mubr.f32.gmra.mrb[6].mxu0 %v87_v11  ;;  %v7179_v10 = vld [vmem:[%s13575_s1 + $0x270] sm:$0xff] }
  0x4f   :  { %7201 = vmatprep.mubr.msk.f32.mxu1 %vm129_vm0, %v7158_v12  ;;  %7129 = vmatprep.mubr.msk.f32.mxu0 %vm129_vm0, %v90_v14  ;;  %v111_v11 = vld [vmem:[%s13575_s1 + $0xf0] sm:$0xff]  ;;  %v7182_v12 = vld [vmem:[%s13575_s1 + $0x288] sm:$0xff] }
  0x50   :  { %8656 = vmatpush1.bf16.msra.mxu1 %v9920_v13  ;;  %v114_v14 = vld [vmem:[%s13575_s1 + $0x108] sm:$0xff] }
  0x51   :  { %8657 = vmatprep.subr.bf16.mxu1 %v9784_v0 }
  0x52   :  { %601 = vmatmul.mubr.f32.gmra.mrb[8].mxu1 %v7157_v15  ;;  %287 = vmatmul.mubr.f32.gmra.mrb[8].mxu0 %v89_v17  ;;  %v7181_v15 = vld [vmem:[%s13575_s1 + $0x280] sm:$0xff] }
  0x53   :  { %7202 = vmatprep.mubr.msk.f32.mxu1 %vm129_vm0, %v7160_v18  ;;  %7130 = vmatprep.mubr.msk.f32.mxu0 %vm129_vm0, %v92_v20  ;;  %v113_v17 = vld [vmem:[%s13575_s1 + $0x100] sm:$0xff]  ;;  %v7184_v18 = vld [vmem:[%s13575_s1 + $0x298] sm:$0xff] }
  0x54   :  { %8659 = vmatpush1.bf16.msra.mxu1 %v9932_v16  ;;  %v116_v20 = vld [vmem:[%s13575_s1 + $0x118] sm:$0xff] }
  0x55   :  { %8660 = vmatprep.subr.bf16.mxu1 %v9784_v0 }
  0x56   :  { %606 = vmatmul.mubr.f32.gmra.mrb[10].mxu1 %v7159_v21  ;;  %292 = vmatmul.mubr.f32.gmra.mrb[10].mxu0 %v91_v23  ;;  %v7183_v21 = vld [vmem:[%s13575_s1 + $0x290] sm:$0xff] }
  0x57   :  { %7203 = vmatprep.mubr.msk.f32.mxu1 %vm129_vm0, %v7162_v24  ;;  %7131 = vmatprep.mubr.msk.f32.mxu0 %vm129_vm0, %v94_v25  ;;  %v115_v23 = vld [vmem:[%s13575_s1 + $0x110] sm:$0xff]  ;;  %v7186_v24 = vld [vmem:[%s13575_s1 + $0x2a8] sm:$0xff] }
  0x58   :  { %8662 = vmatpush1.bf16.msra.mxu1 %v9944_v19  ;;  %v118_v25 = vld [vmem:[%s13575_s1 + $0x128] sm:$0xff] }
  0x59   :  { %8663 = vmatprep.subr.bf16.mxu1 %v9784_v0 }
  0x5a   :  { %611 = vmatmul.mubr.f32.gmra.mrb[12].mxu1 %v7161_v27  ;;  %297 = vmatmul.mubr.f32.gmra.mrb[12].mxu0 %v93_v28  ;;  %v7185_v27 = vld [vmem:[%s13575_s1 + $0x2a0] sm:$0xff] }
  0x5b   :  { %7204 = vmatprep.mubr.msk.f32.mxu1 %vm129_vm0, %v7164_v30  ;;  %7132 = vmatprep.mubr.msk.f32.mxu0 %vm129_vm0, %v96_v31  ;;  %v117_v28 = vld [vmem:[%s13575_s1 + $0x120] sm:$0xff]  ;;  %v7188_v30 = vld [vmem:[%s13575_s1 + $0x2b8] sm:$0xff] }
  0x5c   :  { %8665 = vmatpush1.bf16.msra.mxu1 %v9956_v22  ;;  %v120_v31 = vld [vmem:[%s13575_s1 + $0x138] sm:$0xff] }
  0x5d   :  { %8666 = vmatprep.subr.bf16.mxu1 %v9784_v0 }
  0x5e   :  { %616 = vmatmul.mubr.f32.gmra.mrb[14].mxu1 %v7163_v33  ;;  %302 = vmatmul.mubr.f32.gmra.mrb[14].mxu0 %v95_v34  ;;  %v7187_v33 = vld [vmem:[%s13575_s1 + $0x2b0] sm:$0xff] }
  0x5f   :  { %7205 = vmatprep.mubr.msk.f32.mxu1 %vm129_vm0, %v7166_v36  ;;  %7133 = vmatprep.mubr.msk.f32.mxu0 %vm129_vm0, %v98_v37  ;;  %v119_v34 = vld [vmem:[%s13575_s1 + $0x130] sm:$0xff]  ;;  %v7190_v36 = vld [vmem:[%s13575_s1 + $0x2c8] sm:$0xff] }
  0x60   :  { %8668 = vmatpush1.bf16.msra.mxu1 %v9972_v26  ;;  %v122_v37 = vld [vmem:[%s13575_s1 + $0x148] sm:$0xff] }
  0x61   :  { %8669 = vmatprep.subr.bf16.mxu1 %v9784_v0 }
  0x62   :  { %621 = vmatmul.mubr.f32.gmra.mrb[16].mxu1 %v7165_v39  ;;  %307 = vmatmul.mubr.f32.gmra.mrb[16].mxu0 %v97_v40  ;;  %v7189_v39 = vld [vmem:[%s13575_s1 + $0x2c0] sm:$0xff] }
  0x63   :  { %7206 = vmatprep.mubr.msk.f32.mxu1 %vm129_vm0, %v7168_v42  ;;  %7134 = vmatprep.mubr.msk.f32.mxu0 %vm129_vm0, %v100_v43  ;;  %v121_v40 = vld [vmem:[%s13575_s1 + $0x140] sm:$0xff]  ;;  %v7192_v42 = vld [vmem:[%s13575_s1 + $0x2d8] sm:$0xff] }
  0x64   :  { %8671 = vmatpush1.bf16.msra.mxu1 %v9984_v29  ;;  %v124_v43 = vld [vmem:[%s13575_s1 + $0x158] sm:$0xff] }
  0x65   :  { %8672 = vmatprep.subr.bf16.mxu1 %v9784_v0 }
  0x66   :  { %626 = vmatmul.mubr.f32.gmra.mrb[18].mxu1 %v7167_v44  ;;  %312 = vmatmul.mubr.f32.gmra.mrb[18].mxu0 %v99_v45  ;;  %v7191_v44 = vld [vmem:[%s13575_s1 + $0x2d0] sm:$0xff] }
  0x67   :  { %7207 = vmatprep.mubr.msk.f32.mxu1 %vm129_vm0, %v7170_v47  ;;  %7135 = vmatprep.mubr.msk.f32.mxu0 %vm129_vm0, %v102_v48  ;;  %v123_v45 = vld [vmem:[%s13575_s1 + $0x150] sm:$0xff]  ;;  %v7194_v47 = vld [vmem:[%s13575_s1 + $0x2e8] sm:$0xff] }
  0x68   :  { %8674 = vmatpush1.bf16.msra.mxu1 %v9996_v32  ;;  %v126_v48 = vld [vmem:[%s13575_s1 + $0x168] sm:$0xff] }
  0x69   :  { %8675 = vmatprep.subr.bf16.mxu1 %v9784_v0 }
  0x6a   :  { %631 = vmatmul.mubr.f32.gmra.mrb[20].mxu1 %v7169_v49  ;;  %317 = vmatmul.mubr.f32.gmra.mrb[20].mxu0 %v101_v50  ;;  %v7193_v49 = vld [vmem:[%s13575_s1 + $0x2e0] sm:$0xff] }
  0x6b   :  { %7208 = vmatprep.mubr.msk.f32.mxu1 %vm129_vm0, %v7172_v51  ;;  %7136 = vmatprep.mubr.msk.f32.mxu0 %vm129_vm0, %v104_v52  ;;  %v125_v50 = vld [vmem:[%s13575_s1 + $0x160] sm:$0xff]  ;;  %v7196_v51 = vld [vmem:[%s13575_s1 + $0x2f8] sm:$0xff] }
  0x6c   :  { %8677 = vmatpush1.bf16.msra.mxu1 %v10008_v35  ;;  %v128_v52 = vld [vmem:[%s13575_s1 + $0x178] sm:$0xff] }
  0x6d   :  { %8678 = vmatprep.subr.bf16.mxu1 %v9784_v0 }
  0x6e   :  { %636 = vmatmul.mubr.f32.gmra.mrb[22].mxu1 %v7171_v53  ;;  %322 = vmatmul.mubr.f32.gmra.mrb[22].mxu0 %v103_v54  ;;  %v7195_v53 = vld [vmem:[%s13575_s1 + $0x2f0] sm:$0xff] }
  0x6f   :  { %7209 = vmatprep.mubr.msk.f32.mxu1 %vm129_vm0, %v7174_v55  ;;  %7137 = vmatprep.mubr.msk.f32.mxu0 %vm129_vm0, %v106_v56  ;;  %v127_v54 = vld [vmem:[%s13575_s1 + $0x170] sm:$0xff]  ;;  %v7282_v55 = vld [vmem:[%s13575_s1 + $0x308] sm:$0xff]  ;;  %v7281_v56 = vld [vmem:[%s13575_s1 + $0x300] sm:$0xff] }
  0x70   :  { %8680 = vmatpush1.bf16.msra.mxu1 %v10020_v38 }
  0x71   :  { %8681 = vmatprep.subr.bf16.mxu1 %v9784_v0 }
  0x72   :  { %641 = vmatmul.mubr.f32.gmra.mrb[24].mxu1 %v7173_v57  ;;  %327 = vmatmul.mubr.f32.gmra.mrb[24].mxu0 %v105_v58  ;;  %v9786_v57 = vmov 0.0   ;;  %v7284_v58 = vld [vmem:[%s13575_s1 + $0x318] sm:$0xff] }
  0x73   :  { %7210 = vmatprep.mubr.msk.f32.mxu1 %vm129_vm0, %v7176_v59  ;;  %7138 = vmatprep.mubr.msk.f32.mxu0 %vm129_vm0, %v108_v61  ;;  %v7283_v59 = vld [vmem:[%s13575_s1 + $0x310] sm:$0xff]  ;;  %v7286_v61 = vld [vmem:[%s13575_s1 + $0x328] sm:$0xff] }
  0x74   :  { %8683 = vmatpush1.bf16.msra.mxu1 %v10032_v41 }
  0x75   :  { %8684 = vmatprep.subr.bf16.mxu1 %v9784_v0 }
  0x76   :  { %646 = vmatmul.mubr.f32.gmra.mrb[26].mxu1 %v7175_v62  ;;  %332 = vmatmul.mubr.f32.gmra.mrb[26].mxu0 %v107_v63  ;;  %v7285_v62 = vld [vmem:[%s13575_s1 + $0x320] sm:$0xff]  ;;  %v7288_v63 = vld [vmem:[%s13575_s1 + $0x338] sm:$0xff] }
  0x77   :  { %7211 = vmatprep.mubr.msk.f32.mxu1 %vm129_vm0, %v7178_v1  ;;  %7139 = vmatprep.mubr.msk.f32.mxu0 %vm129_vm0, %v110_v2  ;;  %v388_v1 = vld [vmem:[%s13576_s2 + $0x8] sm:$0xff]  ;;  %v390_v2 = vld [vmem:[%s13576_s2 + $0x18] sm:$0xff] }
  0x78   :  { %8686 = vmatpush1.bf16.msra.mxu1 %v10050_v46 }
  0x79   :  { %8697 = vmatprep.subr.bf16.mxu1 %v9784_v0 }
  0x7a   :  { %651 = vmatmul.mubr.f32.gmra.mrb[28].mxu1 %v7177_v3  ;;  %337 = vmatmul.mubr.f32.gmra.mrb[28].mxu0 %v109_v5  ;;  %v7287_v3 = vld [vmem:[%s13575_s1 + $0x330] sm:$0xff]  ;;  %v8635_v5 = vpack.c.bf16 %v390_v2, %v388_v1  ;;  %v7392_v2 = vld [vmem:[%s13575_s1 + $0x4a8] sm:$0xff] }
  0x7b   :  { %7212 = vmatprep.mubr.msk.f32.mxu1 %vm129_vm0, %v7180_v7  ;;  %7140 = vmatprep.mubr.msk.f32.mxu0 %vm129_vm0, %v112_v8  ;;  %v7290_v7 = vld [vmem:[%s13575_s1 + $0x348] sm:$0xff]  ;;  %v7289_v8 = vld [vmem:[%s13575_s1 + $0x340] sm:$0xff]  ;;  %v7389_v1 = vld [vmem:[%s13575_s1 + $0x490] sm:$0xff] }
  0x7c   :  { %8636 = vmatprep.subr.bf16.mxu0 %v8635_v5  ;;  %v7394_v5 = vld [vmem:[%s13575_s1 + $0x4b8] sm:$0xff] }
  0x7e   :  { %656 = vmatmul.mubr.f32.gmra.mrb[30].mxu1 %v7179_v10  ;;  %342 = vmatmul.mubr.f32.gmra.mrb[30].mxu0 %v111_v11  ;;  %v7292_v10 = vld [vmem:[%s13575_s1 + $0x358] sm:$0xff]  ;;  %v7291_v11 = vld [vmem:[%s13575_s1 + $0x350] sm:$0xff] }
  0x7f   :  { %7213 = vmatprep.mubr.msk.f32.mxu1 %vm129_vm0, %v7182_v12  ;;  %7141 = vmatprep.mubr.msk.f32.mxu0 %vm129_vm0, %v114_v14  ;;  %v7294_v12 = vld [vmem:[%s13575_s1 + $0x368] sm:$0xff]  ;;  %v7293_v14 = vld [vmem:[%s13575_s1 + $0x360] sm:$0xff] }
  0x82   :  { %661 = vmatmul.mubr.f32.gmra.mrb[32].mxu1 %v7181_v15  ;;  %347 = vmatmul.mubr.f32.gmra.mrb[32].mxu0 %v113_v17  ;;  %v7296_v15 = vld [vmem:[%s13575_s1 + $0x378] sm:$0xff]  ;;  %v7295_v17 = vld [vmem:[%s13575_s1 + $0x370] sm:$0xff] }
  0x83   :  { %7214 = vmatprep.mubr.msk.f32.mxu1 %vm129_vm0, %v7184_v18  ;;  %7142 = vmatprep.mubr.msk.f32.mxu0 %vm129_vm0, %v116_v20  ;;  %v7298_v18 = vld [vmem:[%s13575_s1 + $0x388] sm:$0xff]  ;;  %v7297_v20 = vld [vmem:[%s13575_s1 + $0x380] sm:$0xff] }
  0x86   :  { %666 = vmatmul.mubr.f32.gmra.mrb[34].mxu1 %v7183_v21  ;;  %352 = vmatmul.mubr.f32.gmra.mrb[34].mxu0 %v115_v23  ;;  %v7300_v21 = vld [vmem:[%s13575_s1 + $0x398] sm:$0xff]  ;;  %v7299_v23 = vld [vmem:[%s13575_s1 + $0x390] sm:$0xff] }
  0x87   :  { %7215 = vmatprep.mubr.msk.f32.mxu1 %vm129_vm0, %v7186_v24  ;;  %7143 = vmatprep.mubr.msk.f32.mxu0 %vm129_vm0, %v118_v25  ;;  %v7302_v24 = vld [vmem:[%s13575_s1 + $0x3a8] sm:$0xff]  ;;  %v7301_v25 = vld [vmem:[%s13575_s1 + $0x3a0] sm:$0xff] }
  0x8a   :  { %671 = vmatmul.mubr.f32.gmra.mrb[36].mxu1 %v7185_v27  ;;  %357 = vmatmul.mubr.f32.gmra.mrb[36].mxu0 %v117_v28  ;;  %v7304_v27 = vld [vmem:[%s13575_s1 + $0x3b8] sm:$0xff]  ;;  %v7303_v28 = vld [vmem:[%s13575_s1 + $0x3b0] sm:$0xff] }
  0x8b   :  { %7216 = vmatprep.mubr.msk.f32.mxu1 %vm129_vm0, %v7188_v30  ;;  %7144 = vmatprep.mubr.msk.f32.mxu0 %vm129_vm0, %v120_v31  ;;  %v7306_v30 = vld [vmem:[%s13575_s1 + $0x3c8] sm:$0xff]  ;;  %v7305_v31 = vld [vmem:[%s13575_s1 + $0x3c0] sm:$0xff] }
  0x8e   :  { %676 = vmatmul.mubr.f32.gmra.mrb[38].mxu1 %v7187_v33  ;;  %362 = vmatmul.mubr.f32.gmra.mrb[38].mxu0 %v119_v34  ;;  %v7308_v33 = vld [vmem:[%s13575_s1 + $0x3d8] sm:$0xff]  ;;  %v7307_v34 = vld [vmem:[%s13575_s1 + $0x3d0] sm:$0xff] }
  0x8f   :  { %7217 = vmatprep.mubr.msk.f32.mxu1 %vm129_vm0, %v7190_v36  ;;  %7145 = vmatprep.mubr.msk.f32.mxu0 %vm129_vm0, %v122_v37  ;;  %v7310_v36 = vld [vmem:[%s13575_s1 + $0x3e8] sm:$0xff]  ;;  %v7309_v37 = vld [vmem:[%s13575_s1 + $0x3e0] sm:$0xff] }
  0x92   :  { %681 = vmatmul.mubr.f32.gmra.mrb[40].mxu1 %v7189_v39  ;;  %367 = vmatmul.mubr.f32.gmra.mrb[40].mxu0 %v121_v40  ;;  %v7312_v39 = vld [vmem:[%s13575_s1 + $0x3f8] sm:$0xff]  ;;  %v7311_v40 = vld [vmem:[%s13575_s1 + $0x3f0] sm:$0xff] }
  0x93   :  { %7218 = vmatprep.mubr.msk.f32.mxu1 %vm129_vm0, %v7192_v42  ;;  %7146 = vmatprep.mubr.msk.f32.mxu0 %vm129_vm0, %v124_v43  ;;  %v7314_v42 = vld [vmem:[%s13575_s1 + $0x408] sm:$0xff]  ;;  %v7313_v43 = vld [vmem:[%s13575_s1 + $0x400] sm:$0xff] }
  0x96   :  { %686 = vmatmul.mubr.f32.gmra.mrb[42].mxu1 %v7191_v44  ;;  %372 = vmatmul.mubr.f32.gmra.mrb[42].mxu0 %v123_v45  ;;  %v7316_v44 = vld [vmem:[%s13575_s1 + $0x418] sm:$0xff]  ;;  %v7315_v45 = vld [vmem:[%s13575_s1 + $0x410] sm:$0xff] }
  0x97   :  { %7219 = vmatprep.mubr.msk.f32.mxu1 %vm129_vm0, %v7194_v47  ;;  %7147 = vmatprep.mubr.msk.f32.mxu0 %vm129_vm0, %v126_v48  ;;  %v7318_v47 = vld [vmem:[%s13575_s1 + $0x428] sm:$0xff]  ;;  %v7317_v48 = vld [vmem:[%s13575_s1 + $0x420] sm:$0xff] }
  0x9a   :  { %691 = vmatmul.mubr.f32.gmra.mrb[44].mxu1 %v7193_v49  ;;  %377 = vmatmul.mubr.f32.gmra.mrb[44].mxu0 %v125_v50  ;;  %v7320_v49 = vld [vmem:[%s13575_s1 + $0x438] sm:$0xff]  ;;  %v7319_v50 = vld [vmem:[%s13575_s1 + $0x430] sm:$0xff] }
  0x9b   :  { %7220 = vmatprep.mubr.msk.f32.mxu1 %vm129_vm0, %v7196_v51  ;;  %7148 = vmatprep.mubr.msk.f32.mxu0 %vm129_vm0, %v128_v52  ;;  %v7322_v51 = vld [vmem:[%s13575_s1 + $0x448] sm:$0xff]  ;;  %v7321_v52 = vld [vmem:[%s13575_s1 + $0x440] sm:$0xff] }
  0x9e   :  { %696 = vmatmul.mubr.f32.gmra.mrb[46].mxu1 %v7195_v53  ;;  %382 = vmatmul.mubr.f32.gmra.mrb[46].mxu0 %v127_v54  ;;  %v7324_v53 = vld [vmem:[%s13575_s1 + $0x458] sm:$0xff]  ;;  %v7323_v54 = vld [vmem:[%s13575_s1 + $0x450] sm:$0xff] }
  0x9f   :  { %7329 = vmatprep.mubr.msk.f32.mxu1 %vm129_vm0, %v7282_v55  ;;  %854 = vmatprep.mubr.f32.mxu0 %v9786_v57  ;;  %v7326_v55 = vld [vmem:[%s13575_s1 + $0x468] sm:$0xff] }
  0xa2   :  { %1472 = vmatmul.mubr.f32.vlgmr.msra.gmra.mrb[48].mxu1 %v7281_v56  ;;  %v7325_v56 = vld [vmem:[%s13575_s1 + $0x460] sm:$0xff] }
  0xa3   :  { %7330 = vmatprep.mubr.msk.f32.mxu1 %vm129_vm0, %v7284_v58  ;;  %8699 = vmatpush1.bf16.msra.mxu1 %v9886_v4  ;;  %v7328_v58 = vld [vmem:[%s13575_s1 + $0x478] sm:$0xff] }
  0xa4   :  { %8700 = vmatprep.subr.bf16.mxu1 %v9784_v0 }
  0xa6   :  { %1477 = vmatmul.mubr.f32.gmra.mrb[50].mxu1 %v7283_v59  ;;  %v7327_v59 = vld [vmem:[%s13575_s1 + $0x470] sm:$0xff] }
  0xa7   :  { %7331 = vmatprep.mubr.msk.f32.mxu1 %vm129_vm0, %v7286_v61  ;;  %8702 = vmatpush1.bf16.msra.mxu1 %v9892_v6  ;;  %v7388_v61 = vld [vmem:[%s13575_s1 + $0x488] sm:$0xff] }
  0xa8   :  { %8703 = vmatprep.subr.bf16.mxu1 %v9784_v0 }
  0xaa   :  { %1482 = vmatmul.mubr.f32.gmra.mrb[52].mxu1 %v7285_v62  ;;  %v7387_v62 = vld [vmem:[%s13575_s1 + $0x480] sm:$0xff] }
  0xab   :  { %7332 = vmatprep.mubr.msk.f32.mxu1 %vm129_vm0, %v7288_v63  ;;  %8705 = vmatpush1.bf16.msra.mxu1 %v9904_v9  ;;  %v7390_v63 = vld [vmem:[%s13575_s1 + $0x498] sm:$0xff] }
  0xac   :  { %8706 = vmatprep.subr.bf16.mxu1 %v9784_v0 }
  0xae   :  { %1487 = vmatmul.mubr.f32.gmra.mrb[54].mxu1 %v7287_v3  ;;  %v7391_v3 = vld [vmem:[%s13575_s1 + $0x4a0] sm:$0xff] }
  0xaf   :  { %7333 = vmatprep.mubr.msk.f32.mxu1 %vm129_vm0, %v7290_v7  ;;  %8708 = vmatpush1.bf16.msra.mxu1 %v9920_v13  ;;  %v7396_v7 = vld [vmem:[%s13575_s1 + $0x4c8] sm:$0xff] }
  0xb0   :  { %8709 = vmatprep.subr.bf16.mxu1 %v9784_v0 }
  0xb2   :  { %1492 = vmatmul.mubr.f32.gmra.mrb[56].mxu1 %v7289_v8  ;;  %v387_v8 = vld [vmem:[%s13576_s2] sm:$0xff] }
  0xb3   :  { %7334 = vmatprep.mubr.msk.f32.mxu1 %vm129_vm0, %v7292_v10  ;;  %8711 = vmatpush1.bf16.msra.mxu1 %v9932_v16  ;;  %v7398_v10 = vld [vmem:[%s13575_s1 + $0x4d8] sm:$0xff] }
  0xb4   :  { %8712 = vmatprep.subr.bf16.mxu1 %v9784_v0 }
  0xb6   :  { %1497 = vmatmul.mubr.f32.gmra.mrb[58].mxu1 %v7291_v11  ;;  %v392_v11 = vld [vmem:[%s13576_s2 + $0x28] sm:$0xff] }
  0xb7   :  { %7335 = vmatprep.mubr.msk.f32.mxu1 %vm129_vm0, %v7294_v12  ;;  %8714 = vmatpush1.bf16.msra.mxu1 %v9944_v19 }
  0xb8   :  { %8715 = vmatprep.subr.bf16.mxu1 %v9784_v0 }
  0xba   :  { %1502 = vmatmul.mubr.f32.gmra.mrb[60].mxu1 %v7293_v14  ;;  %v7397_v14 = vld [vmem:[%s13575_s1 + $0x4d0] sm:$0xff] }
  0xbb   :  { %7336 = vmatprep.mubr.msk.f32.mxu1 %vm129_vm0, %v7296_v15  ;;  %8717 = vmatpush1.bf16.msra.mxu1 %v9956_v22 }
  0xbc   :  { %8718 = vmatprep.subr.bf16.mxu1 %v9784_v0 }
  0xbe   :  { %1507 = vmatmul.mubr.f32.gmra.mrb[62].mxu1 %v7295_v17  ;;  %v391_v17 = vld [vmem:[%s13576_s2 + $0x20] sm:$0xff] }
  0xbf   :  { %7337 = vmatprep.mubr.msk.f32.mxu1 %vm129_vm0, %v7298_v18  ;;  %8720 = vmatpush1.bf16.msra.mxu1 %v9972_v26  ;;  %v393_v18 = vld [vmem:[%s13576_s2 + $0x30] sm:$0xf] }
  0xc0   :  { %8721 = vmatprep.subr.bf16.mxu1 %v9784_v0 }
  0xc2   :  { %1512 = vmatmul.mubr.f32.gmra.mrb[64].mxu1 %v7297_v20 }
  0xc3   :  { %7338 = vmatprep.mubr.msk.f32.mxu1 %vm129_vm0, %v7300_v21  ;;  %8723 = vmatpush1.bf16.msra.mxu1 %v9984_v29 }
  0xc4   :  { %8724 = vmatprep.subr.bf16.mxu1 %v9784_v0 }
  0xc6   :  { %1517 = vmatmul.mubr.f32.gmra.mrb[66].mxu1 %v7299_v23  ;;  %v7400_v23 = vld [vmem:[%s13575_s1 + $0x4e8] sm:$0xff] }
  0xc7   :  { %7339 = vmatprep.mubr.msk.f32.mxu1 %vm129_vm0, %v7302_v24  ;;  %8726 = vmatpush1.bf16.msra.mxu1 %v9996_v32  ;;  %v7356_v24 = vld [vmem:[%s13576_s2 + $0x98] sm:$0xff] }
  0xc8   :  { %8727 = vmatprep.subr.bf16.mxu1 %v9784_v0 }
  0xca   :  { %1522 = vmatmul.mubr.f32.gmra.mrb[68].mxu1 %v7301_v25 }
  0xcb   :  { %7340 = vmatprep.mubr.msk.f32.mxu1 %vm129_vm0, %v7304_v27  ;;  %8729 = vmatpush1.bf16.msra.mxu1 %v10008_v35 }
  0xcc   :  { %8730 = vmatprep.subr.bf16.mxu1 %v9784_v0 }
  0xce   :  { %1527 = vmatmul.mubr.f32.gmra.mrb[70].mxu1 %v7303_v28  ;;  %v8642_v28 = vpack.c.bf16 %v393_v18, %v391_v17  ;;  %v7415_v18 = vld [vmem:[%s13575_s1 + $0x560] sm:$0xff] }
  0xcf   :  { %7341 = vmatprep.mubr.msk.f32.mxu1 %vm129_vm0, %v7306_v30  ;;  %8732 = vmatpush1.bf16.msra.mxu1 %v10020_v38  ;;  %v7399_v30 = vld [vmem:[%s13575_s1 + $0x4e0] sm:$0xff] }
  0xd0   :  { %8733 = vmatprep.subr.bf16.mxu1 %v9784_v0 }
  0xd2   :  { %1532 = vmatmul.mubr.f32.gmra.mrb[72].mxu1 %v7305_v31 }
  0xd3   :  { %7342 = vmatprep.mubr.msk.f32.mxu1 %vm129_vm0, %v7308_v33  ;;  %8735 = vmatpush1.bf16.msra.mxu1 %v10032_v41 }
  0xd4   :  { %8736 = vmatprep.subr.bf16.mxu1 %v9784_v0 }
  0xd6   :  { %1537 = vmatmul.mubr.f32.gmra.mrb[74].mxu1 %v7307_v34 }
  0xd7   :  { %7343 = vmatprep.mubr.msk.f32.mxu1 %vm129_vm0, %v7310_v36  ;;  %8738 = vmatpush1.bf16.msra.mxu1 %v10050_v46  ;;  %v7402_v36 = vld [vmem:[%s13575_s1 + $0x4f8] sm:$0xff] }
  0xd8   :  { %8749 = vmatprep.subr.bf16.mxu1 %v9784_v0 }
  0xda   :  { %1542 = vmatmul.mubr.f32.gmra.mrb[76].mxu1 %v7309_v37 }
  0xdb   :  { %7344 = vmatprep.mubr.msk.f32.mxu1 %vm129_vm0, %v7312_v39 }
  0xde   :  { %1547 = vmatmul.mubr.f32.gmra.mrb[78].mxu1 %v7311_v40  ;;  %v7401_v40 = vld [vmem:[%s13575_s1 + $0x4f0] sm:$0xff] }
  0xdf   :  { %7345 = vmatprep.mubr.msk.f32.mxu1 %vm129_vm0, %v7314_v42 }
  0xe2   :  { %1552 = vmatmul.mubr.f32.gmra.mrb[80].mxu1 %v7313_v43 }
  0xe3   :  { %7346 = vmatprep.mubr.msk.f32.mxu1 %vm129_vm0, %v7316_v44 }
  0xe6   :  { %1557 = vmatmul.mubr.f32.gmra.mrb[82].mxu1 %v7315_v45 }
  0xe7   :  { %7347 = vmatprep.mubr.msk.f32.mxu1 %vm129_vm0, %v7318_v47  ;;  %v7403_v47 = vld [vmem:[%s13575_s1 + $0x500] sm:$0xff] }
  0xea   :  { %1562 = vmatmul.mubr.f32.gmra.mrb[84].mxu1 %v7317_v48  ;;  %v7406_v48 = vld [vmem:[%s13575_s1 + $0x518] sm:$0xff] }
  0xeb   :  { %7348 = vmatprep.mubr.msk.f32.mxu1 %vm129_vm0, %v7320_v49 }
  0xee   :  { %1567 = vmatmul.mubr.f32.gmra.mrb[86].mxu1 %v7319_v50 }
  0xef   :  { %7349 = vmatprep.mubr.msk.f32.mxu1 %vm129_vm0, %v7322_v51 }
  0xf2   :  { %1572 = vmatmul.mubr.f32.gmra.mrb[88].mxu1 %v7321_v52 }
  0xf3   :  { %7350 = vmatprep.mubr.msk.f32.mxu1 %vm129_vm0, %v7324_v53  ;;  %v7405_v53 = vld [vmem:[%s13575_s1 + $0x510] sm:$0xff] }
  0xf6   :  { %1577 = vmatmul.mubr.f32.gmra.mrb[90].mxu1 %v7323_v54 }
  0xf7   :  { %7351 = vmatprep.mubr.msk.f32.mxu1 %vm129_vm0, %v7326_v55 }
  0xfa   :  { %1582 = vmatmul.mubr.f32.gmra.mrb[92].mxu1 %v7325_v56 }
  0xfb   :  { %7352 = vmatprep.mubr.msk.f32.mxu1 %vm129_vm0, %v7328_v58 }
  0xfe   :  { %1587 = vmatmul.mubr.f32.gmra.mrb[94].mxu1 %v7327_v59  ;;  %v7407_v59 = vld [vmem:[%s13575_s1 + $0x520] sm:$0xff] }
  0xff   :  { %7435 = vmatprep.mubr.msk.f32.mxu1 %vm129_vm0, %v7388_v61 }
 0x102   :  { %2122 = vmatmul.mubr.f32.vlgmr.msra.gmra.mrb[96].mxu1 %v7387_v62 }
 0x103   :  { %7436 = vmatprep.mubr.msk.f32.mxu1 %vm129_vm0, %v7390_v63  ;;  %8751 = vmatpush1.bf16.msra.mxu1 %v9886_v4  ;;  %v7393_v4 = vld [vmem:[%s13575_s1 + $0x4b0] sm:$0xff] }
 0x104   :  { %8752 = vmatprep.subr.bf16.mxu1 %v9784_v0 }
 0x106   :  { %2127 = vmatmul.mubr.f32.gmra.mrb[98].mxu1 %v7389_v1 }
 0x107   :  { %7437 = vmatprep.mubr.msk.f32.mxu1 %vm129_vm0, %v7392_v2  ;;  %8754 = vmatpush1.bf16.msra.mxu1 %v9892_v6  ;;  %v7395_v6 = vld [vmem:[%s13575_s1 + $0x4c0] sm:$0xff]  ;;  %v7409_v2 = vld [vmem:[%s13575_s1 + $0x530] sm:$0xff] }
 0x108   :  { %8755 = vmatprep.subr.bf16.mxu1 %v9784_v0 }
 0x10a   :  { %2132 = vmatmul.mubr.f32.gmra.mrb[100].mxu1 %v7391_v3 }
 0x10b   :  { %7438 = vmatprep.mubr.msk.f32.mxu1 %vm129_vm0, %v7394_v5  ;;  %8757 = vmatpush1.bf16.msra.mxu1 %v9904_v9  ;;  %v389_v9 = vld [vmem:[%s13576_s2 + $0x10] sm:$0xff] }
 0x10c   :  { %8758 = vmatprep.subr.bf16.mxu1 %v9784_v0  ;;  %v8637_v12 = vpack.c.bf16 %v389_v9, %v387_v8 }
 0x10e   :  { %2137 = vmatmul.mubr.f32.gmra.mrb[102].mxu1 %v7393_v4 }
 0x10f   :  { %7439 = vmatprep.mubr.msk.f32.mxu1 %vm129_vm0, %v7396_v7  ;;  %8760 = vmatpush1.bf16.msra.mxu1 %v9920_v13  ;;  %v394_v13 = vld [vmem:[%s13576_s2 + $0x38] sm:$0xf] }
 0x110   :  { %8761 = vmatprep.subr.bf16.mxu1 %v9784_v0  ;;  %v8639_v15 = vpack.c.bf16 %v394_v13, %v392_v11  ;;  %v7413_v13 = vld [vmem:[%s13575_s1 + $0x550] sm:$0xff] }
 0x112   :  { %2142 = vmatmul.mubr.f32.gmra.mrb[104].mxu1 %v7395_v6  ;;  %v7411_v6 = vld [vmem:[%s13575_s1 + $0x540] sm:$0xff] }
 0x113   :  { %7440 = vmatprep.mubr.msk.f32.mxu1 %vm129_vm0, %v7398_v10  ;;  %8763 = vmatpush1.bf16.msra.mxu1 %v9932_v16  ;;  %v7354_v16 = vld [vmem:[%s13576_s2 + $0x88] sm:$0xff] }
 0x114   :  { %8764 = vmatprep.subr.bf16.mxu1 %v9784_v0  ;;  %v8687_v31 = vpack.c.bf16 %v7356_v24, %v7354_v16 }
 0x115   :  { %v582_v20 = vpop.f32.mrb[0].mxu1  ;;  %v10713_v21 = vpop.f32.mrb[0].mxu0 }
 0x116   :  { %v584_v25 = vpop.f32.mrb[1].mxu1  ;;  %7231 = vmatmul.mubr.msk.f32.vlgmr.msra.gmra.mrb[48].mxu0 %vm710_vm4, %v582_v20  ;;  %v270_v27 = vpop.f32.mrb[1].mxu0  ;;  %2147 = vmatmul.mubr.f32.gmra.mrb[106].mxu1 %v7397_v14 }
 0x117   :  { %860 = vmatprep.mubr.f32.mxu0 %v9786_v57  ;;  %8638 = vmatpush1.bf16.msra.mxu0 %v8637_v12  ;;  %v7417_v25 = vld [vmem:[%s13575_s1 + $0x570] sm:$0xff] }
 0x118   :  { %8641 = vmatprep.subr.msk.bf16.mxu0 %vm10088_vm3, %v8639_v15  ;;  %7441 = vmatprep.mubr.msk.f32.mxu1 %vm129_vm0, %v7400_v23 }
 0x119   :  { %v587_v33 = vpop.f32.mrb[2].mxu1  ;;  %v10732_v34 = vpop.f32.mrb[2].mxu0  ;;  %8766 = vmatpush1.bf16.msra.mxu1 %v9944_v19  ;;  %v7404_v19 = vld [vmem:[%s13575_s1 + $0x508] sm:$0xff] }
 0x11a   :  { %v589_v37 = vpop.f32.mrb[3].mxu1  ;;  %7232 = vmatmul.mubr.msk.f32.gmra.mrb[50].mxu0 %vm710_vm4, %v587_v33  ;;  %v275_v39 = vpop.f32.mrb[3].mxu0  ;;  %2152 = vmatmul.mubr.f32.gmra.mrb[108].mxu1 %v7399_v30  ;;  %v7419_v33 = vld [vmem:[%s13575_s1 + $0x580] sm:$0xff] }
 0x11b   :  { %866 = vmatprep.mubr.f32.mxu0 %v9786_v57  ;;  %8644 = vmatpush1.bf16.msk.msra.mxu0 %vm10088_vm3, %v8642_v28 }
 0x11c   :  { %7442 = vmatprep.mubr.msk.f32.mxu1 %vm129_vm0, %v7402_v36  ;;  %8688 = vmatprep.subr.bf16.mxu0 %v8687_v31 }
 0x11d   :  { %v592_v42 = vpop.f32.mrb[4].mxu1  ;;  %v10749_v43 = vpop.f32.mrb[4].mxu0  ;;  %8767 = vmatprep.subr.bf16.mxu1 %v9784_v0 }
 0x11e   :  { %v594_v44 = vpop.f32.mrb[5].mxu1  ;;  %7233 = vmatmul.mubr.msk.f32.gmra.mrb[52].mxu0 %vm710_vm4, %v592_v42  ;;  %v280_v45 = vpop.f32.mrb[5].mxu0  ;;  %2157 = vmatmul.mubr.f32.gmra.mrb[110].mxu1 %v7401_v40  ;;  %v7424_v42 = vld [vmem:[%s13575_s1 + $0x5a8] sm:$0xff] }
 0x11f   :  { %872 = vmatprep.mubr.f32.mxu0 %v9786_v57  ;;  %7443 = vmatprep.mubr.msk.f32.mxu1 %vm129_vm0, %v7404_v19  ;;  %v7421_v19 = vld [vmem:[%s13575_s1 + $0x590] sm:$0xff] }
 0x120   :  { %8769 = vmatpush1.bf16.msra.mxu1 %v9956_v22  ;;  %v7408_v22 = vld [vmem:[%s13575_s1 + $0x528] sm:$0xff] }
 0x121   :  { %v597_v49 = vpop.f32.mrb[6].mxu1  ;;  %v10762_v50 = vpop.f32.mrb[6].mxu0  ;;  %8770 = vmatprep.subr.bf16.mxu1 %v9784_v0 }
 0x122   :  { %v599_v51 = vpop.f32.mrb[7].mxu1  ;;  %7234 = vmatmul.mubr.msk.f32.gmra.mrb[54].mxu0 %vm710_vm4, %v597_v49  ;;  %v285_v52 = vpop.f32.mrb[7].mxu0  ;;  %2162 = vmatmul.mubr.f32.gmra.mrb[112].mxu1 %v7403_v47  ;;  %v7423_v49 = vld [vmem:[%s13575_s1 + $0x5a0] sm:$0xff] }
 0x123   :  { %878 = vmatprep.mubr.f32.mxu0 %v9786_v57  ;;  %7444 = vmatprep.mubr.msk.f32.mxu1 %vm129_vm0, %v7406_v48  ;;  %v7426_v51 = vld [vmem:[%s13575_s1 + $0x5b8] sm:$0xff] }
 0x124   :  { %8772 = vmatpush1.bf16.msra.mxu1 %v9972_v26  ;;  %v7410_v26 = vld [vmem:[%s13575_s1 + $0x538] sm:$0xff] }
 0x125   :  { %v602_v54 = vpop.f32.mrb[8].mxu1  ;;  %v10775_v55 = vpop.f32.mrb[8].mxu0  ;;  %8773 = vmatprep.subr.bf16.mxu1 %v9784_v0 }
 0x126   :  { %v604_v56 = vpop.f32.mrb[9].mxu1  ;;  %7235 = vmatmul.mubr.msk.f32.gmra.mrb[56].mxu0 %vm710_vm4, %v602_v54  ;;  %v290_v58 = vpop.f32.mrb[9].mxu0  ;;  %2167 = vmatmul.mubr.f32.gmra.mrb[114].mxu1 %v7405_v53 }
 0x127   :  { %884 = vmatprep.mubr.f32.mxu0 %v9786_v57  ;;  %7445 = vmatprep.mubr.msk.f32.mxu1 %vm129_vm0, %v7408_v22  ;;  %v7425_v56 = vld [vmem:[%s13575_s1 + $0x5b0] sm:$0xff]  ;;  %v7428_v58 = vld [vmem:[%s13575_s1 + $0x5c8] sm:$0xff] }
 0x128   :  { %8775 = vmatpush1.bf16.msra.mxu1 %v9984_v29  ;;  %v7412_v29 = vld [vmem:[%s13575_s1 + $0x548] sm:$0xff] }
 0x129   :  { %v607_v61 = vpop.f32.mrb[10].mxu1  ;;  %v10788_v62 = vpop.f32.mrb[10].mxu0  ;;  %8776 = vmatprep.subr.bf16.mxu1 %v9784_v0 }
 0x12a   :  { %v609_v63 = vpop.f32.mrb[11].mxu1  ;;  %7236 = vmatmul.mubr.msk.f32.gmra.mrb[58].mxu0 %vm710_vm4, %v607_v61  ;;  %v295_v1 = vpop.f32.mrb[11].mxu0  ;;  %2172 = vmatmul.mubr.f32.gmra.mrb[116].mxu1 %v7407_v59 }
 0x12b   :  { %890 = vmatprep.mubr.f32.mxu0 %v9786_v57  ;;  %7446 = vmatprep.mubr.msk.f32.mxu1 %vm129_vm0, %v7410_v26  ;;  %v7427_v1 = vld [vmem:[%s13575_s1 + $0x5c0] sm:$0xff] }
 0x12c   :  { %8778 = vmatpush1.bf16.msra.mxu1 %v9996_v32  ;;  %v7414_v32 = vld [vmem:[%s13575_s1 + $0x558] sm:$0xff] }
 0x12d   :  { %v612_v3 = vpop.f32.mrb[12].mxu1  ;;  %v10801_v5 = vpop.f32.mrb[12].mxu0  ;;  %8779 = vmatprep.subr.bf16.mxu1 %v9784_v0 }
 0x12e   :  { %v614_v4 = vpop.f32.mrb[13].mxu1  ;;  %7237 = vmatmul.mubr.msk.f32.gmra.mrb[60].mxu0 %vm710_vm4, %v612_v3  ;;  %v300_v7 = vpop.f32.mrb[13].mxu0  ;;  %2177 = vmatmul.mubr.f32.gmra.mrb[118].mxu1 %v7409_v2  ;;  %v7430_v2 = vld [vmem:[%s13575_s1 + $0x5d8] sm:$0xff] }
 0x12f   :  { %896 = vmatprep.mubr.f32.mxu0 %v9786_v57  ;;  %7447 = vmatprep.mubr.msk.f32.mxu1 %vm129_vm0, %v7412_v29 }
 0x130   :  { %8781 = vmatpush1.bf16.msra.mxu1 %v10008_v35  ;;  %v7416_v35 = vld [vmem:[%s13575_s1 + $0x568] sm:$0xff] }
 0x131   :  { %v617_v8 = vpop.f32.mrb[14].mxu1  ;;  %v10814_v9 = vpop.f32.mrb[14].mxu0  ;;  %8782 = vmatprep.subr.bf16.mxu1 %v9784_v0 }
 0x132   :  { %v619_v10 = vpop.f32.mrb[15].mxu1  ;;  %7238 = vmatmul.mubr.msk.f32.gmra.mrb[62].mxu0 %vm710_vm4, %v617_v8  ;;  %v305_v11 = vpop.f32.mrb[15].mxu0  ;;  %2182 = vmatmul.mubr.f32.gmra.mrb[120].mxu1 %v7411_v6  ;;  %v7429_v6 = vld [vmem:[%s13575_s1 + $0x5d0] sm:$0xff] }
 0x133   :  { %902 = vmatprep.mubr.f32.mxu0 %v9786_v57  ;;  %7448 = vmatprep.mubr.msk.f32.mxu1 %vm129_vm0, %v7414_v32  ;;  %v7432_v32 = vld [vmem:[%s13575_s1 + $0x5e8] sm:$0xff] }
 0x134   :  { %8784 = vmatpush1.bf16.msra.mxu1 %v10020_v38  ;;  %v7418_v38 = vld [vmem:[%s13575_s1 + $0x578] sm:$0xff] }
 0x135   :  { %v622_v12 = vpop.f32.mrb[16].mxu1  ;;  %v10827_v14 = vpop.f32.mrb[16].mxu0  ;;  %8785 = vmatprep.subr.bf16.mxu1 %v9784_v0 }
 0x136   :  { %v624_v15 = vpop.f32.mrb[17].mxu1  ;;  %7239 = vmatmul.mubr.msk.f32.gmra.mrb[64].mxu0 %vm710_vm4, %v622_v12  ;;  %v310_v17 = vpop.f32.mrb[17].mxu0  ;;  %2187 = vmatmul.mubr.f32.gmra.mrb[122].mxu1 %v7413_v13  ;;  %v7434_v12 = vld [vmem:[%s13575_s1 + $0x5f8] sm:$0xff] }
 0x137   :  { %908 = vmatprep.mubr.f32.mxu0 %v9786_v57  ;;  %7449 = vmatprep.mubr.msk.f32.mxu1 %vm129_vm0, %v7416_v35  ;;  %v7431_v35 = vld [vmem:[%s13575_s1 + $0x5e0] sm:$0xff] }
 0x138   :  { %8787 = vmatpush1.bf16.msra.mxu1 %v10032_v41  ;;  %v7420_v41 = vld [vmem:[%s13575_s1 + $0x588] sm:$0xff] }
 0x139   :  { %v627_v20 = vpop.f32.mrb[18].mxu1  ;;  %v10840_v23 = vpop.f32.mrb[18].mxu0  ;;  %8788 = vmatprep.subr.bf16.mxu1 %v9784_v0 }
 0x13a   :  { %v629_v16 = vpop.f32.mrb[19].mxu1  ;;  %7240 = vmatmul.mubr.msk.f32.gmra.mrb[66].mxu0 %vm710_vm4, %v627_v20  ;;  %v315_v24 = vpop.f32.mrb[19].mxu0  ;;  %2192 = vmatmul.mubr.f32.gmra.mrb[124].mxu1 %v7415_v18  ;;  %v7433_v20 = vld [vmem:[%s13575_s1 + $0x5f0] sm:$0xff] }
 0x13b   :  { %914 = vmatprep.mubr.f32.mxu0 %v9786_v57  ;;  %7450 = vmatprep.mubr.msk.f32.mxu1 %vm129_vm0, %v7418_v38  ;;  %v7494_v16 = vld [vmem:[%s13575_s1 + $0x608] sm:$0xff] }
 0x13c   :  { %8790 = vmatpush1.bf16.msra.mxu1 %v10050_v46  ;;  %v7422_v46 = vld [vmem:[%s13575_s1 + $0x598] sm:$0xff] }
 0x13d   :  { %v632_v27 = vpop.f32.mrb[20].mxu1  ;;  %v10853_v28 = vpop.f32.mrb[20].mxu0 }
 0x13e   :  { %v634_v30 = vpop.f32.mrb[21].mxu1  ;;  %7241 = vmatmul.mubr.msk.f32.gmra.mrb[68].mxu0 %vm710_vm4, %v632_v27  ;;  %v320_v31 = vpop.f32.mrb[21].mxu0  ;;  %2197 = vmatmul.mubr.f32.gmra.mrb[126].mxu1 %v7417_v25 }
 0x13f   :  { %920 = vmatprep.mubr.f32.mxu0 %v9786_v57  ;;  %7451 = vmatprep.mubr.msk.f32.mxu1 %vm129_vm0, %v7420_v41  ;;  %v7493_v30 = vld [vmem:[%s13575_s1 + $0x600] sm:$0xff]  ;;  %v7496_v31 = vld [vmem:[%s13575_s1 + $0x618] sm:$0xff] }
 0x141   :  { %v637_v36 = vpop.f32.mrb[22].mxu1  ;;  %v10864_v37 = vpop.f32.mrb[22].mxu0 }
 0x142   :  { %v639_v39 = vpop.f32.mrb[23].mxu1  ;;  %7242 = vmatmul.mubr.msk.f32.gmra.mrb[70].mxu0 %vm710_vm4, %v637_v36  ;;  %v325_v40 = vpop.f32.mrb[23].mxu0  ;;  %2202 = vmatmul.mubr.f32.gmra.mrb[128].mxu1 %v7419_v33 }
 0x143   :  { %926 = vmatprep.mubr.f32.mxu0 %v9786_v57  ;;  %7452 = vmatprep.mubr.msk.f32.mxu1 %vm129_vm0, %v7422_v46  ;;  %v7495_v40 = vld [vmem:[%s13575_s1 + $0x610] sm:$0xff] }
 0x145   :  { %v642_v44 = vpop.f32.mrb[24].mxu1  ;;  %v10875_v45 = vpop.f32.mrb[24].mxu0 }
 0x146   :  { %v644_v47 = vpop.f32.mrb[25].mxu1  ;;  %7243 = vmatmul.mubr.msk.f32.gmra.mrb[72].mxu0 %vm710_vm4, %v642_v44  ;;  %v330_v48 = vpop.f32.mrb[25].mxu0  ;;  %2207 = vmatmul.mubr.f32.gmra.mrb[130].mxu1 %v7421_v19  ;;  %v7498_v19 = vld [vmem:[%s13575_s1 + $0x628] sm:$0xff] }
 0x147   :  { %932 = vmatprep.mubr.f32.mxu0 %v9786_v57  ;;  %7453 = vmatprep.mubr.msk.f32.mxu1 %vm129_vm0, %v7424_v42 }
 0x149   :  { %v647_v52 = vpop.f32.mrb[26].mxu1  ;;  %v10886_v53 = vpop.f32.mrb[26].mxu0 }
 0x14a   :  { %v649_v22 = vpop.f32.mrb[27].mxu1  ;;  %7244 = vmatmul.mubr.msk.f32.gmra.mrb[74].mxu0 %vm710_vm4, %v647_v52  ;;  %v335_v54 = vpop.f32.mrb[27].mxu0  ;;  %2212 = vmatmul.mubr.f32.gmra.mrb[132].mxu1 %v7423_v49  ;;  %v7497_v49 = vld [vmem:[%s13575_s1 + $0x620] sm:$0xff] }
 0x14b   :  { %938 = vmatprep.mubr.f32.mxu0 %v9786_v57  ;;  %7454 = vmatprep.mubr.msk.f32.mxu1 %vm129_vm0, %v7426_v51  ;;  %v7500_v51 = vld [vmem:[%s13575_s1 + $0x638] sm:$0xff] }
 0x14d   :  { %v652_v59 = vpop.f32.mrb[28].mxu1  ;;  %v10897_v26 = vpop.f32.mrb[28].mxu0 }
 0x14e   :  { %v654_v61 = vpop.f32.mrb[29].mxu1  ;;  %7245 = vmatmul.mubr.msk.f32.gmra.mrb[76].mxu0 %vm710_vm4, %v652_v59  ;;  %v340_v63 = vpop.f32.mrb[29].mxu0  ;;  %2217 = vmatmul.mubr.f32.gmra.mrb[134].mxu1 %v7425_v56  ;;  %v7502_v59 = vld [vmem:[%s13575_s1 + $0x648] sm:$0xff] }
 0x14f   :  { %944 = vmatprep.mubr.f32.mxu0 %v9786_v57  ;;  %7455 = vmatprep.mubr.msk.f32.mxu1 %vm129_vm0, %v7428_v58  ;;  %v7499_v58 = vld [vmem:[%s13575_s1 + $0x630] sm:$0xff] }
 0x151   :  { %v657_v29 = vpop.f32.mrb[30].mxu1  ;;  %v10908_v3 = vpop.f32.mrb[30].mxu0 }
 0x152   :  { %v659_v4 = vpop.f32.mrb[31].mxu1  ;;  %7246 = vmatmul.mubr.msk.f32.gmra.mrb[78].mxu0 %vm710_vm4, %v657_v29  ;;  %v345_v7 = vpop.f32.mrb[31].mxu0  ;;  %2222 = vmatmul.mubr.f32.gmra.mrb[136].mxu1 %v7427_v1  ;;  %v7501_v29 = vld [vmem:[%s13575_s1 + $0x640] sm:$0xff] }
 0x153   :  { %950 = vmatprep.mubr.f32.mxu0 %v9786_v57  ;;  %7456 = vmatprep.mubr.msk.f32.mxu1 %vm129_vm0, %v7430_v2  ;;  %v7353_v4 = vld [vmem:[%s13576_s2 + $0x80] sm:$0xff]  ;;  %v7355_v7 = vld [vmem:[%s13576_s2 + $0x90] sm:$0xff] }
 0x155   :  { %v662_v8 = vpop.f32.mrb[32].mxu1  ;;  %v10919_v10 = vpop.f32.mrb[32].mxu0 }
 0x156   :  { %v664_v11 = vpop.f32.mrb[33].mxu1  ;;  %7247 = vmatmul.mubr.msk.f32.gmra.mrb[80].mxu0 %vm710_vm4, %v662_v8  ;;  %v350_v13 = vpop.f32.mrb[33].mxu0  ;;  %2227 = vmatmul.mubr.f32.gmra.mrb[138].mxu1 %v7429_v6  ;;  %v7504_v6 = vld [vmem:[%s13575_s1 + $0x658] sm:$0xff]  ;;  %v7358_v8 = vld [vmem:[%s13576_s2 + $0xa8] sm:$0xff] }
 0x157   :  { %956 = vmatprep.mubr.f32.mxu0 %v9786_v57  ;;  %7457 = vmatprep.mubr.msk.f32.mxu1 %vm129_vm0, %v7432_v32  ;;  %v7360_v11 = vld [vmem:[%s13576_s2 + $0xb8] sm:$0xf] }
 0x159   :  { %v667_v15 = vpop.f32.mrb[34].mxu1  ;;  %v10930_v17 = vpop.f32.mrb[34].mxu0 }
 0x15a   :  { %v669_v18 = vpop.f32.mrb[35].mxu1  ;;  %7248 = vmatmul.mubr.msk.f32.gmra.mrb[82].mxu0 %vm710_vm4, %v667_v15  ;;  %v355_v38 = vpop.f32.mrb[35].mxu0  ;;  %2232 = vmatmul.mubr.f32.gmra.mrb[140].mxu1 %v7431_v35  ;;  %v8689_v15 = vpack.c.bf16 %v7355_v7, %v7353_v4  ;;  %v7517_v7 = vld [vmem:[%s13575_s1 + $0x6c0] sm:$0xff] }
 0x15b   :  { %962 = vmatprep.mubr.f32.mxu0 %v9786_v57  ;;  %7458 = vmatprep.mubr.msk.f32.mxu1 %vm129_vm0, %v7434_v12  ;;  %v7503_v18 = vld [vmem:[%s13575_s1 + $0x650] sm:$0xff]  ;;  %v8691_v38 = vpack.c.bf16 %v7360_v11, %v7358_v8  ;;  %v7522_v11 = vld [vmem:[%s13575_s1 + $0x6e8] sm:$0xff] }
 0x15c   :  { %v7519_v8 = vld [vmem:[%s13575_s1 + $0x6d0] sm:$0xff] }
 0x15d   :  { %v672_v24 = vpop.f32.mrb[36].mxu1  ;;  %v10941_v25 = vpop.f32.mrb[36].mxu0 }
 0x15e   :  { %v674_v41 = vpop.f32.mrb[37].mxu1  ;;  %7249 = vmatmul.mubr.msk.f32.gmra.mrb[84].mxu0 %vm710_vm4, %v672_v24  ;;  %v360_v27 = vpop.f32.mrb[37].mxu0  ;;  %2237 = vmatmul.mubr.f32.gmra.mrb[142].mxu1 %v7433_v20  ;;  %v7357_v20 = vld [vmem:[%s13576_s2 + $0xa0] sm:$0xff] }
 0x15f   :  { %968 = vmatprep.mubr.f32.mxu0 %v9786_v57  ;;  %7541 = vmatprep.mubr.msk.f32.mxu1 %vm129_vm0, %v7494_v16  ;;  %v7359_v16 = vld [vmem:[%s13576_s2 + $0xb0] sm:$0xf]  ;;  %v7506_v41 = vld [vmem:[%s13575_s1 + $0x668] sm:$0xff] }
 0x160   :  { %v7460_v27 = vld [vmem:[%s13576_s2 + $0xc8] sm:$0xff] }
 0x161   :  { %v677_v33 = vpop.f32.mrb[38].mxu1  ;;  %v10952_v46 = vpop.f32.mrb[38].mxu0 }
 0x162   :  { %v679_v36 = vpop.f32.mrb[39].mxu1  ;;  %7250 = vmatmul.mubr.msk.f32.gmra.mrb[86].mxu0 %vm710_vm4, %v677_v33  ;;  %v365_v39 = vpop.f32.mrb[39].mxu0  ;;  %2772 = vmatmul.mubr.f32.vlgmr.msra.gmra.mrb[144].mxu1 %v7493_v30  ;;  %v7462_v30 = vld [vmem:[%s13576_s2 + $0xd8] sm:$0xff]  ;;  %v8694_v33 = vpack.c.bf16 %v7359_v16, %v7357_v20  ;;  %v7526_v20 = vld [vmem:[%s13575_s1 + $0x708] sm:$0xff] }
 0x163   :  { %974 = vmatprep.mubr.f32.mxu0 %v9786_v57  ;;  %7542 = vmatprep.mubr.msk.f32.mxu1 %vm129_vm0, %v7496_v31  ;;  %v7505_v36 = vld [vmem:[%s13575_s1 + $0x660] sm:$0xff]  ;;  %v8739_v39 = vpack.c.bf16 %v7462_v30, %v7460_v27  ;;  %v7528_v27 = vld [vmem:[%s13575_s1 + $0x718] sm:$0xff] }
 0x165   :  { %v682_v42 = vpop.f32.mrb[40].mxu1  ;;  %v10963_v44 = vpop.f32.mrb[40].mxu0 }
 0x166   :  { %v684_v47 = vpop.f32.mrb[41].mxu1  ;;  %7251 = vmatmul.mubr.msk.f32.gmra.mrb[88].mxu0 %vm710_vm4, %v682_v42  ;;  %v370_v48 = vpop.f32.mrb[41].mxu0  ;;  %2777 = vmatmul.mubr.f32.gmra.mrb[146].mxu1 %v7495_v40  ;;  %v7507_v42 = vld [vmem:[%s13575_s1 + $0x670] sm:$0xff] }
 0x167   :  { %980 = vmatprep.mubr.f32.mxu0 %v9786_v57  ;;  %7543 = vmatprep.mubr.msk.f32.mxu1 %vm129_vm0, %v7498_v19  ;;  %v7510_v47 = vld [vmem:[%s13575_s1 + $0x688] sm:$0xff] }
 0x169   :  { %v687_v52 = vpop.f32.mrb[42].mxu1  ;;  %v10974_v22 = vpop.f32.mrb[42].mxu0 }
 0x16a   :  { %v689_v54 = vpop.f32.mrb[43].mxu1  ;;  %7252 = vmatmul.mubr.msk.f32.gmra.mrb[90].mxu0 %vm710_vm4, %v687_v52  ;;  %v375_v56 = vpop.f32.mrb[43].mxu0  ;;  %2782 = vmatmul.mubr.f32.gmra.mrb[148].mxu1 %v7497_v49  ;;  %v7509_v49 = vld [vmem:[%s13575_s1 + $0x680] sm:$0xff] }
 0x16b   :  { %986 = vmatprep.mubr.f32.mxu0 %v9786_v57  ;;  %7544 = vmatprep.mubr.msk.f32.mxu1 %vm129_vm0, %v7500_v51  ;;  %v7512_v51 = vld [vmem:[%s13575_s1 + $0x698] sm:$0xff]  ;;  %v7511_v54 = vld [vmem:[%s13575_s1 + $0x690] sm:$0xff]  ;;  %v7514_v56 = vld [vmem:[%s13575_s1 + $0x6a8] sm:$0xff] }
 0x16d   :  { %v692_v61 = vpop.f32.mrb[44].mxu1  ;;  %v10985_v63 = vpop.f32.mrb[44].mxu0 }
 0x16e   :  { %v694_v1 = vpop.f32.mrb[45].mxu1  ;;  %7253 = vmatmul.mubr.msk.f32.gmra.mrb[92].mxu0 %vm710_vm4, %v692_v61  ;;  %v380_v2 = vpop.f32.mrb[45].mxu0  ;;  %2787 = vmatmul.mubr.f32.gmra.mrb[150].mxu1 %v7499_v58  ;;  %v7516_v61 = vld [vmem:[%s13575_s1 + $0x6b8] sm:$0xff] }
 0x16f   :  { %992 = vmatprep.mubr.f32.mxu0 %v9786_v57  ;;  %7545 = vmatprep.mubr.msk.f32.mxu1 %vm129_vm0, %v7502_v59  ;;  %v7513_v59 = vld [vmem:[%s13575_s1 + $0x6a0] sm:$0xff]  ;;  %v7515_v2 = vld [vmem:[%s13575_s1 + $0x6b0] sm:$0xff] }
 0x171   :  { %v697_v32 = vpop.f32.mrb[46].mxu1  ;;  %v11008_v13 = vpop.f32.mrb[46].mxu0 }
 0x172   :  { %v699_v35 = vpop.f32.mrb[47].mxu1  ;;  %7254 = vmatmul.mubr.msk.f32.gmra.mrb[94].mxu0 %vm710_vm4, %v697_v32  ;;  %v385_v12 = vpop.f32.mrb[47].mxu0  ;;  %2792 = vmatmul.mubr.f32.gmra.mrb[152].mxu1 %v7501_v29  ;;  %v7518_v29 = vld [vmem:[%s13575_s1 + $0x6c8] sm:$0xff] }
 0x173   :  { %1141 = vmatprep.mubr.f32.mxu0 %v9786_v57  ;;  %7546 = vmatprep.mubr.msk.f32.mxu1 %vm129_vm0, %v7504_v6  ;;  %v7520_v6 = vld [vmem:[%s13575_s1 + $0x6d8] sm:$0xff]  ;;  %v7521_v12 = vld [vmem:[%s13575_s1 + $0x6e0] sm:$0xff] }
 0x175   :  { %v11022_v24 = vpop.f32.mrb[48].mxu1 }
 0x176   :  { %7257 = vmatmul.mubr.msk.f32.vlgmr.msra.gmra.mrb[48].mxu0 %vm710_vm4, %v10713_v21  ;;  %v1475_v31 = vpop.f32.mrb[49].mxu1  ;;  %2797 = vmatmul.mubr.f32.gmra.mrb[154].mxu1 %v7503_v18  ;;  %v7508_v21 = vld [vmem:[%s13575_s1 + $0x678] sm:$0xff] }
 0x177   :  { %1147 = vmatprep.mubr.f32.mxu0 %v9786_v57  ;;  %8690 = vmatpush1.bf16.msra.mxu0 %v8689_v15  ;;  %v7524_v15 = vld [vmem:[%s13575_s1 + $0x6f8] sm:$0xff]  ;;  %v7527_v31 = vld [vmem:[%s13575_s1 + $0x710] sm:$0xff] }
 0x178   :  { %8693 = vmatprep.subr.msk.bf16.mxu0 %vm10088_vm3, %v8691_v38  ;;  %7547 = vmatprep.mubr.msk.f32.mxu1 %vm129_vm0, %v7506_v41  ;;  %v7523_v38 = vld [vmem:[%s13575_s1 + $0x6f0] sm:$0xff]  ;;  %v7525_v41 = vld [vmem:[%s13575_s1 + $0x700] sm:$0xff] }
 0x179   :  { %v11042_v40 = vpop.f32.mrb[50].mxu1 }
 0x17a   :  { %7258 = vmatmul.mubr.msk.f32.gmra.mrb[50].mxu0 %vm710_vm4, %v10732_v34  ;;  %v1480_v19 = vpop.f32.mrb[51].mxu1  ;;  %2802 = vmatmul.mubr.f32.gmra.mrb[156].mxu1 %v7505_v36 }
 0x17b   :  { %1153 = vmatprep.mubr.f32.mxu0 %v9786_v57  ;;  %8696 = vmatpush1.bf16.msk.msra.mxu0 %vm10088_vm3, %v8694_v33  ;;  %v7530_v33 = vld [vmem:[%s13575_s1 + $0x728] sm:$0xff] }
 0x17c   :  { %7548 = vmatprep.mubr.msk.f32.mxu1 %vm129_vm0, %v7508_v21  ;;  %8740 = vmatprep.subr.bf16.mxu0 %v8739_v39  ;;  %v7529_v39 = vld [vmem:[%s13575_s1 + $0x720] sm:$0xff]  ;;  %v7532_v21 = vld [vmem:[%s13575_s1 + $0x738] sm:$0xff] }
 0x17d   :  { %v11059_v48 = vpop.f32.mrb[52].mxu1 }
 0x17e   :  { %7259 = vmatmul.mubr.msk.f32.gmra.mrb[52].mxu0 %vm710_vm4, %v10749_v43  ;;  %v1485_v34 = vpop.f32.mrb[53].mxu1  ;;  %2807 = vmatmul.mubr.f32.gmra.mrb[158].mxu1 %v7507_v42  ;;  %v7531_v42 = vld [vmem:[%s13575_s1 + $0x730] sm:$0xff] }
 0x17f   :  { %1159 = vmatprep.mubr.f32.mxu0 %v9786_v57  ;;  %7549 = vmatprep.mubr.msk.f32.mxu1 %vm129_vm0, %v7510_v47  ;;  %v7534_v47 = vld [vmem:[%s13575_s1 + $0x748] sm:$0xff] }
 0x181   :  { %v11071_v52 = vpop.f32.mrb[54].mxu1 }
 0x182   :  { %7260 = vmatmul.mubr.msk.f32.gmra.mrb[54].mxu0 %vm710_vm4, %v10762_v50  ;;  %v1490_v43 = vpop.f32.mrb[55].mxu1  ;;  %2812 = vmatmul.mubr.f32.gmra.mrb[160].mxu1 %v7509_v49  ;;  %v7533_v49 = vld [vmem:[%s13575_s1 + $0x740] sm:$0xff] }
 0x183   :  { %1165 = vmatprep.mubr.f32.mxu0 %v9786_v57  ;;  %7550 = vmatprep.mubr.msk.f32.mxu1 %vm129_vm0, %v7512_v51  ;;  %v7536_v51 = vld [vmem:[%s13575_s1 + $0x758] sm:$0xff] }
 0x185   :  { %v11083_v58 = vpop.f32.mrb[56].mxu1 }
 0x186   :  { %7261 = vmatmul.mubr.msk.f32.gmra.mrb[56].mxu0 %vm710_vm4, %v10775_v55  ;;  %v1495_v50 = vpop.f32.mrb[57].mxu1  ;;  %2817 = vmatmul.mubr.f32.gmra.mrb[162].mxu1 %v7511_v54  ;;  %v7535_v54 = vld [vmem:[%s13575_s1 + $0x750] sm:$0xff] }
 0x187   :  { %1171 = vmatprep.mubr.f32.mxu0 %v9786_v57  ;;  %7551 = vmatprep.mubr.msk.f32.mxu1 %vm129_vm0, %v7514_v56  ;;  %v7538_v56 = vld [vmem:[%s13575_s1 + $0x768] sm:$0xff] }
 0x189   :  { %v11095_v1 = vpop.f32.mrb[58].mxu1 }
 0x18a   :  { %7262 = vmatmul.mubr.msk.f32.gmra.mrb[58].mxu0 %vm710_vm4, %v10788_v62  ;;  %v1500_v55 = vpop.f32.mrb[59].mxu1  ;;  %2822 = vmatmul.mubr.f32.gmra.mrb[164].mxu1 %v7513_v59  ;;  %v7537_v59 = vld [vmem:[%s13575_s1 + $0x760] sm:$0xff] }
 0x18b   :  { %1177 = vmatprep.mubr.f32.mxu0 %v9786_v57  ;;  %7552 = vmatprep.mubr.msk.f32.mxu1 %vm129_vm0, %v7516_v61  ;;  %v7540_v61 = vld [vmem:[%s13575_s1 + $0x778] sm:$0xff] }
 0x18d   :  { %v11107_v4 = vpop.f32.mrb[60].mxu1 }
 0x18e   :  { %7263 = vmatmul.mubr.msk.f32.gmra.mrb[60].mxu0 %vm710_vm4, %v10801_v5  ;;  %v1505_v62 = vpop.f32.mrb[61].mxu1  ;;  %2827 = vmatmul.mubr.f32.gmra.mrb[166].mxu1 %v7515_v2  ;;  %v7539_v2 = vld [vmem:[%s13575_s1 + $0x770] sm:$0xff] }
 0x18f   :  { %1183 = vmatprep.mubr.f32.mxu0 %v9786_v57  ;;  %7553 = vmatprep.mubr.msk.f32.mxu1 %vm129_vm0, %v7518_v29 }
 0x191   :  { %v11119_v32 = vpop.f32.mrb[62].mxu1 }
 0x192   :  { %7264 = vmatmul.mubr.msk.f32.gmra.mrb[62].mxu0 %vm710_vm4, %v10814_v9  ;;  %v1510_v5 = vpop.f32.mrb[63].mxu1  ;;  %2832 = vmatmul.mubr.f32.gmra.mrb[168].mxu1 %v7517_v7 }
 0x193   :  { %1189 = vmatprep.mubr.f32.mxu0 %v9786_v57  ;;  %7554 = vmatprep.mubr.msk.f32.mxu1 %vm129_vm0, %v7520_v6 }
 0x195   :  { %v11131_v35 = vpop.f32.mrb[64].mxu1 }
 0x196   :  { %7265 = vmatmul.mubr.msk.f32.gmra.mrb[64].mxu0 %vm710_vm4, %v10827_v14  ;;  %v1515_v9 = vpop.f32.mrb[65].mxu1  ;;  %2837 = vmatmul.mubr.f32.gmra.mrb[170].mxu1 %v7519_v8 }
 0x197   :  { %1195 = vmatprep.mubr.f32.mxu0 %v9786_v57  ;;  %7555 = vmatprep.mubr.msk.f32.mxu1 %vm129_vm0, %v7522_v11  ;;  %v7461_v9 = vld [vmem:[%s13576_s2 + $0xd0] sm:$0xff] }
 0x199   :  { %v11143_v18 = vpop.f32.mrb[66].mxu1 }
 0x19a   :  { %7266 = vmatmul.mubr.msk.f32.gmra.mrb[66].mxu0 %vm710_vm4, %v10840_v23  ;;  %v1520_v14 = vpop.f32.mrb[67].mxu1  ;;  %2842 = vmatmul.mubr.f32.gmra.mrb[172].mxu1 %v7521_v12  ;;  %v7466_v12 = vld [vmem:[%s13576_s2 + $0xf8] sm:$0xf] }
 0x19b   :  { %1201 = vmatprep.mubr.f32.mxu0 %v9786_v57  ;;  %7556 = vmatprep.mubr.msk.f32.mxu1 %vm129_vm0, %v7524_v15 }
 0x19d   :  { %v11155_v16 = vpop.f32.mrb[68].mxu1 }
 0x19e   :  { %7267 = vmatmul.mubr.msk.f32.gmra.mrb[68].mxu0 %vm710_vm4, %v10853_v28  ;;  %v1525_v23 = vpop.f32.mrb[69].mxu1  ;;  %2847 = vmatmul.mubr.f32.gmra.mrb[174].mxu1 %v7523_v38 }
 0x19f   :  { %1207 = vmatprep.mubr.f32.mxu0 %v9786_v57  ;;  %7557 = vmatprep.mubr.msk.f32.mxu1 %vm129_vm0, %v7526_v20  ;;  %v7463_v20 = vld [vmem:[%s13576_s2 + $0xe0] sm:$0xff]  ;;  %v7465_v23 = vld [vmem:[%s13576_s2 + $0xf0] sm:$0xf] }
 0x1a1   :  { %v11167_v30 = vpop.f32.mrb[70].mxu1 }
 0x1a2   :  { %7268 = vmatmul.mubr.msk.f32.gmra.mrb[70].mxu0 %vm710_vm4, %v10864_v37  ;;  %v1530_v28 = vpop.f32.mrb[71].mxu1  ;;  %2852 = vmatmul.mubr.f32.gmra.mrb[176].mxu1 %v7525_v41 }
 0x1a3   :  { %1213 = vmatprep.mubr.f32.mxu0 %v9786_v57  ;;  %7558 = vmatprep.mubr.msk.f32.mxu1 %vm129_vm0, %v7528_v27  ;;  %v7566_v27 = vld [vmem:[%s13576_s2 + $0x108] sm:$0xff] }
 0x1a5   :  { %v11179_v36 = vpop.f32.mrb[72].mxu1 }
 0x1a6   :  { %7269 = vmatmul.mubr.msk.f32.gmra.mrb[72].mxu0 %vm710_vm4, %v10875_v45  ;;  %v1535_v37 = vpop.f32.mrb[73].mxu1  ;;  %2857 = vmatmul.mubr.f32.gmra.mrb[178].mxu1 %v7527_v31  ;;  %v8746_v31 = vpack.c.bf16 %v7465_v23, %v7463_v20  ;;  %v7569_v20 = vld [vmem:[%s13576_s2 + $0x120] sm:$0xff]  ;;  %v7571_v23 = vld [vmem:[%s13576_s2 + $0x130] sm:$0xf] }
 0x1a7   :  { %1219 = vmatprep.mubr.f32.mxu0 %v9786_v57  ;;  %7559 = vmatprep.mubr.msk.f32.mxu1 %vm129_vm0, %v7530_v33 }
 0x1a9   :  { %v11191_v19 = vpop.f32.mrb[74].mxu1 }
 0x1aa   :  { %7270 = vmatmul.mubr.msk.f32.gmra.mrb[74].mxu0 %vm710_vm4, %v10886_v53  ;;  %v1540_v45 = vpop.f32.mrb[75].mxu1  ;;  %2862 = vmatmul.mubr.f32.gmra.mrb[180].mxu1 %v7529_v39 }
 0x1ab   :  { %1225 = vmatprep.mubr.f32.mxu0 %v9786_v57  ;;  %7560 = vmatprep.mubr.msk.f32.mxu1 %vm129_vm0, %v7532_v21 }
 0x1ad   :  { %v11203_v34 = vpop.f32.mrb[76].mxu1 }
 0x1ae   :  { %7271 = vmatmul.mubr.msk.f32.gmra.mrb[76].mxu0 %vm710_vm4, %v10897_v26  ;;  %v1545_v53 = vpop.f32.mrb[77].mxu1  ;;  %2867 = vmatmul.mubr.f32.gmra.mrb[182].mxu1 %v7531_v42 }
 0x1af   :  { %1231 = vmatprep.mubr.f32.mxu0 %v9786_v57  ;;  %7561 = vmatprep.mubr.msk.f32.mxu1 %vm129_vm0, %v7534_v47 }
 0x1b1   :  { %v11215_v43 = vpop.f32.mrb[78].mxu1 }
 0x1b2   :  { %7272 = vmatmul.mubr.msk.f32.gmra.mrb[78].mxu0 %vm710_vm4, %v10908_v3  ;;  %v1550_v26 = vpop.f32.mrb[79].mxu1  ;;  %2872 = vmatmul.mubr.f32.gmra.mrb[184].mxu1 %v7533_v49 }
 0x1b3   :  { %1237 = vmatprep.mubr.f32.mxu0 %v9786_v57  ;;  %7562 = vmatprep.mubr.msk.f32.mxu1 %vm129_vm0, %v7536_v51 }
 0x1b5   :  { %v11227_v50 = vpop.f32.mrb[80].mxu1 }
 0x1b6   :  { %7273 = vmatmul.mubr.msk.f32.gmra.mrb[80].mxu0 %vm710_vm4, %v10919_v10  ;;  %v1555_v3 = vpop.f32.mrb[81].mxu1  ;;  %2877 = vmatmul.mubr.f32.gmra.mrb[186].mxu1 %v7535_v54 }
 0x1b7   :  { %1243 = vmatprep.mubr.f32.mxu0 %v9786_v57  ;;  %7563 = vmatprep.mubr.msk.f32.mxu1 %vm129_vm0, %v7538_v56 }
 0x1b9   :  { %v11239_v55 = vpop.f32.mrb[82].mxu1 }
 0x1ba   :  { %7274 = vmatmul.mubr.msk.f32.gmra.mrb[82].mxu0 %vm710_vm4, %v10930_v17  ;;  %v1560_v10 = vpop.f32.mrb[83].mxu1  ;;  %2882 = vmatmul.mubr.f32.gmra.mrb[188].mxu1 %v7537_v59 }
 0x1bb   :  { %1249 = vmatprep.mubr.f32.mxu0 %v9786_v57  ;;  %7564 = vmatprep.mubr.msk.f32.mxu1 %vm129_vm0, %v7540_v61 }
 0x1bd   :  { %v11248_v29 = vpop.f32.mrb[84].mxu1 }
 0x1be   :  { %7275 = vmatmul.mubr.msk.f32.gmra.mrb[84].mxu0 %vm710_vm4, %v10941_v25  ;;  %v1565_v62 = vpop.f32.mrb[85].mxu1  ;;  %2887 = vmatmul.mubr.f32.gmra.mrb[190].mxu1 %v7539_v2 }
 0x1bf   :  { %1255 = vmatprep.mubr.f32.mxu0 %v9786_v57 }
 0x1c1   :  { %v11253_v17 = vpop.f32.mrb[86].mxu1 }
 0x1c2   :  { %7276 = vmatmul.mubr.msk.f32.gmra.mrb[86].mxu0 %vm710_vm4, %v10952_v46  ;;  %v1570_v7 = vpop.f32.mrb[87].mxu1 }
 0x1c3   :  { %1261 = vmatprep.mubr.f32.mxu0 %v9786_v57 }
 0x1c5   :  { %v11258_v6 = vpop.f32.mrb[88].mxu1 }
 0x1c6   :  { %7277 = vmatmul.mubr.msk.f32.gmra.mrb[88].mxu0 %vm710_vm4, %v10963_v44  ;;  %v1575_v5 = vpop.f32.mrb[89].mxu1  ;;  %v7459_v44 = vld [vmem:[%s13576_s2 + $0xc0] sm:$0xff] }
 0x1c7   :  { %1267 = vmatprep.mubr.f32.mxu0 %v9786_v57  ;;  %v8741_v14 = vpack.c.bf16 %v7461_v9, %v7459_v44 }
 0x1c9   :  { %v11263_v25 = vpop.f32.mrb[90].mxu1 }
 0x1ca   :  { %7278 = vmatmul.mubr.msk.f32.gmra.mrb[90].mxu0 %vm710_vm4, %v10974_v22  ;;  %v1580_v8 = vpop.f32.mrb[91].mxu1  ;;  %v7464_v22 = vld [vmem:[%s13576_s2 + $0xe8] sm:$0xff] }
 0x1cb   :  { %1273 = vmatprep.mubr.f32.mxu0 %v9786_v57  ;;  %v8743_v38 = vpack.c.bf16 %v7466_v12, %v7464_v22  ;;  %v7567_v22 = vld [vmem:[%s13576_s2 + $0x110] sm:$0xff]  ;;  %v7572_v12 = vld [vmem:[%s13576_s2 + $0x138] sm:$0xf] }
 0x1cd   :  { %v11268_v46 = vpop.f32.mrb[92].mxu1 }
 0x1ce   :  { %7279 = vmatmul.mubr.msk.f32.gmra.mrb[92].mxu0 %vm710_vm4, %v10985_v63  ;;  %v1585_v11 = vpop.f32.mrb[93].mxu1 }
 0x1cf   :  { %1279 = vmatprep.mubr.f32.mxu0 %v9786_v57 }
 0x1d1   :  { %v11285_v63 = vpop.f32.mrb[94].mxu1 }
 0x1d2   :  { %7280 = vmatmul.mubr.msk.f32.gmra.mrb[94].mxu0 %vm710_vm4, %v11008_v13  ;;  %v1590_v15 = vpop.f32.mrb[95].mxu1  ;;  %v7568_v13 = vld [vmem:[%s13576_s2 + $0x118] sm:$0xff] }
 0x1d3   :  { %1743 = vmatprep.mubr.f32.mxu0 %v9786_v57  ;;  %v8791_v33 = vpack.c.bf16 %v7568_v13, %v7566_v27 }
 0x1d5   :  { %v11296_v41 = vpop.f32.mrb[96].mxu1 }
 0x1d6   :  { %7363 = vmatmul.mubr.msk.f32.vlgmr.msra.gmra.mrb[48].mxu0 %vm710_vm4, %v11022_v24  ;;  %v2125_v28 = vpop.f32.mrb[97].mxu1 }
 0x1d7   :  { %1749 = vmatprep.mubr.f32.mxu0 %v9786_v57  ;;  %8742 = vmatpush1.bf16.msra.mxu0 %v8741_v14 }
 0x1d8   :  { %8745 = vmatprep.subr.msk.bf16.mxu0 %vm10088_vm3, %v8743_v38 }
 0x1d9   :  { %v11309_v37 = vpop.f32.mrb[98].mxu1 }
 0x1da   :  { %7364 = vmatmul.mubr.msk.f32.gmra.mrb[50].mxu0 %vm710_vm4, %v11042_v40  ;;  %v2130_v39 = vpop.f32.mrb[99].mxu1 }
 0x1db   :  { %1755 = vmatprep.mubr.f32.mxu0 %v9786_v57  ;;  %8748 = vmatpush1.bf16.msk.msra.mxu0 %vm10088_vm3, %v8746_v31 }
 0x1dc   :  { %8792 = vmatprep.subr.bf16.mxu0 %v8791_v33 }
 0x1dd   :  { %v11316_v24 = vpop.f32.mrb[100].mxu1 }
 0x1de   :  { %7365 = vmatmul.mubr.msk.f32.gmra.mrb[52].mxu0 %vm710_vm4, %v11059_v48  ;;  %v2135_v21 = vpop.f32.mrb[101].mxu1 }
 0x1df   :  { %1761 = vmatprep.mubr.f32.mxu0 %v9786_v57 }
 0x1e1   :  { %v11321_v45 = vpop.f32.mrb[102].mxu1 }
 0x1e2   :  { %7366 = vmatmul.mubr.msk.f32.gmra.mrb[54].mxu0 %vm710_vm4, %v11071_v52  ;;  %v2140_v40 = vpop.f32.mrb[103].mxu1 }
 0x1e3   :  { %1767 = vmatprep.mubr.f32.mxu0 %v9786_v57 }
 0x1e5   :  { %v11326_v42 = vpop.f32.mrb[104].mxu1 }
 0x1e6   :  { %7367 = vmatmul.mubr.msk.f32.gmra.mrb[56].mxu0 %vm710_vm4, %v11083_v58  ;;  %v2145_v47 = vpop.f32.mrb[105].mxu1 }
 0x1e7   :  { %1773 = vmatprep.mubr.f32.mxu0 %v9786_v57 }
 0x1e9   :  { %v11331_v48 = vpop.f32.mrb[106].mxu1 }
 0x1ea   :  { %7368 = vmatmul.mubr.msk.f32.gmra.mrb[58].mxu0 %vm710_vm4, %v11095_v1  ;;  %v2150_v53 = vpop.f32.mrb[107].mxu1 }
 0x1eb   :  { %1779 = vmatprep.mubr.f32.mxu0 %v9786_v57 }
 0x1ed   :  { %v11336_v52 = vpop.f32.mrb[108].mxu1 }
 0x1ee   :  { %7369 = vmatmul.mubr.msk.f32.gmra.mrb[60].mxu0 %vm710_vm4, %v11107_v4  ;;  %v2155_v49 = vpop.f32.mrb[109].mxu1 }
 0x1ef   :  { %1785 = vmatprep.mubr.f32.mxu0 %v9786_v57 }
 0x1f1   :  { %v11341_v58 = vpop.f32.mrb[110].mxu1 }
 0x1f2   :  { %7370 = vmatmul.mubr.msk.f32.gmra.mrb[62].mxu0 %vm710_vm4, %v11119_v32  ;;  %v2160_v51 = vpop.f32.mrb[111].mxu1 }
 0x1f3   :  { %1791 = vmatprep.mubr.f32.mxu0 %v9786_v57 }
 0x1f5   :  { %v11346_v1 = vpop.f32.mrb[112].mxu1 }
 0x1f6   :  { %7371 = vmatmul.mubr.msk.f32.gmra.mrb[64].mxu0 %vm710_vm4, %v11131_v35  ;;  %v2165_v26 = vpop.f32.mrb[113].mxu1 }
 0x1f7   :  { %1797 = vmatprep.mubr.f32.mxu0 %v9786_v57 }
 0x1f9   :  { %v11351_v4 = vpop.f32.mrb[114].mxu1 }
 0x1fa   :  { %7372 = vmatmul.mubr.msk.f32.gmra.mrb[66].mxu0 %vm710_vm4, %v11143_v18  ;;  %v2170_v54 = vpop.f32.mrb[115].mxu1 }
 0x1fb   :  { %1803 = vmatprep.mubr.f32.mxu0 %v9786_v57 }
 0x1fd   :  { %v11356_v32 = vpop.f32.mrb[116].mxu1 }
 0x1fe   :  { %7373 = vmatmul.mubr.msk.f32.gmra.mrb[68].mxu0 %vm710_vm4, %v11155_v16  ;;  %v2175_v56 = vpop.f32.mrb[117].mxu1 }
 0x1ff   :  { %1809 = vmatprep.mubr.f32.mxu0 %v9786_v57 }
 0x201   :  { %v11361_v35 = vpop.f32.mrb[118].mxu1 }
 0x202   :  { %7374 = vmatmul.mubr.msk.f32.gmra.mrb[70].mxu0 %vm710_vm4, %v11167_v30  ;;  %v2180_v3 = vpop.f32.mrb[119].mxu1 }
 0x203   :  { %1815 = vmatprep.mubr.f32.mxu0 %v9786_v57 }
 0x205   :  { %v11366_v18 = vpop.f32.mrb[120].mxu1 }
 0x206   :  { %7375 = vmatmul.mubr.msk.f32.gmra.mrb[72].mxu0 %vm710_vm4, %v11179_v36  ;;  %v2185_v59 = vpop.f32.mrb[121].mxu1 }
 0x207   :  { %1821 = vmatprep.mubr.f32.mxu0 %v9786_v57 }
 0x209   :  { %v11371_v16 = vpop.f32.mrb[122].mxu1 }
 0x20a   :  { %7376 = vmatmul.mubr.msk.f32.gmra.mrb[74].mxu0 %vm710_vm4, %v11191_v19  ;;  %v2190_v61 = vpop.f32.mrb[123].mxu1 }
 0x20b   :  { %1827 = vmatprep.mubr.f32.mxu0 %v9786_v57 }
 0x20d   :  { %v11376_v30 = vpop.f32.mrb[124].mxu1 }
 0x20e   :  { %7377 = vmatmul.mubr.msk.f32.gmra.mrb[76].mxu0 %vm710_vm4, %v11203_v34  ;;  %v2195_v10 = vpop.f32.mrb[125].mxu1 }
 0x20f   :  { %1833 = vmatprep.mubr.f32.mxu0 %v9786_v57  ;;  %v3347_v10 = vld [vmem:[%s13577_s4 + $0x18] sm:$0xff] }
 0x211   :  { %v11381_v36 = vpop.f32.mrb[126].mxu1 }
 0x212   :  { %7378 = vmatmul.mubr.msk.f32.gmra.mrb[78].mxu0 %vm710_vm4, %v11215_v43  ;;  %v2200_v2 = vpop.f32.mrb[127].mxu1 }
 0x213   :  { %1839 = vmatprep.mubr.f32.mxu0 %v9786_v57 }
 0x215   :  { %v11386_v19 = vpop.f32.mrb[128].mxu1 }
 0x216   :  { %7379 = vmatmul.mubr.msk.f32.gmra.mrb[80].mxu0 %vm710_vm4, %v11227_v50  ;;  %v2205_v62 = vpop.f32.mrb[129].mxu1 }
 0x217   :  { %1845 = vmatprep.mubr.f32.mxu0 %v9786_v57  ;;  %v3349_v62 = vld [vmem:[%s13577_s4 + $0x28] sm:$0xff] }
 0x219   :  { %v11391_v34 = vpop.f32.mrb[130].mxu1 }
 0x21a   :  { %7380 = vmatmul.mubr.msk.f32.gmra.mrb[82].mxu0 %vm710_vm4, %v11239_v55  ;;  %v2210_v7 = vpop.f32.mrb[131].mxu1 }
 0x21b   :  { %1851 = vmatprep.mubr.f32.mxu0 %v9786_v57  ;;  %v3351_v7 = vld [vmem:[%s13577_s4 + $0x38] sm:$0xff] }
 0x21d   :  { %v11396_v43 = vpop.f32.mrb[132].mxu1 }
 0x21e   :  { %7381 = vmatmul.mubr.msk.f32.gmra.mrb[84].mxu0 %vm710_vm4, %v11248_v29  ;;  %v2215_v5 = vpop.f32.mrb[133].mxu1 }
 0x21f   :  { %1857 = vmatprep.mubr.f32.mxu0 %v9786_v57 }
 0x221   :  { %v11401_v50 = vpop.f32.mrb[134].mxu1 }
 0x222   :  { %7382 = vmatmul.mubr.msk.f32.gmra.mrb[86].mxu0 %vm710_vm4, %v11253_v17  ;;  %v2220_v8 = vpop.f32.mrb[135].mxu1 }
 0x223   :  { %1863 = vmatprep.mubr.f32.mxu0 %v9786_v57 }
 0x225   :  { %v11406_v55 = vpop.f32.mrb[136].mxu1 }
 0x226   :  { %7383 = vmatmul.mubr.msk.f32.gmra.mrb[88].mxu0 %vm710_vm4, %v11258_v6  ;;  %v2225_v11 = vpop.f32.mrb[137].mxu1  ;;  %v7565_v6 = vld [vmem:[%s13576_s2 + $0x100] sm:$0xff] }
 0x227   :  { %1869 = vmatprep.mubr.f32.mxu0 %v9786_v57  ;;  %v8793_v14 = vpack.c.bf16 %v7567_v22, %v7565_v6  ;;  %v8805_v11 = vpack.c.bf16 %v3351_v7, %v3349_v62  ;;  %v3353_v6 = vld [vmem:[%s13577_s4 + $0x48] sm:$0xff] }
 0x229   :  { %v11411_v29 = vpop.f32.mrb[138].mxu1 }
 0x22a   :  { %7384 = vmatmul.mubr.msk.f32.gmra.mrb[90].mxu0 %vm710_vm4, %v11263_v25  ;;  %v2230_v44 = vpop.f32.mrb[139].mxu1  ;;  %v7570_v25 = vld [vmem:[%s13576_s2 + $0x128] sm:$0xff] }
 0x22b   :  { %1875 = vmatprep.mubr.f32.mxu0 %v9786_v57  ;;  %v8795_v38 = vpack.c.bf16 %v7572_v12, %v7570_v25  ;;  %v3348_v44 = vld [vmem:[%s13577_s4 + $0x20] sm:$0xff]  ;;  %v3355_v25 = vld [vmem:[%s13577_s4 + $0x58] sm:$0xff] }
 0x22d   :  { %v11416_v17 = vpop.f32.mrb[140].mxu1 }
 0x22e   :  { %7385 = vmatmul.mubr.msk.f32.gmra.mrb[92].mxu0 %vm710_vm4, %v11268_v46  ;;  %v2235_v9 = vpop.f32.mrb[141].mxu1 }
 0x22f   :  { %1881 = vmatprep.mubr.f32.mxu0 %v9786_v57  ;;  %v3350_v9 = vld [vmem:[%s13577_s4 + $0x30] sm:$0xff] }
 0x230   :  { %v8807_v12 = vpack.c.bf16 %v3350_v9, %v3348_v44  ;;  %v3375_v9 = vld [vmem:[%s13577_s4 + $0xf8] sm:$0xff] }
 0x231   :  { %v11433_v46 = vpop.f32.mrb[142].mxu1 }
 0x232   :  { %7386 = vmatmul.mubr.msk.f32.gmra.mrb[94].mxu0 %vm710_vm4, %v11285_v63  ;;  %v2240_v15 = vpop.f32.mrb[143].mxu1  ;;  %v8798_v63 = vpack.c.bf16 %v7571_v23, %v7569_v20  ;;  %v3357_v20 = vld [vmem:[%s13577_s4 + $0x68] sm:$0xff]  ;;  %v3359_v23 = vld [vmem:[%s13577_s4 + $0x78] sm:$0xff] }
 0x233   :  { %2393 = vmatprep.mubr.f32.mxu0 %v9786_v57  ;;  %v8809_v15 = vpack.c.bf16 %v3355_v25, %v3353_v6 }
 0x235   :  { %v11444_v27 = vpop.f32.mrb[144].mxu1 }
 0x236   :  { %7469 = vmatmul.mubr.msk.f32.vlgmr.msra.gmra.mrb[48].mxu0 %vm710_vm4, %v11296_v41  ;;  %v2775_v13 = vpop.f32.mrb[145].mxu1 }
 0x237   :  { %2399 = vmatprep.mubr.f32.mxu0 %v9786_v57  ;;  %8794 = vmatpush1.bf16.msra.mxu0 %v8793_v14  ;;  %v3352_v14 = vld [vmem:[%s13577_s4 + $0x40] sm:$0xff] }
 0x238   :  { %8797 = vmatprep.subr.msk.bf16.mxu0 %vm10088_vm3, %v8795_v38 }
 0x239   :  { %v11451_v28 = vpop.f32.mrb[146].mxu1 }
 0x23a   :  { %7470 = vmatmul.mubr.msk.f32.gmra.mrb[50].mxu0 %vm710_vm4, %v11309_v37  ;;  %v2780_v31 = vpop.f32.mrb[147].mxu1 }
 0x23b   :  { %2405 = vmatprep.mubr.f32.mxu0 %v9786_v57  ;;  %8800 = vmatpush1.bf16.msk.msra.mxu0 %vm10088_vm3, %v8798_v63  ;;  %v8813_v31 = vpack.c.bf16 %v3359_v23, %v3357_v20 }
 0x23d   :  { %v11458_v41 = vpop.f32.mrb[148].mxu1 }
 0x23e   :  { %7471 = vmatmul.mubr.msk.f32.gmra.mrb[52].mxu0 %vm710_vm4, %v11316_v24  ;;  %v2785_v33 = vpop.f32.mrb[149].mxu1 }
 0x23f   :  { %2411 = vmatprep.mubr.f32.mxu0 %v9786_v57  ;;  %v3356_v33 = vld [vmem:[%s13577_s4 + $0x60] sm:$0xff] }
 0x241   :  { %v11463_v39 = vpop.f32.mrb[150].mxu1 }
 0x242   :  { %7472 = vmatmul.mubr.msk.f32.gmra.mrb[54].mxu0 %vm710_vm4, %v11321_v45  ;;  %v2790_v37 = vpop.f32.mrb[151].mxu1 }
 0x243   :  { %2417 = vmatprep.mubr.f32.mxu0 %v9786_v57  ;;  %v3358_v37 = vld [vmem:[%s13577_s4 + $0x70] sm:$0xff] }
 0x245   :  { %v11468_v21 = vpop.f32.mrb[152].mxu1 }
 0x246   :  { %7473 = vmatmul.mubr.msk.f32.gmra.mrb[56].mxu0 %vm710_vm4, %v11326_v42  ;;  %v2795_v60 = vpop.f32.mrb[153].mxu1 }
 0x247   :  { %2423 = vmatprep.mubr.f32.mxu0 %v9786_v57 }
 0x249   :  { %v11473_v24 = vpop.f32.mrb[154].mxu1 }
 0x24a   :  { %7474 = vmatmul.mubr.msk.f32.gmra.mrb[58].mxu0 %vm710_vm4, %v11331_v48  ;;  %v2800_v40 = vpop.f32.mrb[155].mxu1 }
 0x24b   :  { %2429 = vmatprep.mubr.f32.mxu0 %v9786_v57  ;;  %v3363_v40 = vld [vmem:[%s13577_s4 + $0x98] sm:$0xff] }
 0x24d   :  { %v11478_v45 = vpop.f32.mrb[156].mxu1 }
 0x24e   :  { %7475 = vmatmul.mubr.msk.f32.gmra.mrb[60].mxu0 %vm710_vm4, %v11336_v52  ;;  %v2805_v47 = vpop.f32.mrb[157].mxu1 }
 0x24f   :  { %2435 = vmatprep.mubr.f32.mxu0 %v9786_v57 }
 0x251   :  { %v11483_v42 = vpop.f32.mrb[158].mxu1 }
 0x252   :  { %7476 = vmatmul.mubr.msk.f32.gmra.mrb[62].mxu0 %vm710_vm4, %v11341_v58  ;;  %v2810_v53 = vpop.f32.mrb[159].mxu1 }
 0x253   :  { %2441 = vmatprep.mubr.f32.mxu0 %v9786_v57  ;;  %v8815_v53 = vpack.c.bf16 %v3358_v37, %v3356_v33  ;;  %v3383_v37 = vld [vmem:[%s13577_s4 + $0x138] sm:$0xff] }
 0x255   :  { %v11488_v48 = vpop.f32.mrb[160].mxu1 }
 0x256   :  { %7477 = vmatmul.mubr.msk.f32.gmra.mrb[64].mxu0 %vm710_vm4, %v11346_v1  ;;  %v2815_v49 = vpop.f32.mrb[161].mxu1 }
 0x257   :  { %2447 = vmatprep.mubr.f32.mxu0 %v9786_v57 }
 0x259   :  { %v11493_v52 = vpop.f32.mrb[162].mxu1 }
 0x25a   :  { %7478 = vmatmul.mubr.msk.f32.gmra.mrb[66].mxu0 %vm710_vm4, %v11351_v4  ;;  %v2820_v51 = vpop.f32.mrb[163].mxu1 }
 0x25b   :  { %2453 = vmatprep.mubr.f32.mxu0 %v9786_v57  ;;  %v3360_v51 = vld [vmem:[%s13577_s4 + $0x80] sm:$0xff] }
 0x25d   :  { %v11498_v58 = vpop.f32.mrb[164].mxu1 }
 0x25e   :  { %7479 = vmatmul.mubr.msk.f32.gmra.mrb[68].mxu0 %vm710_vm4, %v11356_v32  ;;  %v2825_v26 = vpop.f32.mrb[165].mxu1 }
 0x25f   :  { %2459 = vmatprep.mubr.f32.mxu0 %v9786_v57  ;;  %v3362_v26 = vld [vmem:[%s13577_s4 + $0x90] sm:$0xff] }
 0x261   :  { %v11503_v1 = vpop.f32.mrb[166].mxu1 }
 0x262   :  { %7480 = vmatmul.mubr.msk.f32.gmra.mrb[70].mxu0 %vm710_vm4, %v11361_v35  ;;  %v2830_v54 = vpop.f32.mrb[167].mxu1 }
 0x263   :  { %2465 = vmatprep.mubr.f32.mxu0 %v9786_v57 }
 0x265   :  { %v11508_v4 = vpop.f32.mrb[168].mxu1 }
 0x266   :  { %7481 = vmatmul.mubr.msk.f32.gmra.mrb[72].mxu0 %vm710_vm4, %v11366_v18  ;;  %v2835_v56 = vpop.f32.mrb[169].mxu1 }
 0x267   :  { %2471 = vmatprep.mubr.f32.mxu0 %v9786_v57  ;;  %v3367_v56 = vld [vmem:[%s13577_s4 + $0xb8] sm:$0xff] }
 0x269   :  { %v11513_v32 = vpop.f32.mrb[170].mxu1 }
 0x26a   :  { %7482 = vmatmul.mubr.msk.f32.gmra.mrb[74].mxu0 %vm710_vm4, %v11371_v16  ;;  %v2840_v3 = vpop.f32.mrb[171].mxu1  ;;  %v3345_v16 = vld [vmem:[%s13577_s4 + $0x8] sm:$0xff] }
 0x26b   :  { %2477 = vmatprep.mubr.f32.mxu0 %v9786_v57  ;;  %v8801_v2 = vpack.c.bf16 %v3347_v10, %v3345_v16  ;;  %v3364_v16 = vld [vmem:[%s13577_s4 + $0xa0] sm:$0xff]  ;;  %v3366_v10 = vld [vmem:[%s13577_s4 + $0xb0] sm:$0xff] }
 0x26c   :  { %v8823_v62 = vpack.c.bf16 %v3366_v10, %v3364_v16  ;;  %v3388_v10 = vld [vmem:[%s13577_s4 + $0x160] sm:$0xff] }
 0x26d   :  { %v11518_v35 = vpop.f32.mrb[172].mxu1  ;;  %8802 = vmatprep.subr.bf16.mxu1 %v8801_v2  ;;  %v3371_v2 = vld [vmem:[%s13577_s4 + $0xd8] sm:$0xff] }
 0x26e   :  { %7483 = vmatmul.mubr.msk.f32.gmra.mrb[76].mxu0 %vm710_vm4, %v11376_v30  ;;  %v2845_v59 = vpop.f32.mrb[173].mxu1  ;;  %v3344_v30 = vld [vmem:[%s13577_s4] sm:$0xff] }
 0x26f   :  { %2483 = vmatprep.mubr.f32.mxu0 %v9786_v57  ;;  %v8819_v59 = vpack.c.bf16 %v3362_v26, %v3360_v51  ;;  %v3385_v51 = vld [vmem:[%s13577_s4 + $0x148] sm:$0xff] }
 0x271   :  { %v11523_v18 = vpop.f32.mrb[174].mxu1 }
 0x272   :  { %7484 = vmatmul.mubr.msk.f32.gmra.mrb[78].mxu0 %vm710_vm4, %v11381_v36  ;;  %v2850_v61 = vpop.f32.mrb[175].mxu1  ;;  %v3346_v36 = vld [vmem:[%s13577_s4 + $0x10] sm:$0xff] }
 0x273   :  { %2489 = vmatprep.mubr.f32.mxu0 %v9786_v57  ;;  %v8803_v8 = vpack.c.bf16 %v3346_v36, %v3344_v30 }
 0x275   :  { %v11546_v5 = vpop.f32.mrb[176].mxu1  ;;  %8804 = vmatpush1.bf16.msra.mxu1 %v8803_v8  ;;  %v3368_v8 = vld [vmem:[%s13577_s4 + $0xc0] sm:$0xff] }
 0x276   :  { %7485 = vmatmul.mubr.msk.f32.gmra.mrb[80].mxu0 %vm710_vm4, %v11386_v19  ;;  %v2855_v22 = vpop.f32.mrb[177].mxu1  ;;  %8806 = vmatprep.subr.bf16.mxu1 %v8805_v11  ;;  %v3354_v19 = vld [vmem:[%s13577_s4 + $0x50] sm:$0xff] }
 0x277   :  { %2495 = vmatprep.mubr.f32.mxu0 %v9786_v57  ;;  %v8811_v63 = vpack.c.bf16 %v3354_v19, %v3352_v14  ;;  %v3370_v11 = vld [vmem:[%s13577_s4 + $0xd0] sm:$0xff]  ;;  %v3379_v19 = vld [vmem:[%s13577_s4 + $0x118] sm:$0xff] }
 0x278   :  { %v8827_v22 = vpack.c.bf16 %v3370_v11, %v3368_v8  ;;  %v3394_v8 = vld [vmem:[%s13577_s4 + $0x190] sm:$0xff]  ;;  %v3397_v11 = vld [vmem:[%s13577_s4 + $0x1a8] sm:$0xff] }
 0x279   :  { %v11569_v38 = vpop.f32.mrb[178].mxu1  ;;  %8808 = vmatpush1.bf16.msra.mxu1 %v8807_v12  ;;  %v3372_v12 = vld [vmem:[%s13577_s4 + $0xe0] sm:$0xff] }
 0x27a   :  { %7486 = vmatmul.mubr.msk.f32.gmra.mrb[82].mxu0 %vm710_vm4, %v11391_v34  ;;  %v2860_v13 = vpop.f32.mrb[179].mxu1  ;;  %8810 = vmatprep.subr.bf16.mxu1 %v8809_v15  ;;  %v3361_v34 = vld [vmem:[%s13577_s4 + $0x88] sm:$0xff]  ;;  %v3374_v15 = vld [vmem:[%s13577_s4 + $0xf0] sm:$0xff] }
 0x27b   :  { %2501 = vmatprep.mubr.f32.mxu0 %v9786_v57  ;;  %v8817_v49 = vpack.c.bf16 %v3363_v40, %v3361_v34  ;;  %v8831_v23 = vpack.c.bf16 %v3374_v15, %v3372_v12 }
 0x27d   :  { %v11586_v60 = vpop.f32.mrb[180].mxu1  ;;  %8812 = vmatpush1.bf16.msra.mxu1 %v8811_v63  ;;  %v3376_v63 = vld [vmem:[%s13577_s4 + $0x100] sm:$0xff] }
 0x27e   :  { %7487 = vmatmul.mubr.msk.f32.gmra.mrb[84].mxu0 %vm710_vm4, %v11396_v43  ;;  %v2865_v47 = vpop.f32.mrb[181].mxu1  ;;  %8814 = vmatprep.subr.bf16.mxu1 %v8813_v31  ;;  %v3365_v43 = vld [vmem:[%s13577_s4 + $0xa8] sm:$0xff]  ;;  %v3378_v31 = vld [vmem:[%s13577_s4 + $0x110] sm:$0xff] }
 0x27f   :  { %2507 = vmatprep.mubr.f32.mxu0 %v9786_v57  ;;  %v8821_v61 = vpack.c.bf16 %v3367_v56, %v3365_v43  ;;  %v8835_v40 = vpack.c.bf16 %v3378_v31, %v3376_v63  ;;  %v3384_v56 = vld [vmem:[%s13577_s4 + $0x140] sm:$0xff] }
 0x281   :  { %v11603_v54 = vpop.f32.mrb[182].mxu1  ;;  %8816 = vmatpush1.bf16.msra.mxu1 %v8815_v53  ;;  %v3380_v53 = vld [vmem:[%s13577_s4 + $0x120] sm:$0xff] }
 0x282   :  { %7488 = vmatmul.mubr.msk.f32.gmra.mrb[86].mxu0 %vm710_vm4, %v11401_v50  ;;  %v2870_v3 = vpop.f32.mrb[183].mxu1  ;;  %8818 = vmatprep.subr.bf16.mxu1 %v8817_v49  ;;  %v3369_v50 = vld [vmem:[%s13577_s4 + $0xc8] sm:$0xff]  ;;  %v3382_v49 = vld [vmem:[%s13577_s4 + $0x130] sm:$0xff] }
 0x283   :  { %2513 = vmatprep.mubr.f32.mxu0 %v9786_v57  ;;  %v8825_v7 = vpack.c.bf16 %v3371_v2, %v3369_v50  ;;  %v8839_v26 = vpack.c.bf16 %v3382_v49, %v3380_v53  ;;  %v3386_v3 = vld [vmem:[%s13577_s4 + $0x150] sm:$0xff]  ;;  %v3393_v2 = vld [vmem:[%s13577_s4 + $0x188] sm:$0xff] }
 0x284   :  { %v3390_v50 = vld [vmem:[%s13577_s4 + $0x170] sm:$0xff] }
 0x285   :  { %v11620_v30 = vpop.f32.mrb[184].mxu1  ;;  %8820 = vmatpush1.bf16.msra.mxu1 %v8819_v59  ;;  %v3389_v59 = vld [vmem:[%s13577_s4 + $0x168] sm:$0xff] }
 0x286   :  { %7489 = vmatmul.mubr.msk.f32.gmra.mrb[88].mxu0 %vm710_vm4, %v11406_v55  ;;  %v2875_v36 = vpop.f32.mrb[185].mxu1  ;;  %8822 = vmatprep.subr.bf16.mxu1 %v8821_v61  ;;  %v3373_v55 = vld [vmem:[%s13577_s4 + $0xe8] sm:$0xff]  ;;  %v8843_v61 = vpack.c.bf16 %v3386_v3, %v3384_v56 }
 0x287   :  { %2519 = vmatprep.mubr.f32.mxu0 %v9786_v57  ;;  %v8829_v25 = vpack.c.bf16 %v3375_v9, %v3373_v55  ;;  %v8847_v36 = vpack.c.bf16 %v3390_v50, %v3388_v10 }
 0x289   :  { %v11637_v44 = vpop.f32.mrb[186].mxu1  ;;  %8824 = vmatpush1.bf16.msra.mxu1 %v8823_v62 }
 0x28a   :  { %7490 = vmatmul.mubr.msk.f32.gmra.mrb[90].mxu0 %vm710_vm4, %v11411_v29  ;;  %v2880_v6 = vpop.f32.mrb[187].mxu1  ;;  %8826 = vmatprep.subr.bf16.mxu1 %v8825_v7  ;;  %v3377_v29 = vld [vmem:[%s13577_s4 + $0x108] sm:$0xff]  ;;  %v3392_v7 = vld [vmem:[%s13577_s4 + $0x180] sm:$0xff] }
 0x28b   :  { %2525 = vmatprep.mubr.f32.mxu0 %v9786_v57  ;;  %v8833_v13 = vpack.c.bf16 %v3379_v19, %v3377_v29  ;;  %v8851_v55 = vpack.c.bf16 %v3394_v8, %v3392_v7 }
 0x28d   :  { %v11654_v14 = vpop.f32.mrb[188].mxu1  ;;  %8828 = vmatpush1.bf16.msra.mxu1 %v8827_v22 }
 0x28e   :  { %7491 = vmatmul.mubr.msk.f32.gmra.mrb[92].mxu0 %vm710_vm4, %v11416_v17  ;;  %v2885_v20 = vpop.f32.mrb[189].mxu1  ;;  %8830 = vmatprep.subr.bf16.mxu1 %v8829_v25  ;;  %v3381_v17 = vld [vmem:[%s13577_s4 + $0x128] sm:$0xff] }
 0x28f   :  { %2531 = vmatprep.mubr.f32.mxu0 %v9786_v57  ;;  %v8837_v47 = vpack.c.bf16 %v3383_v37, %v3381_v17 }
 0x291   :  { %v11671_v33 = vpop.f32.mrb[190].mxu1  ;;  %8832 = vmatpush1.bf16.msra.mxu1 %v8831_v23 }
 0x292   :  { %7492 = vmatmul.mubr.msk.f32.gmra.mrb[94].mxu0 %vm710_vm4, %v11433_v46  ;;  %v2890_v34 = vpop.f32.mrb[191].mxu1  ;;  %8834 = vmatprep.subr.bf16.mxu1 %v8833_v13  ;;  %v3387_v46 = vld [vmem:[%s13577_s4 + $0x158] sm:$0xff] }
 0x293   :  { %3043 = vmatprep.mubr.f32.mxu0 %v9786_v57  ;;  %v8841_v43 = vpack.c.bf16 %v3387_v46, %v3385_v51 }
 0x295   :  { %8836 = vmatpush1.bf16.msra.mxu1 %v8835_v40 }
 0x296   :  { %7575 = vmatmul.mubr.msk.f32.vlgmr.msra.gmra.mrb[48].mxu0 %vm710_vm4, %v11444_v27  ;;  %8838 = vmatprep.subr.bf16.mxu1 %v8837_v47  ;;  %v3391_v27 = vld [vmem:[%s13577_s4 + $0x178] sm:$0xff] }
 0x297   :  { %3049 = vmatprep.mubr.f32.mxu0 %v9786_v57  ;;  %v8845_v16 = vpack.c.bf16 %v3391_v27, %v3389_v59 }
 0x299   :  { %8840 = vmatpush1.bf16.msra.mxu1 %v8839_v26 }
 0x29a   :  { %7576 = vmatmul.mubr.msk.f32.gmra.mrb[50].mxu0 %vm710_vm4, %v11451_v28  ;;  %8842 = vmatprep.subr.bf16.mxu1 %v8841_v43  ;;  %v3395_v28 = vld [vmem:[%s13577_s4 + $0x198] sm:$0xff] }
 0x29b   :  { %3055 = vmatprep.mubr.f32.mxu0 %v9786_v57  ;;  %v8849_v62 = vpack.c.bf16 %v3395_v28, %v3393_v2 }
 0x29d   :  { %8844 = vmatpush1.bf16.msra.mxu1 %v8843_v61 }
 0x29e   :  { %7577 = vmatmul.mubr.msk.f32.gmra.mrb[52].mxu0 %vm710_vm4, %v11458_v41  ;;  %8846 = vmatprep.subr.bf16.mxu1 %v8845_v16  ;;  %v3399_v41 = vld [vmem:[%s13577_s4 + $0x1b8] sm:$0xff] }
 0x29f   :  { %3061 = vmatprep.mubr.f32.mxu0 %v9786_v57  ;;  %v8853_v9 = vpack.c.bf16 %v3399_v41, %v3397_v11 }
 0x2a1   :  { %8848 = vmatpush1.bf16.msra.mxu1 %v8847_v36 }
 0x2a2   :  { %7578 = vmatmul.mubr.msk.f32.gmra.mrb[54].mxu0 %vm710_vm4, %v11463_v39  ;;  %8850 = vmatprep.subr.bf16.mxu1 %v8849_v62  ;;  %v3396_v39 = vld [vmem:[%s13577_s4 + $0x1a0] sm:$0xff] }
 0x2a3   :  { %3067 = vmatprep.mubr.f32.mxu0 %v9786_v57 }
 0x2a5   :  { %8852 = vmatpush1.bf16.msra.mxu1 %v8851_v55 }
 0x2a6   :  { %7579 = vmatmul.mubr.msk.f32.gmra.mrb[56].mxu0 %vm710_vm4, %v11468_v21  ;;  %8854 = vmatprep.subr.bf16.mxu1 %v8853_v9  ;;  %v3398_v21 = vld [vmem:[%s13577_s4 + $0x1b0] sm:$0xff] }
 0x2a7   :  { %3073 = vmatprep.mubr.f32.mxu0 %v9786_v57 }
 0x2aa   :  { %7580 = vmatmul.mubr.msk.f32.gmra.mrb[58].mxu0 %vm710_vm4, %v11473_v24  ;;  %v8855_v24 = vpack.c.bf16 %v3398_v21, %v3396_v39 }
 0x2ab   :  { %3079 = vmatprep.mubr.f32.mxu0 %v9786_v57 }
 0x2ac   :  { %8856 = vmatpush1.bf16.msra.mxu1 %v8855_v24 }
 0x2ae   :  { %7581 = vmatmul.mubr.msk.f32.gmra.mrb[60].mxu0 %vm710_vm4, %v11478_v45  ;;  %v3401_v45 = vld [vmem:[%s13577_s4 + $0x1c8] sm:$0xff] }
 0x2af   :  { %3085 = vmatprep.mubr.f32.mxu0 %v9786_v57 }
 0x2b2   :  { %7582 = vmatmul.mubr.msk.f32.gmra.mrb[62].mxu0 %vm710_vm4, %v11483_v42  ;;  %v3403_v42 = vld [vmem:[%s13577_s4 + $0x1d8] sm:$0xff] }
 0x2b3   :  { %3091 = vmatprep.mubr.f32.mxu0 %v9786_v57 }
 0x2b6   :  { %7583 = vmatmul.mubr.msk.f32.gmra.mrb[64].mxu0 %vm710_vm4, %v11488_v48  ;;  %v8857_v48 = vpack.c.bf16 %v3403_v42, %v3401_v45 }
 0x2b7   :  { %3097 = vmatprep.mubr.f32.mxu0 %v9786_v57 }
 0x2b8   :  { %8858 = vmatprep.subr.bf16.mxu1 %v8857_v48 }
 0x2ba   :  { %7584 = vmatmul.mubr.msk.f32.gmra.mrb[66].mxu0 %vm710_vm4, %v11493_v52  ;;  %v3400_v52 = vld [vmem:[%s13577_s4 + $0x1c0] sm:$0xff] }
 0x2bb   :  { %3103 = vmatprep.mubr.f32.mxu0 %v9786_v57 }
 0x2be   :  { %7585 = vmatmul.mubr.msk.f32.gmra.mrb[68].mxu0 %vm710_vm4, %v11498_v58  ;;  %v3402_v58 = vld [vmem:[%s13577_s4 + $0x1d0] sm:$0xff] }
 0x2bf   :  { %3109 = vmatprep.mubr.f32.mxu0 %v9786_v57 }
 0x2c2   :  { %7586 = vmatmul.mubr.msk.f32.gmra.mrb[70].mxu0 %vm710_vm4, %v11503_v1  ;;  %v8859_v1 = vpack.c.bf16 %v3402_v58, %v3400_v52 }
 0x2c3   :  { %3115 = vmatprep.mubr.f32.mxu0 %v9786_v57 }
 0x2c4   :  { %8860 = vmatpush1.bf16.msra.mxu1 %v8859_v1 }
 0x2c5   :  { %8861 = vmatprep.subr.bf16.mxu1 %v9784_v0 }
 0x2c6   :  { %7587 = vmatmul.mubr.msk.f32.gmra.mrb[72].mxu0 %vm710_vm4, %v11508_v4  ;;  %v3238_v4 = vlaneseq }
 0x2c7   :  { %3121 = vmatprep.mubr.f32.mxu0 %v9786_v57 }
 0x2ca   :  { %7588 = vmatmul.mubr.msk.f32.gmra.mrb[74].mxu0 %vm710_vm4, %v11513_v32  ;;  %v11821_v32 = vshrl.u32 %v3238_v4, 7 }
 0x2cb   :  { %3127 = vmatprep.mubr.f32.mxu0 %v9786_v57 }
 0x2ce   :  { %7589 = vmatmul.mubr.msk.f32.gmra.mrb[76].mxu0 %vm710_vm4, %v11518_v35  ;;  %v3240_v35 = vsub.s32 0, %v11821_v32 }
 0x2cf   :  { %3133 = vmatprep.mubr.f32.mxu0 %v9786_v57 }
 0x2d2   :  { %7590 = vmatmul.mubr.msk.f32.gmra.mrb[78].mxu0 %vm710_vm4, %v11523_v18  ;;  %v3236_v18 = vld [vmem:[%s13578_s3] sm:$0x3]  ;;  %s9787_s3 = smov 8  }
 0x2d3   :  { %3139 = vmatprep.mubr.f32.mxu0 %v9786_v57 }
 0x2d6   :  { %7591 = vmatmul.mubr.msk.f32.gmra.mrb[80].mxu0 %vm710_vm4, %v11546_v5  ;;  %v3244_v5 = vsub.s32 1, %v11821_v32 }
 0x2d7   :  { %3145 = vmatprep.mubr.f32.mxu0 %v9786_v57 }
 0x2da   :  { %7592 = vmatmul.mubr.msk.f32.gmra.mrb[82].mxu0 %vm710_vm4, %v11569_v38  ;;  %v11830_v38 = vrot.slane %v3236_v18, %v3240_v35 }
 0x2db   :  { %3151 = vmatprep.mubr.f32.mxu0 %v9786_v57 }
 0x2de   :  { %7593 = vmatmul.mubr.msk.f32.gmra.mrb[84].mxu0 %vm710_vm4, %v11586_v60  ;;  %v11834_v60 = vrot.slane %v3236_v18, %v3244_v5 }
 0x2df   :  { %3157 = vmatprep.mubr.f32.mxu0 %v9786_v57 }
 0x2e2   :  { %7594 = vmatmul.mubr.msk.f32.gmra.mrb[86].mxu0 %vm710_vm4, %v11603_v54 }
 0x2e3   :  { %3163 = vmatprep.mubr.f32.mxu0 %v9786_v57 }
 0x2e6   :  { %7595 = vmatmul.mubr.msk.f32.gmra.mrb[88].mxu0 %vm710_vm4, %v11620_v30 }
 0x2e7   :  { %3169 = vmatprep.mubr.f32.mxu0 %v9786_v57 }
 0x2ea   :  { %7596 = vmatmul.mubr.msk.f32.gmra.mrb[90].mxu0 %vm710_vm4, %v11637_v44 }
 0x2eb   :  { %3175 = vmatprep.mubr.f32.mxu0 %v9786_v57 }
 0x2ee   :  { %7597 = vmatmul.mubr.msk.f32.gmra.mrb[92].mxu0 %vm710_vm4, %v11654_v14 }
 0x2ef   :  { %3181 = vmatprep.mubr.f32.mxu0 %v9786_v57 }
 0x2f2   :  { %7598 = vmatmul.mubr.msk.f32.gmra.mrb[94].mxu0 %vm710_vm4, %v11671_v33 }
 0x369   :  { %v3045_v54 = vpop.f32.mrb[48].mxu0 }
 0x36a   :  { %v3248_v30 = vadd.f32 %v11830_v38, %v3045_v54  ;;  %v3047_v44 = vpop.f32.mrb[49].mxu0 }
 0x36b   :  { %v3249_v6 = vadd.f32 %v11834_v60, %v3047_v44 }
 0x36c   :  { %v3296_v12 = vmax.f32 %v3248_v30, 0.0 }
 0x36d   :  { %v3297_v22 = vmax.f32 %v3249_v6, 0.0  ;;  %v3051_v25 = vpop.f32.mrb[50].mxu0 }
 0x36e   :  { %v3250_v15 = vadd.f32 %v11830_v38, %v3051_v25  ;;  %v3053_v14 = vpop.f32.mrb[51].mxu0 }
 0x36f   :  { %v3251_v29 = vadd.f32 %v11834_v60, %v3053_v14  ;;  %7599 = vmatprep.mubr.msk.f32.mxu1 %vm3404_vm5, %v3297_v22 }
 0x370   :  { %3542 = vmatmul.mubr.f32.vlgmr.msra.gmra.mrb[192].mxu1 %v3296_v12  ;;  %v3298_v23 = vmax.f32 %v3250_v15, 0.0 }
 0x371   :  { %v3299_v19 = vmax.f32 %v3251_v29, 0.0  ;;  %v3057_v20 = vpop.f32.mrb[52].mxu0 }
 0x372   :  { %v3252_v13 = vadd.f32 %v11830_v38, %v3057_v20  ;;  %v3059_v63 = vpop.f32.mrb[53].mxu0 }
 0x373   :  { %v3253_v31 = vadd.f32 %v11834_v60, %v3059_v63  ;;  %7600 = vmatprep.mubr.msk.f32.mxu1 %vm3404_vm5, %v3299_v19 }
 0x374   :  { %3548 = vmatmul.mubr.f32.gmra.mrb[194].mxu1 %v3298_v23  ;;  %v3300_v37 = vmax.f32 %v3252_v13, 0.0 }
 0x375   :  { %v3301_v33 = vmax.f32 %v3253_v31, 0.0  ;;  %v3063_v17 = vpop.f32.mrb[54].mxu0 }
 0x376   :  { %v3254_v34 = vadd.f32 %v11830_v38, %v3063_v17  ;;  %v3065_v40 = vpop.f32.mrb[55].mxu0 }
 0x377   :  { %v3255_v47 = vadd.f32 %v11834_v60, %v3065_v40  ;;  %7601 = vmatprep.mubr.msk.f32.mxu1 %vm3404_vm5, %v3301_v33 }
 0x378   :  { %3554 = vmatmul.mubr.f32.gmra.mrb[196].mxu1 %v3300_v37  ;;  %v3302_v51 = vmax.f32 %v3254_v34, 0.0 }
 0x379   :  { %v3303_v53 = vmax.f32 %v3255_v47, 0.0  ;;  %v3069_v49 = vpop.f32.mrb[56].mxu0 }
 0x37a   :  { %v3256_v46 = vadd.f32 %v11830_v38, %v3069_v49  ;;  %v3071_v26 = vpop.f32.mrb[57].mxu0 }
 0x37b   :  { %v3257_v43 = vadd.f32 %v11834_v60, %v3071_v26  ;;  %7602 = vmatprep.mubr.msk.f32.mxu1 %vm3404_vm5, %v3303_v53 }
 0x37c   :  { %3560 = vmatmul.mubr.f32.gmra.mrb[198].mxu1 %v3302_v51  ;;  %v3304_v59 = vmax.f32 %v3256_v46, 0.0 }
 0x37d   :  { %v3305_v56 = vmax.f32 %v3257_v43, 0.0  ;;  %v3075_v3 = vpop.f32.mrb[58].mxu0 }
 0x37e   :  { %v3258_v27 = vadd.f32 %v11830_v38, %v3075_v3  ;;  %v3077_v61 = vpop.f32.mrb[59].mxu0 }
 0x37f   :  { %v3259_v16 = vadd.f32 %v11834_v60, %v3077_v61  ;;  %7603 = vmatprep.mubr.msk.f32.mxu1 %vm3404_vm5, %v3305_v56 }
 0x380   :  { %3566 = vmatmul.mubr.f32.gmra.mrb[200].mxu1 %v3304_v59  ;;  %v3306_v2 = vmax.f32 %v3258_v27, 0.0 }
 0x381   :  { %v3307_v10 = vmax.f32 %v3259_v16, 0.0  ;;  %v3081_v50 = vpop.f32.mrb[60].mxu0 }
 0x382   :  { %v3260_v28 = vadd.f32 %v11830_v38, %v3081_v50  ;;  %v3083_v36 = vpop.f32.mrb[61].mxu0 }
 0x383   :  { %v3261_v62 = vadd.f32 %v11834_v60, %v3083_v36  ;;  %7604 = vmatprep.mubr.msk.f32.mxu1 %vm3404_vm5, %v3307_v10 }
 0x384   :  { %3572 = vmatmul.mubr.f32.gmra.mrb[202].mxu1 %v3306_v2  ;;  %v3308_v11 = vmax.f32 %v3260_v28, 0.0 }
 0x385   :  { %v3309_v7 = vmax.f32 %v3261_v62, 0.0  ;;  %v3087_v8 = vpop.f32.mrb[62].mxu0 }
 0x386   :  { %v3262_v41 = vadd.f32 %v11830_v38, %v3087_v8  ;;  %v3089_v55 = vpop.f32.mrb[63].mxu0 }
 0x387   :  { %v3263_v9 = vadd.f32 %v11834_v60, %v3089_v55  ;;  %7605 = vmatprep.mubr.msk.f32.mxu1 %vm3404_vm5, %v3309_v7 }
 0x388   :  { %3578 = vmatmul.mubr.f32.gmra.mrb[204].mxu1 %v3308_v11  ;;  %v3310_v24 = vmax.f32 %v3262_v41, 0.0 }
 0x389   :  { %v3311_v39 = vmax.f32 %v3263_v9, 0.0  ;;  %v3093_v21 = vpop.f32.mrb[64].mxu0 }
 0x38a   :  { %v3264_v45 = vadd.f32 %v11830_v38, %v3093_v21  ;;  %v3095_v42 = vpop.f32.mrb[65].mxu0 }
 0x38b   :  { %v3265_v48 = vadd.f32 %v11834_v60, %v3095_v42  ;;  %7606 = vmatprep.mubr.msk.f32.mxu1 %vm3404_vm5, %v3311_v39 }
 0x38c   :  { %3584 = vmatmul.mubr.f32.gmra.mrb[206].mxu1 %v3310_v24  ;;  %v3312_v1 = vmax.f32 %v3264_v45, 0.0 }
 0x38d   :  { %v3313_v52 = vmax.f32 %v3265_v48, 0.0  ;;  %v3099_v58 = vpop.f32.mrb[66].mxu0 }
 0x38e   :  { %v3266_v18 = vadd.f32 %v11830_v38, %v3099_v58  ;;  %v3101_v54 = vpop.f32.mrb[67].mxu0 }
 0x38f   :  { %v3267_v30 = vadd.f32 %v11834_v60, %v3101_v54  ;;  %7607 = vmatprep.mubr.msk.f32.mxu1 %vm3404_vm5, %v3313_v52 }
 0x390   :  { %3590 = vmatmul.mubr.f32.gmra.mrb[208].mxu1 %v3312_v1  ;;  %v3314_v22 = vmax.f32 %v3266_v18, 0.0 }
 0x391   :  { %v3315_v44 = vmax.f32 %v3267_v30, 0.0  ;;  %v3105_v6 = vpop.f32.mrb[68].mxu0 }
 0x392   :  { %v3268_v25 = vadd.f32 %v11830_v38, %v3105_v6  ;;  %v3107_v12 = vpop.f32.mrb[69].mxu0 }
 0x393   :  { %v3269_v15 = vadd.f32 %v11834_v60, %v3107_v12  ;;  %7608 = vmatprep.mubr.msk.f32.mxu1 %vm3404_vm5, %v3315_v44 }
 0x394   :  { %3596 = vmatmul.mubr.f32.gmra.mrb[210].mxu1 %v3314_v22  ;;  %v3316_v19 = vmax.f32 %v3268_v25, 0.0 }
 0x395   :  { %v3317_v14 = vmax.f32 %v3269_v15, 0.0  ;;  %v3111_v29 = vpop.f32.mrb[70].mxu0 }
 0x396   :  { %v3270_v20 = vadd.f32 %v11830_v38, %v3111_v29  ;;  %v3113_v23 = vpop.f32.mrb[71].mxu0 }
 0x397   :  { %v3271_v13 = vadd.f32 %v11834_v60, %v3113_v23  ;;  %7609 = vmatprep.mubr.msk.f32.mxu1 %vm3404_vm5, %v3317_v14 }
 0x398   :  { %3602 = vmatmul.mubr.f32.gmra.mrb[212].mxu1 %v3316_v19  ;;  %v3318_v33 = vmax.f32 %v3270_v20, 0.0 }
 0x399   :  { %v3319_v63 = vmax.f32 %v3271_v13, 0.0  ;;  %v3117_v31 = vpop.f32.mrb[72].mxu0 }
 0x39a   :  { %v3272_v17 = vadd.f32 %v11830_v38, %v3117_v31  ;;  %v3119_v37 = vpop.f32.mrb[73].mxu0 }
 0x39b   :  { %v3273_v34 = vadd.f32 %v11834_v60, %v3119_v37  ;;  %7610 = vmatprep.mubr.msk.f32.mxu1 %vm3404_vm5, %v3319_v63 }
 0x39c   :  { %3608 = vmatmul.mubr.f32.gmra.mrb[214].mxu1 %v3318_v33  ;;  %v3320_v53 = vmax.f32 %v3272_v17, 0.0 }
 0x39d   :  { %v3321_v40 = vmax.f32 %v3273_v34, 0.0  ;;  %v3123_v47 = vpop.f32.mrb[74].mxu0 }
 0x39e   :  { %v3274_v49 = vadd.f32 %v11830_v38, %v3123_v47  ;;  %v3125_v51 = vpop.f32.mrb[75].mxu0 }
 0x39f   :  { %v3275_v46 = vadd.f32 %v11834_v60, %v3125_v51  ;;  %7611 = vmatprep.mubr.msk.f32.mxu1 %vm3404_vm5, %v3321_v40 }
 0x3a0   :  { %3614 = vmatmul.mubr.f32.gmra.mrb[216].mxu1 %v3320_v53  ;;  %v3322_v56 = vmax.f32 %v3274_v49, 0.0 }
 0x3a1   :  { %v3323_v26 = vmax.f32 %v3275_v46, 0.0  ;;  %v3129_v43 = vpop.f32.mrb[76].mxu0 }
 0x3a2   :  { %v3276_v3 = vadd.f32 %v11830_v38, %v3129_v43  ;;  %v3131_v59 = vpop.f32.mrb[77].mxu0 }
 0x3a3   :  { %v3277_v27 = vadd.f32 %v11834_v60, %v3131_v59  ;;  %7612 = vmatprep.mubr.msk.f32.mxu1 %vm3404_vm5, %v3323_v26 }
 0x3a4   :  { %3620 = vmatmul.mubr.f32.gmra.mrb[218].mxu1 %v3322_v56  ;;  %v3324_v10 = vmax.f32 %v3276_v3, 0.0 }
 0x3a5   :  { %v3325_v61 = vmax.f32 %v3277_v27, 0.0  ;;  %v3135_v16 = vpop.f32.mrb[78].mxu0 }
 0x3a6   :  { %v3278_v50 = vadd.f32 %v11830_v38, %v3135_v16  ;;  %v3137_v2 = vpop.f32.mrb[79].mxu0 }
 0x3a7   :  { %v3279_v28 = vadd.f32 %v11834_v60, %v3137_v2  ;;  %7613 = vmatprep.mubr.msk.f32.mxu1 %vm3404_vm5, %v3325_v61 }
 0x3a8   :  { %3626 = vmatmul.mubr.f32.gmra.mrb[220].mxu1 %v3324_v10  ;;  %v3326_v7 = vmax.f32 %v3278_v50, 0.0 }
 0x3a9   :  { %v3327_v36 = vmax.f32 %v3279_v28, 0.0  ;;  %v3141_v62 = vpop.f32.mrb[80].mxu0 }
 0x3aa   :  { %v3280_v8 = vadd.f32 %v11830_v38, %v3141_v62  ;;  %v3143_v11 = vpop.f32.mrb[81].mxu0 }
 0x3ab   :  { %v3281_v41 = vadd.f32 %v11834_v60, %v3143_v11  ;;  %7614 = vmatprep.mubr.msk.f32.mxu1 %vm3404_vm5, %v3327_v36 }
 0x3ac   :  { %3632 = vmatmul.mubr.f32.gmra.mrb[222].mxu1 %v3326_v7  ;;  %v3328_v39 = vmax.f32 %v3280_v8, 0.0 }
 0x3ad   :  { %v3329_v55 = vmax.f32 %v3281_v41, 0.0  ;;  %v3147_v9 = vpop.f32.mrb[82].mxu0 }
 0x3ae   :  { %v3282_v21 = vadd.f32 %v11830_v38, %v3147_v9  ;;  %v3149_v24 = vpop.f32.mrb[83].mxu0 }
 0x3af   :  { %v3283_v45 = vadd.f32 %v11834_v60, %v3149_v24  ;;  %7615 = vmatprep.mubr.msk.f32.mxu1 %vm3404_vm5, %v3329_v55 }
 0x3b0   :  { %3638 = vmatmul.mubr.f32.gmra.mrb[224].mxu1 %v3328_v39  ;;  %v3330_v52 = vmax.f32 %v3282_v21, 0.0 }
 0x3b1   :  { %v3331_v42 = vmax.f32 %v3283_v45, 0.0  ;;  %v3153_v48 = vpop.f32.mrb[84].mxu0 }
 0x3b2   :  { %v3284_v58 = vadd.f32 %v11830_v38, %v3153_v48  ;;  %v3155_v1 = vpop.f32.mrb[85].mxu0 }
 0x3b3   :  { %v3285_v18 = vadd.f32 %v11834_v60, %v3155_v1  ;;  %7616 = vmatprep.mubr.msk.f32.mxu1 %vm3404_vm5, %v3331_v42 }
 0x3b4   :  { %3644 = vmatmul.mubr.f32.gmra.mrb[226].mxu1 %v3330_v52  ;;  %v3332_v44 = vmax.f32 %v3284_v58, 0.0 }
 0x3b5   :  { %v3333_v54 = vmax.f32 %v3285_v18, 0.0  ;;  %v3159_v30 = vpop.f32.mrb[86].mxu0 }
 0x3b6   :  { %v3286_v6 = vadd.f32 %v11830_v38, %v3159_v30  ;;  %v3161_v22 = vpop.f32.mrb[87].mxu0 }
 0x3b7   :  { %v3287_v25 = vadd.f32 %v11834_v60, %v3161_v22  ;;  %7617 = vmatprep.mubr.msk.f32.mxu1 %vm3404_vm5, %v3333_v54 }
 0x3b8   :  { %3650 = vmatmul.mubr.f32.gmra.mrb[228].mxu1 %v3332_v44  ;;  %v3334_v14 = vmax.f32 %v3286_v6, 0.0 }
 0x3b9   :  { %v3335_v12 = vmax.f32 %v3287_v25, 0.0  ;;  %v3165_v15 = vpop.f32.mrb[88].mxu0 }
 0x3ba   :  { %v3288_v29 = vadd.f32 %v11830_v38, %v3165_v15  ;;  %v3167_v19 = vpop.f32.mrb[89].mxu0 }
 0x3bb   :  { %v3289_v20 = vadd.f32 %v11834_v60, %v3167_v19  ;;  %7618 = vmatprep.mubr.msk.f32.mxu1 %vm3404_vm5, %v3335_v12 }
 0x3bc   :  { %3656 = vmatmul.mubr.f32.gmra.mrb[230].mxu1 %v3334_v14  ;;  %v3336_v63 = vmax.f32 %v3288_v29, 0.0 }
 0x3bd   :  { %v3337_v23 = vmax.f32 %v3289_v20, 0.0  ;;  %v3171_v13 = vpop.f32.mrb[90].mxu0 }
 0x3be   :  { %v3290_v31 = vadd.f32 %v11830_v38, %v3171_v13  ;;  %v3173_v33 = vpop.f32.mrb[91].mxu0 }
 0x3bf   :  { %v3291_v17 = vadd.f32 %v11834_v60, %v3173_v33  ;;  %7619 = vmatprep.mubr.msk.f32.mxu1 %vm3404_vm5, %v3337_v23 }
 0x3c0   :  { %3662 = vmatmul.mubr.f32.gmra.mrb[232].mxu1 %v3336_v63  ;;  %v3338_v40 = vmax.f32 %v3290_v31, 0.0 }
 0x3c1   :  { %v3339_v37 = vmax.f32 %v3291_v17, 0.0  ;;  %v3177_v34 = vpop.f32.mrb[92].mxu0 }
 0x3c2   :  { %v3292_v47 = vadd.f32 %v11830_v38, %v3177_v34  ;;  %v3179_v53 = vpop.f32.mrb[93].mxu0 }
 0x3c3   :  { %v3293_v49 = vadd.f32 %v11834_v60, %v3179_v53  ;;  %7620 = vmatprep.mubr.msk.f32.mxu1 %vm3404_vm5, %v3339_v37 }
 0x3c4   :  { %3668 = vmatmul.mubr.f32.gmra.mrb[234].mxu1 %v3338_v40  ;;  %v3340_v26 = vmax.f32 %v3292_v47, 0.0 }
 0x3c5   :  { %v3341_v51 = vmax.f32 %v3293_v49, 0.0  ;;  %v3183_v46 = vpop.f32.mrb[94].mxu0 }
 0x3c6   :  { %v3294_v43 = vadd.f32 %v11830_v38, %v3183_v46  ;;  %v3185_v56 = vpop.f32.mrb[95].mxu0 }
 0x3c7   :  { %v3295_v3 = vadd.f32 %v11834_v60, %v3185_v56  ;;  %7621 = vmatprep.mubr.msk.f32.mxu1 %vm3404_vm5, %v3341_v51 }
 0x3c8   :  { %3674 = vmatmul.mubr.f32.gmra.mrb[236].mxu1 %v3340_v26  ;;  %v3342_v27 = vmax.f32 %v3294_v43, 0.0 }
 0x3c9   :  { %v3343_v59 = vmax.f32 %v3295_v3, 0.0 }
 0x3cb   :  { %7622 = vmatprep.mubr.msk.f32.mxu1 %vm3404_vm5, %v3343_v59 }
 0x3cc   :  { %3680 = vmatmul.mubr.f32.gmra.mrb[238].mxu1 %v3342_v27 }
 0x443   :  { %v11908_v61 = vpop.f32.mrb[192].mxu1 }
 0x444   :  { %v3545_v16 = vpop.f32.mrb[193].mxu1 }
 0x445   :  { %v9620_v10 = vpack.i.bf16 %v3545_v16, %v11908_v61 }
 0x447   :  { %9621 = vrot.lane.b32.xlu0 %v9620_v10, %s9787_s3  ;;  %v11912_v38 = vpop.f32.mrb[194].mxu1 }
 0x448   :  { %v3551_v50 = vpop.f32.mrb[195].mxu1 }
 0x449   :  { %v9625_v60 = vpack.i.bf16 %v3551_v50, %v11912_v38 }
 0x44b   :  { %9626 = vrot.lane.b32.xlu0 %v9625_v60, %s9787_s3  ;;  %v11916_v2 = vpop.f32.mrb[196].mxu1 }
 0x44c   :  { %v3557_v28 = vpop.f32.mrb[197].mxu1 }
 0x44d   :  { %v9630_v36 = vpack.i.bf16 %v3557_v28, %v11916_v2 }
 0x44f   :  { %9631 = vrot.lane.b32.xlu1 %v9630_v36, %s9787_s3  ;;  %v11920_v62 = vpop.f32.mrb[198].mxu1 }
 0x450   :  { %v3563_v7 = vpop.f32.mrb[199].mxu1 }
 0x451   :  { %v9635_v8 = vpack.i.bf16 %v3563_v7, %v11920_v62 }
 0x453   :  { %9636 = vrot.lane.b32.xlu1 %v9635_v8, %s9787_s3  ;;  %v11924_v11 = vpop.f32.mrb[200].mxu1 }
 0x454   :  { %v3569_v41 = vpop.f32.mrb[201].mxu1 }
 0x455   :  { %v9640_v55 = vpack.i.bf16 %v3569_v41, %v11924_v11 }
 0x457   :  { %9641 = vrot.lane.b32.xlu0 %v9640_v55, %s9787_s3  ;;  %v11928_v9 = vpop.f32.mrb[202].mxu1 }
 0x458   :  { %v3575_v39 = vpop.f32.mrb[203].mxu1 }
 0x459   :  { %v9645_v21 = vpack.i.bf16 %v3575_v39, %v11928_v9 }
 0x45b   :  { %9646 = vrot.lane.b32.xlu1 %v9645_v21, %s9787_s3  ;;  %v11932_v24 = vpop.f32.mrb[204].mxu1  ;;  %v3904_v21 = vld [vmem:[%s13579_s5 + $0x8] sm:$0xff] }
 0x45c   :  { %v3581_v45 = vpop.f32.mrb[205].mxu1  ;;  %7623 = vmatprep.mubr.msk.f32.mxu1 %vm3927_vm6, %v3904_v21 }
 0x45d   :  { %v9650_v42 = vpack.i.bf16 %v3581_v45, %v11932_v24 }
 0x45f   :  { %9651 = vrot.lane.b32.xlu0 %v9650_v42, %s9787_s3  ;;  %v11936_v48 = vpop.f32.mrb[206].mxu1 }
 0x460   :  { %v3587_v52 = vpop.f32.mrb[207].mxu1 }
 0x461   :  { %v9655_v58 = vpack.i.bf16 %v3587_v52, %v11936_v48 }
 0x463   :  { %9656 = vrot.lane.b32.xlu1 %v9655_v58, %s9787_s3  ;;  %v11940_v1 = vpop.f32.mrb[208].mxu1 }
 0x464   :  { %v3593_v18 = vpop.f32.mrb[209].mxu1 }
 0x465   :  { %v9660_v54 = vpack.i.bf16 %v3593_v18, %v11940_v1 }
 0x467   :  { %9661 = vrot.lane.b32.xlu0 %v9660_v54, %s9787_s3  ;;  %v11944_v30 = vpop.f32.mrb[210].mxu1 }
 0x468   :  { %v3599_v44 = vpop.f32.mrb[211].mxu1 }
 0x469   :  { %v9665_v6 = vpack.i.bf16 %v3599_v44, %v11944_v30 }
 0x46b   :  { %9666 = vrot.lane.b32.xlu1 %v9665_v6, %s9787_s3  ;;  %v11948_v22 = vpop.f32.mrb[212].mxu1 }
 0x46c   :  { %v3605_v25 = vpop.f32.mrb[213].mxu1 }
 0x46d   :  { %v9670_v12 = vpack.i.bf16 %v3605_v25, %v11948_v22 }
 0x46f   :  { %9671 = vrot.lane.b32.xlu0 %v9670_v12, %s9787_s3  ;;  %v11952_v15 = vpop.f32.mrb[214].mxu1 }
 0x470   :  { %v3611_v14 = vpop.f32.mrb[215].mxu1 }
 0x471   :  { %v9675_v29 = vpack.i.bf16 %v3611_v14, %v11952_v15 }
 0x473   :  { %9676 = vrot.lane.b32.xlu1 %v9675_v29, %s9787_s3  ;;  %v11956_v19 = vpop.f32.mrb[216].mxu1 }
 0x474   :  { %v3617_v20 = vpop.f32.mrb[217].mxu1 }
 0x475   :  { %v9680_v23 = vpack.i.bf16 %v3617_v20, %v11956_v19 }
 0x477   :  { %9681 = vrot.lane.b32.xlu0 %v9680_v23, %s9787_s3  ;;  %v11960_v13 = vpop.f32.mrb[218].mxu1 }
 0x478   :  { %v3623_v63 = vpop.f32.mrb[219].mxu1 }
 0x479   :  { %v9685_v31 = vpack.i.bf16 %v3623_v63, %v11960_v13 }
 0x47b   :  { %9686 = vrot.lane.b32.xlu1 %v9685_v31, %s9787_s3  ;;  %v11964_v33 = vpop.f32.mrb[220].mxu1 }
 0x47c   :  { %v3629_v17 = vpop.f32.mrb[221].mxu1 }
 0x47d   :  { %v9690_v37 = vpack.i.bf16 %v3629_v17, %v11964_v33 }
 0x47f   :  { %9691 = vrot.lane.b32.xlu0 %v9690_v37, %s9787_s3  ;;  %v11968_v34 = vpop.f32.mrb[222].mxu1 }
 0x480   :  { %v3635_v40 = vpop.f32.mrb[223].mxu1 }
 0x481   :  { %v9695_v47 = vpack.i.bf16 %v3635_v40, %v11968_v34 }
 0x483   :  { %9696 = vrot.lane.b32.xlu1 %v9695_v47, %s9787_s3  ;;  %v11972_v53 = vpop.f32.mrb[224].mxu1 }
 0x484   :  { %v3641_v49 = vpop.f32.mrb[225].mxu1 }
 0x485   :  { %v9700_v51 = vpack.i.bf16 %v3641_v49, %v11972_v53 }
 0x487   :  { %9701 = vrot.lane.b32.xlu0 %v9700_v51, %s9787_s3  ;;  %v11976_v46 = vpop.f32.mrb[226].mxu1 }
 0x488   :  { %v3647_v26 = vpop.f32.mrb[227].mxu1 }
 0x489   :  { %v9705_v43 = vpack.i.bf16 %v3647_v26, %v11976_v46 }
 0x48b   :  { %9706 = vrot.lane.b32.xlu1 %v9705_v43, %s9787_s3  ;;  %v11980_v56 = vpop.f32.mrb[228].mxu1 }
 0x48c   :  { %v3653_v3 = vpop.f32.mrb[229].mxu1 }
 0x48d   :  { %v9710_v59 = vpack.i.bf16 %v3653_v3, %v11980_v56 }
 0x48f   :  { %9711 = vrot.lane.b32.xlu0 %v9710_v59, %s9787_s3  ;;  %v11984_v27 = vpop.f32.mrb[230].mxu1 }
 0x490   :  { %v3659_v16 = vpop.f32.mrb[231].mxu1 }
 0x491   :  { %v9715_v10 = vpack.i.bf16 %v3659_v16, %v11984_v27 }
 0x493   :  { %9716 = vrot.lane.b32.xlu1 %v9715_v10, %s9787_s3  ;;  %v11988_v50 = vpop.f32.mrb[232].mxu1 }
 0x494   :  { %v3665_v60 = vpop.f32.mrb[233].mxu1 }
 0x495   :  { %v9720_v28 = vpack.i.bf16 %v3665_v60, %v11988_v50 }
 0x497   :  { %9721 = vrot.lane.b32.xlu0 %v9720_v28, %s9787_s3  ;;  %v11992_v36 = vpop.f32.mrb[234].mxu1 }
 0x498   :  { %v3671_v7 = vpop.f32.mrb[235].mxu1 }
 0x499   :  { %v9725_v8 = vpack.i.bf16 %v3671_v7, %v11992_v36 }
 0x49b   :  { %9726 = vrot.lane.b32.xlu1 %v9725_v8, %s9787_s3  ;;  %v11996_v41 = vpop.f32.mrb[236].mxu1 }
 0x49c   :  { %v3677_v55 = vpop.f32.mrb[237].mxu1 }
 0x49d   :  { %v9730_v39 = vpack.i.bf16 %v3677_v55, %v11996_v41 }
 0x49f   :  { %9731 = vrot.lane.b32.xlu0 %v9730_v39, %s9787_s3  ;;  %v12003_v45 = vpop.f32.mrb[238].mxu1 }
 0x4a0   :  { %v3683_v42 = vpop.f32.mrb[239].mxu1 }
 0x4a1   :  { %v9735_v52 = vpack.i.bf16 %v3683_v42, %v12003_v45 }
 0x4a3   :  { %9736 = vrot.lane.b32.xlu1 %v9735_v52, %s9787_s3 }
 0x4b9   :  { %v9622_v58 = vpop.permute.xlu0 %9621 }
 0x4ba   :  { %v9624_v18 = vunpack.i.h.bf16 %v9622_v58  ;;  %v9623_v54 = vunpack.i.l.bf16 %v9622_v58 }
 0x4bc   :  { %v3831_v6 = vsel %vm3830_vm7, %v9623_v54, %v9624_v18 }
 0x4bd   :  { %v9627_v44 = vpop.permute.xlu0 %9626  ;;  %v3879_v29 = vmax.f32 %v11908_v61, %v3831_v6 }
 0x4be   :  { %v9629_v25 = vunpack.i.h.bf16 %v9627_v44  ;;  %v9628_v12 = vunpack.i.l.bf16 %v9627_v44 }
 0x4c0   :  { %v3832_v14 = vsel %vm3830_vm7, %v9628_v12, %v9629_v25 }
 0x4c1   :  { %v3880_v20 = vmax.f32 %v11912_v38, %v3832_v14  ;;  %v9632_v23 = vpop.permute.xlu1 %9631 }
 0x4c2   :  { %v9634_v63 = vunpack.i.h.bf16 %v9632_v23  ;;  %v9633_v31 = vunpack.i.l.bf16 %v9632_v23 }
 0x4c3   :  { %v12012_v17 = vpack.c.bf16 %v3880_v20, %v3879_v29 }
 0x4c4   :  { %v3833_v40 = vsel %vm3830_vm7, %v9633_v31, %v9634_v63 }
 0x4c5   :  { %8863 = vmatpush1.bf16.msra.mxu1 %v12012_v17  ;;  %v9637_v37 = vpop.permute.xlu1 %9636  ;;  %v3881_v61 = vmax.f32 %v11916_v2, %v3833_v40 }
 0x4c6   :  { %v9639_v47 = vunpack.i.h.bf16 %v9637_v37  ;;  %v9638_v49 = vunpack.i.l.bf16 %v9637_v37  ;;  %8864 = vmatprep.subr.bf16.mxu1 %v9784_v0 }
 0x4c8   :  { %v3834_v51 = vsel %vm3830_vm7, %v9638_v49, %v9639_v47 }
 0x4c9   :  { %v3882_v38 = vmax.f32 %v11920_v62, %v3834_v51  ;;  %v9642_v26 = vpop.permute.xlu0 %9641 }
 0x4ca   :  { %v9644_v43 = vunpack.i.h.bf16 %v9642_v26  ;;  %v9643_v3 = vunpack.i.l.bf16 %v9642_v26 }
 0x4cb   :  { %v12020_v59 = vpack.c.bf16 %v3882_v38, %v3881_v61 }
 0x4cc   :  { %v3835_v10 = vsel %vm3830_vm7, %v9643_v3, %v9644_v43 }
 0x4cd   :  { %8866 = vmatpush1.bf16.msra.mxu1 %v12020_v59  ;;  %v9647_v16 = vpop.permute.xlu1 %9646  ;;  %v3883_v2 = vmax.f32 %v11924_v11, %v3835_v10 }
 0x4ce   :  { %v9649_v60 = vunpack.i.h.bf16 %v9647_v16  ;;  %v9648_v28 = vunpack.i.l.bf16 %v9647_v16  ;;  %8867 = vmatprep.subr.bf16.mxu1 %v9784_v0 }
 0x4d0   :  { %v3836_v7 = vsel %vm3830_vm7, %v9648_v28, %v9649_v60 }
 0x4d1   :  { %v3884_v62 = vmax.f32 %v11928_v9, %v3836_v7  ;;  %v9652_v8 = vpop.permute.xlu0 %9651 }
 0x4d2   :  { %v9654_v55 = vunpack.i.h.bf16 %v9652_v8  ;;  %v9653_v39 = vunpack.i.l.bf16 %v9652_v8 }
 0x4d3   :  { %v12028_v21 = vpack.c.bf16 %v3884_v62, %v3883_v2 }
 0x4d4   :  { %v3837_v52 = vsel %vm3830_vm7, %v9653_v39, %v9654_v55 }
 0x4d5   :  { %8869 = vmatpush1.bf16.msra.mxu1 %v12028_v21  ;;  %v9657_v42 = vpop.permute.xlu1 %9656  ;;  %v3885_v11 = vmax.f32 %v11932_v24, %v3837_v52 }
 0x4d6   :  { %v9659_v58 = vunpack.i.h.bf16 %v9657_v42  ;;  %v9658_v18 = vunpack.i.l.bf16 %v9657_v42  ;;  %8870 = vmatprep.subr.bf16.mxu1 %v9784_v0 }
 0x4d8   :  { %v3838_v54 = vsel %vm3830_vm7, %v9658_v18, %v9659_v58 }
 0x4d9   :  { %v3886_v9 = vmax.f32 %v11936_v48, %v3838_v54  ;;  %v9662_v44 = vpop.permute.xlu0 %9661 }
 0x4da   :  { %v9664_v6 = vunpack.i.h.bf16 %v9662_v44  ;;  %v9663_v25 = vunpack.i.l.bf16 %v9662_v44 }
 0x4db   :  { %v12036_v12 = vpack.c.bf16 %v3886_v9, %v3885_v11 }
 0x4dc   :  { %v3839_v29 = vsel %vm3830_vm7, %v9663_v25, %v9664_v6 }
 0x4dd   :  { %8872 = vmatpush1.bf16.msra.mxu1 %v12036_v12  ;;  %v9667_v14 = vpop.permute.xlu1 %9666  ;;  %v3887_v24 = vmax.f32 %v11940_v1, %v3839_v29 }
 0x4de   :  { %v9669_v20 = vunpack.i.h.bf16 %v9667_v14  ;;  %v9668_v23 = vunpack.i.l.bf16 %v9667_v14  ;;  %8873 = vmatprep.subr.bf16.mxu1 %v9784_v0 }
 0x4e0   :  { %v3840_v63 = vsel %vm3830_vm7, %v9668_v23, %v9669_v20 }
 0x4e1   :  { %v3888_v48 = vmax.f32 %v11944_v30, %v3840_v63  ;;  %v9672_v31 = vpop.permute.xlu0 %9671 }
 0x4e2   :  { %v9674_v37 = vunpack.i.h.bf16 %v9672_v31  ;;  %v9673_v40 = vunpack.i.l.bf16 %v9672_v31 }
 0x4e3   :  { %v12044_v47 = vpack.c.bf16 %v3888_v48, %v3887_v24 }
 0x4e4   :  { %v3841_v51 = vsel %vm3830_vm7, %v9673_v40, %v9674_v37 }
 0x4e5   :  { %8875 = vmatpush1.bf16.msra.mxu1 %v12044_v47  ;;  %v9677_v49 = vpop.permute.xlu1 %9676  ;;  %v3889_v1 = vmax.f32 %v11948_v22, %v3841_v51 }
 0x4e6   :  { %v9679_v61 = vunpack.i.h.bf16 %v9677_v49  ;;  %v9678_v38 = vunpack.i.l.bf16 %v9677_v49  ;;  %8876 = vmatprep.subr.bf16.mxu1 %v9784_v0 }
 0x4e8   :  { %v3842_v26 = vsel %vm3830_vm7, %v9678_v38, %v9679_v61 }
 0x4e9   :  { %v3890_v30 = vmax.f32 %v11952_v15, %v3842_v26  ;;  %v9682_v43 = vpop.permute.xlu0 %9681 }
 0x4ea   :  { %v9684_v3 = vunpack.i.h.bf16 %v9682_v43  ;;  %v9683_v16 = vunpack.i.l.bf16 %v9682_v43 }
 0x4eb   :  { %v12052_v10 = vpack.c.bf16 %v3890_v30, %v3889_v1 }
 0x4ec   :  { %v3843_v28 = vsel %vm3830_vm7, %v9683_v16, %v9684_v3 }
 0x4ed   :  { %8878 = vmatpush1.bf16.msra.mxu1 %v12052_v10  ;;  %v9687_v60 = vpop.permute.xlu1 %9686  ;;  %v3891_v22 = vmax.f32 %v11956_v19, %v3843_v28 }
 0x4ee   :  { %v9689_v7 = vunpack.i.h.bf16 %v9687_v60  ;;  %v9688_v2 = vunpack.i.l.bf16 %v9687_v60  ;;  %8879 = vmatprep.subr.bf16.mxu1 %v9784_v0 }
 0x4f0   :  { %v3844_v62 = vsel %vm3830_vm7, %v9688_v2, %v9689_v7 }
 0x4f1   :  { %v3892_v15 = vmax.f32 %v11960_v13, %v3844_v62  ;;  %v9692_v8 = vpop.permute.xlu0 %9691 }
 0x4f2   :  { %v9694_v55 = vunpack.i.h.bf16 %v9692_v8  ;;  %v9693_v39 = vunpack.i.l.bf16 %v9692_v8 }
 0x4f3   :  { %v12060_v42 = vpack.c.bf16 %v3892_v15, %v3891_v22 }
 0x4f4   :  { %v3845_v58 = vsel %vm3830_vm7, %v9693_v39, %v9694_v55 }
 0x4f5   :  { %8881 = vmatpush1.bf16.msra.mxu1 %v12060_v42  ;;  %v9697_v52 = vpop.permute.xlu1 %9696  ;;  %v3893_v19 = vmax.f32 %v11964_v33, %v3845_v58 }
 0x4f6   :  { %v9699_v18 = vunpack.i.h.bf16 %v9697_v52  ;;  %v9698_v54 = vunpack.i.l.bf16 %v9697_v52  ;;  %8882 = vmatprep.subr.bf16.mxu1 %v9784_v0 }
 0x4f8   :  { %v3846_v11 = vsel %vm3830_vm7, %v9698_v54, %v9699_v18  ;;  %v3903_v54 = vld [vmem:[%s13579_s5] sm:$0xff] }
 0x4f9   :  { %v3894_v13 = vmax.f32 %v11968_v34, %v3846_v11  ;;  %v9702_v9 = vpop.permute.xlu0 %9701  ;;  %v3906_v11 = vld [vmem:[%s13579_s5 + $0x18] sm:$0xff] }
 0x4fa   :  { %v9704_v44 = vunpack.i.h.bf16 %v9702_v9  ;;  %v9703_v6 = vunpack.i.l.bf16 %v9702_v9  ;;  %v3914_v9 = vld [vmem:[%s13579_s5 + $0x58] sm:$0xff] }
 0x4fb   :  { %v12068_v25 = vpack.c.bf16 %v3894_v13, %v3893_v19  ;;  %v3910_v19 = vld [vmem:[%s13579_s5 + $0x38] sm:$0xff]  ;;  %v3912_v13 = vld [vmem:[%s13579_s5 + $0x48] sm:$0xff] }
 0x4fc   :  { %v3847_v29 = vsel %vm3830_vm7, %v9703_v6, %v9704_v44  ;;  %v3916_v44 = vld [vmem:[%s13579_s5 + $0x68] sm:$0xff]  ;;  %v3918_v6 = vld [vmem:[%s13579_s5 + $0x78] sm:$0xff] }
 0x4fd   :  { %8884 = vmatpush1.bf16.msra.mxu1 %v12068_v25  ;;  %v9707_v14 = vpop.permute.xlu1 %9706  ;;  %v3895_v33 = vmax.f32 %v11972_v53, %v3847_v29  ;;  %v3922_v29 = vld [vmem:[%s13579_s5 + $0x98] sm:$0xff] }
 0x4fe   :  { %v9709_v20 = vunpack.i.h.bf16 %v9707_v14  ;;  %v9708_v23 = vunpack.i.l.bf16 %v9707_v14  ;;  %8885 = vmatprep.subr.bf16.mxu1 %v9784_v0  ;;  %v3920_v14 = vld [vmem:[%s13579_s5 + $0x88] sm:$0xff] }
 0x500   :  { %v3848_v63 = vsel %vm3830_vm7, %v9708_v23, %v9709_v20  ;;  %v3924_v20 = vld [vmem:[%s13579_s5 + $0xa8] sm:$0xff]  ;;  %v3923_v23 = vld [vmem:[%s13579_s5 + $0xa0] sm:$0xff] }
 0x501   :  { %v3896_v34 = vmax.f32 %v11976_v46, %v3848_v63  ;;  %v9712_v24 = vpop.permute.xlu0 %9711  ;;  %v3926_v63 = vld [vmem:[%s13579_s5 + $0xb8] sm:$0xff] }
 0x502   :  { %v9714_v48 = vunpack.i.h.bf16 %v9712_v24  ;;  %v9713_v31 = vunpack.i.l.bf16 %v9712_v24  ;;  %v7635_v24 = vld [vmem:[%s13579_s5 + $0xc0] sm:$0xff] }
 0x503   :  { %v12076_v37 = vpack.c.bf16 %v3896_v34, %v3895_v33  ;;  %v3925_v33 = vld [vmem:[%s13579_s5 + $0xb0] sm:$0xff]  ;;  %v7636_v34 = vld [vmem:[%s13579_s5 + $0xc8] sm:$0xff] }
 0x504   :  { %v3849_v49 = vsel %vm3830_vm7, %v9713_v31, %v9714_v48  ;;  %v7638_v48 = vld [vmem:[%s13579_s5 + $0xd8] sm:$0xff]  ;;  %v7637_v31 = vld [vmem:[%s13579_s5 + $0xd0] sm:$0xff] }
 0x505   :  { %8887 = vmatpush1.bf16.msra.mxu1 %v12076_v37  ;;  %v9717_v40 = vpop.permute.xlu1 %9716  ;;  %v3897_v53 = vmax.f32 %v11980_v56, %v3849_v49  ;;  %v7642_v49 = vld [vmem:[%s13579_s5 + $0xf8] sm:$0xff] }
 0x506   :  { %v9719_v51 = vunpack.i.h.bf16 %v9717_v40  ;;  %v9718_v61 = vunpack.i.l.bf16 %v9717_v40  ;;  %8888 = vmatprep.subr.bf16.mxu1 %v9784_v0  ;;  %v7639_v40 = vld [vmem:[%s13579_s5 + $0xe0] sm:$0xff] }
 0x508   :  { %v3850_v38 = vsel %vm3830_vm7, %v9718_v61, %v9719_v51  ;;  %v7641_v51 = vld [vmem:[%s13579_s5 + $0xf0] sm:$0xff]  ;;  %v7644_v61 = vld [vmem:[%s13579_s5 + $0x108] sm:$0xff] }
 0x509   :  { %v3898_v46 = vmax.f32 %v11984_v27, %v3850_v38  ;;  %v9722_v26 = vpop.permute.xlu0 %9721  ;;  %v7643_v38 = vld [vmem:[%s13579_s5 + $0x100] sm:$0xff] }
 0x50a   :  { %v9724_v1 = vunpack.i.h.bf16 %v9722_v26  ;;  %v9723_v30 = vunpack.i.l.bf16 %v9722_v26  ;;  %v7648_v26 = vld [vmem:[%s13579_s5 + $0x128] sm:$0xff] }
 0x50b   :  { %v12084_v43 = vpack.c.bf16 %v3898_v46, %v3897_v53  ;;  %v7646_v53 = vld [vmem:[%s13579_s5 + $0x118] sm:$0xff]  ;;  %v7645_v46 = vld [vmem:[%s13579_s5 + $0x110] sm:$0xff] }
 0x50c   :  { %v3851_v16 = vsel %vm3830_vm7, %v9723_v30, %v9724_v1  ;;  %v7647_v1 = vld [vmem:[%s13579_s5 + $0x120] sm:$0xff]  ;;  %v7650_v30 = vld [vmem:[%s13579_s5 + $0x138] sm:$0xff] }
 0x50d   :  { %8890 = vmatpush1.bf16.msra.mxu1 %v12084_v43  ;;  %v9727_v3 = vpop.permute.xlu1 %9726  ;;  %v3899_v56 = vmax.f32 %v11988_v50, %v3851_v16  ;;  %v7651_v16 = vld [vmem:[%s13579_s5 + $0x140] sm:$0xff] }
 0x50e   :  { %v9729_v60 = vunpack.i.h.bf16 %v9727_v3  ;;  %v9728_v28 = vunpack.i.l.bf16 %v9727_v3  ;;  %8891 = vmatprep.subr.bf16.mxu1 %v9784_v0  ;;  %v7652_v3 = vld [vmem:[%s13579_s5 + $0x148] sm:$0xff] }
 0x510   :  { %v3852_v7 = vsel %vm3830_vm7, %v9728_v28, %v9729_v60  ;;  %v7654_v60 = vld [vmem:[%s13579_s5 + $0x158] sm:$0xff]  ;;  %v7653_v28 = vld [vmem:[%s13579_s5 + $0x150] sm:$0xff] }
 0x511   :  { %v3900_v27 = vmax.f32 %v11992_v36, %v3852_v7  ;;  %v9732_v2 = vpop.permute.xlu0 %9731  ;;  %v7656_v7 = vld [vmem:[%s13579_s5 + $0x168] sm:$0xff] }
 0x512   :  { %v9734_v62 = vunpack.i.h.bf16 %v9732_v2  ;;  %v9733_v22 = vunpack.i.l.bf16 %v9732_v2  ;;  %v7657_v2 = vld [vmem:[%s13579_s5 + $0x170] sm:$0xff] }
 0x513   :  { %v12092_v15 = vpack.c.bf16 %v3900_v27, %v3899_v56  ;;  %v7655_v56 = vld [vmem:[%s13579_s5 + $0x160] sm:$0xff]  ;;  %v7658_v27 = vld [vmem:[%s13579_s5 + $0x178] sm:$0xff] }
 0x514   :  { %v3853_v55 = vsel %vm3830_vm7, %v9733_v22, %v9734_v62  ;;  %v7679_v62 = vld [vmem:[%s13580_s6 + $0x40] sm:$0xff] }
 0x515   :  { %8893 = vmatpush1.bf16.msra.mxu1 %v12092_v15  ;;  %v9737_v8 = vpop.permute.xlu1 %9736  ;;  %v3901_v50 = vmax.f32 %v11996_v41, %v3853_v55  ;;  %v3905_v41 = vld [vmem:[%s13579_s5 + $0x10] sm:$0xff] }
 0x516   :  { %v9739_v39 = vunpack.i.h.bf16 %v9737_v8  ;;  %v9738_v52 = vunpack.i.l.bf16 %v9737_v8  ;;  %8894 = vmatprep.subr.bf16.mxu1 %v9784_v0  ;;  %v4287_v8 = vld [vmem:[%s13580_s6] sm:$0xff] }
 0x517   :  { %8188 = vmatprep.mubr.msk.f32.mxu0 %vm129_vm0, %v4287_v8 }
 0x518   :  { %v3854_v58 = vsel %vm3830_vm7, %v9738_v52, %v9739_v39 }
 0x519   :  { %v3902_v36 = vmax.f32 %v12003_v45, %v3854_v58  ;;  %v3908_v45 = vld [vmem:[%s13579_s5 + $0x28] sm:$0xff] }
 0x51b   :  { %v12100_v18 = vpack.c.bf16 %v3902_v36, %v3901_v50 }
 0x51d   :  { %8896 = vmatpush1.bf16.msra.mxu1 %v12100_v18 }
 0x51e   :  { %8897 = vmatprep.subr.bf16.mxu1 %v9784_v0 }
 0x520   :  { %4029 = vmatmul.mubr.f32.vlgmr.msra.gmra.mrb[240].mxu1 %v3903_v54 }
 0x521   :  { %8899 = vmatpush1.bf16.msra.mxu1 %v12012_v17  ;;  %7624 = vmatprep.mubr.msk.f32.mxu1 %vm3927_vm6, %v3906_v11  ;;  %v3907_v17 = vld [vmem:[%s13579_s5 + $0x20] sm:$0xff] }
 0x522   :  { %8900 = vmatprep.subr.bf16.mxu1 %v9784_v0 }
 0x524   :  { %4034 = vmatmul.mubr.f32.gmra.mrb[242].mxu1 %v3905_v41 }
 0x525   :  { %8902 = vmatpush1.bf16.msra.mxu1 %v12020_v59  ;;  %7625 = vmatprep.mubr.msk.f32.mxu1 %vm3927_vm6, %v3908_v45  ;;  %v3909_v59 = vld [vmem:[%s13579_s5 + $0x30] sm:$0xff] }
 0x526   :  { %8903 = vmatprep.subr.bf16.mxu1 %v9784_v0 }
 0x528   :  { %4039 = vmatmul.mubr.f32.gmra.mrb[244].mxu1 %v3907_v17 }
 0x529   :  { %8905 = vmatpush1.bf16.msra.mxu1 %v12028_v21  ;;  %7626 = vmatprep.mubr.msk.f32.mxu1 %vm3927_vm6, %v3910_v19  ;;  %v3911_v21 = vld [vmem:[%s13579_s5 + $0x40] sm:$0xff] }
 0x52a   :  { %8906 = vmatprep.subr.bf16.mxu1 %v9784_v0 }
 0x52c   :  { %4044 = vmatmul.mubr.f32.gmra.mrb[246].mxu1 %v3909_v59 }
 0x52d   :  { %8908 = vmatpush1.bf16.msra.mxu1 %v12036_v12  ;;  %7627 = vmatprep.mubr.msk.f32.mxu1 %vm3927_vm6, %v3912_v13  ;;  %v3913_v12 = vld [vmem:[%s13579_s5 + $0x50] sm:$0xff] }
 0x52e   :  { %8909 = vmatprep.subr.bf16.mxu1 %v9784_v0 }
 0x530   :  { %4049 = vmatmul.mubr.f32.gmra.mrb[248].mxu1 %v3911_v21 }
 0x531   :  { %8911 = vmatpush1.bf16.msra.mxu1 %v12044_v47  ;;  %7628 = vmatprep.mubr.msk.f32.mxu1 %vm3927_vm6, %v3914_v9  ;;  %v3915_v47 = vld [vmem:[%s13579_s5 + $0x60] sm:$0xff] }
 0x532   :  { %8912 = vmatprep.subr.bf16.mxu1 %v9784_v0 }
 0x534   :  { %4054 = vmatmul.mubr.f32.gmra.mrb[250].mxu1 %v3913_v12 }
 0x535   :  { %8914 = vmatpush1.bf16.msra.mxu1 %v12052_v10  ;;  %7629 = vmatprep.mubr.msk.f32.mxu1 %vm3927_vm6, %v3916_v44  ;;  %v3917_v10 = vld [vmem:[%s13579_s5 + $0x70] sm:$0xff] }
 0x536   :  { %8915 = vmatprep.subr.bf16.mxu1 %v9784_v0 }
 0x538   :  { %4059 = vmatmul.mubr.f32.gmra.mrb[252].mxu1 %v3915_v47 }
 0x539   :  { %8917 = vmatpush1.bf16.msra.mxu1 %v12060_v42  ;;  %7630 = vmatprep.mubr.msk.f32.mxu1 %vm3927_vm6, %v3918_v6  ;;  %v3919_v42 = vld [vmem:[%s13579_s5 + $0x80] sm:$0xff] }
 0x53a   :  { %8918 = vmatprep.subr.bf16.mxu1 %v9784_v0 }
 0x53c   :  { %4064 = vmatmul.mubr.f32.gmra.mrb[254].mxu1 %v3917_v10 }
 0x53d   :  { %8920 = vmatpush1.bf16.msra.mxu1 %v12068_v25  ;;  %7631 = vmatprep.mubr.msk.f32.mxu1 %vm3927_vm6, %v3920_v14  ;;  %v3921_v25 = vld [vmem:[%s13579_s5 + $0x90] sm:$0xff] }
 0x53e   :  { %8921 = vmatprep.subr.bf16.mxu1 %v9784_v0 }
 0x540   :  { %4069 = vmatmul.mubr.f32.gmra.mrb[0].mxu1 %v3919_v42 }
 0x541   :  { %8923 = vmatpush1.bf16.msra.mxu1 %v12076_v37  ;;  %7632 = vmatprep.mubr.msk.f32.mxu1 %vm3927_vm6, %v3922_v29  ;;  %v7640_v37 = vld [vmem:[%s13579_s5 + $0xe8] sm:$0xff] }
 0x542   :  { %8924 = vmatprep.subr.bf16.mxu1 %v9784_v0 }
 0x544   :  { %4074 = vmatmul.mubr.f32.gmra.mrb[2].mxu1 %v3921_v25 }
 0x545   :  { %8926 = vmatpush1.bf16.msra.mxu1 %v12084_v43  ;;  %7633 = vmatprep.mubr.msk.f32.mxu1 %vm3927_vm6, %v3924_v20  ;;  %v7649_v43 = vld [vmem:[%s13579_s5 + $0x130] sm:$0xff] }
 0x546   :  { %8927 = vmatprep.subr.bf16.mxu1 %v9784_v0 }
 0x548   :  { %4079 = vmatmul.mubr.f32.gmra.mrb[4].mxu1 %v3923_v23 }
 0x549   :  { %8929 = vmatpush1.bf16.msra.mxu1 %v12092_v15  ;;  %7634 = vmatprep.mubr.msk.f32.mxu1 %vm3927_vm6, %v3926_v63 }
 0x54a   :  { %8930 = vmatprep.subr.bf16.mxu1 %v9784_v0 }
 0x54c   :  { %4084 = vmatmul.mubr.f32.gmra.mrb[6].mxu1 %v3925_v33 }
 0x54d   :  { %8932 = vmatpush1.bf16.msra.mxu1 %v12100_v18  ;;  %7659 = vmatprep.mubr.msk.f32.mxu1 %vm3927_vm6, %v7636_v34 }
 0x550   :  { %4215 = vmatmul.mubr.f32.vlgmr.msra.gmra.mrb[8].mxu1 %v7635_v24 }
 0x551   :  { %7660 = vmatprep.mubr.msk.f32.mxu1 %vm3927_vm6, %v7638_v48 }
 0x554   :  { %4220 = vmatmul.mubr.f32.gmra.mrb[10].mxu1 %v7637_v31 }
 0x555   :  { %7661 = vmatprep.mubr.msk.f32.mxu1 %vm3927_vm6, %v7640_v37 }
 0x558   :  { %4225 = vmatmul.mubr.f32.gmra.mrb[12].mxu1 %v7639_v40 }
 0x559   :  { %7662 = vmatprep.mubr.msk.f32.mxu1 %vm3927_vm6, %v7642_v49 }
 0x55c   :  { %4230 = vmatmul.mubr.f32.gmra.mrb[14].mxu1 %v7641_v51 }
 0x55d   :  { %7663 = vmatprep.mubr.msk.f32.mxu1 %vm3927_vm6, %v7644_v61 }
 0x560   :  { %4235 = vmatmul.mubr.f32.gmra.mrb[16].mxu1 %v7643_v38 }
 0x561   :  { %7664 = vmatprep.mubr.msk.f32.mxu1 %vm3927_vm6, %v7646_v53 }
 0x564   :  { %4240 = vmatmul.mubr.f32.gmra.mrb[18].mxu1 %v7645_v46 }
 0x565   :  { %7665 = vmatprep.mubr.msk.f32.mxu1 %vm3927_vm6, %v7648_v26 }
 0x568   :  { %4245 = vmatmul.mubr.f32.gmra.mrb[20].mxu1 %v7647_v1 }
 0x569   :  { %7666 = vmatprep.mubr.msk.f32.mxu1 %vm3927_vm6, %v7650_v30 }
 0x56c   :  { %4250 = vmatmul.mubr.f32.gmra.mrb[22].mxu1 %v7649_v43 }
 0x56d   :  { %7667 = vmatprep.mubr.msk.f32.mxu1 %vm3927_vm6, %v7652_v3 }
 0x570   :  { %4255 = vmatmul.mubr.f32.gmra.mrb[24].mxu1 %v7651_v16 }
 0x571   :  { %7668 = vmatprep.mubr.msk.f32.mxu1 %vm3927_vm6, %v7654_v60 }
 0x574   :  { %4260 = vmatmul.mubr.f32.gmra.mrb[26].mxu1 %v7653_v28 }
 0x575   :  { %7669 = vmatprep.mubr.msk.f32.mxu1 %vm3927_vm6, %v7656_v7 }
 0x578   :  { %4265 = vmatmul.mubr.f32.gmra.mrb[28].mxu1 %v7655_v56 }
 0x579   :  { %7670 = vmatprep.mubr.msk.f32.mxu1 %vm3927_vm6, %v7658_v27 }
 0x57c   :  { %4270 = vmatmul.mubr.f32.gmra.mrb[30].mxu1 %v7657_v2 }
 0x57d   :  { %8224 = vmatprep.mubr.msk.f32.mxu1 %vm129_vm0, %v7679_v62 }
 0x5f3   :  { %v4030_v22 = vpop.f32.mrb[240].mxu1 }
 0x5f4   :  { %v4032_v15 = vpop.f32.mrb[241].mxu1 }
 0x5f7   :  { %v4035_v55 = vpop.f32.mrb[242].mxu1 }
 0x5f8   :  { %v4037_v39 = vpop.f32.mrb[243].mxu1 }
 0x5fb   :  { %v4040_v52 = vpop.f32.mrb[244].mxu1 }
 0x5fc   :  { %v4042_v58 = vpop.f32.mrb[245].mxu1 }
 0x5fd   :  { %v7696_v58 = vld [vmem:[%s13581_s7 + $0xf8] sm:$0xff] }
 0x5ff   :  { %v4045_v50 = vpop.f32.mrb[246].mxu1 }
 0x600   :  { %v4047_v36 = vpop.f32.mrb[247].mxu1 }
 0x603   :  { %v4050_v18 = vpop.f32.mrb[248].mxu1 }
 0x604   :  { %v4052_v54 = vpop.f32.mrb[249].mxu1 }
 0x607   :  { %v4055_v11 = vpop.f32.mrb[250].mxu1 }
 0x608   :  { %v4057_v41 = vpop.f32.mrb[251].mxu1 }
 0x609   :  { %v7695_v41 = vld [vmem:[%s13581_s7 + $0xf0] sm:$0xff] }
 0x60b   :  { %v4060_v45 = vpop.f32.mrb[252].mxu1 }
 0x60c   :  { %v4062_v17 = vpop.f32.mrb[253].mxu1 }
 0x60d   :  { %v7680_v17 = vld [vmem:[%s13580_s6 + $0x48] sm:$0xff] }
 0x60f   :  { %v4065_v19 = vpop.f32.mrb[254].mxu1 }
 0x610   :  { %v4067_v59 = vpop.f32.mrb[255].mxu1 }
 0x611   :  { %v7681_v59 = vld [vmem:[%s13580_s6 + $0x50] sm:$0xff] }
 0x613   :  { %v4070_v13 = vpop.f32.mrb[0].mxu1 }
 0x614   :  { %v4072_v21 = vpop.f32.mrb[1].mxu1 }
 0x617   :  { %v4075_v9 = vpop.f32.mrb[2].mxu1 }
 0x618   :  { %v4077_v12 = vpop.f32.mrb[3].mxu1 }
 0x619   :  { %v7702_v12 = vld [vmem:[%s13581_s7 + $0x128] sm:$0xff] }
 0x61b   :  { %v12299_v44 = vpop.f32.mrb[4].mxu1 }
 0x61c   :  { %v4082_v47 = vpop.f32.mrb[5].mxu1 }
 0x61d   :  { %v4290_v47 = vld [vmem:[%s13580_s6 + $0x18] sm:$0xff] }
 0x61f   :  { %v12301_v6 = vpop.f32.mrb[6].mxu1 }
 0x620   :  { %v4087_v10 = vpop.f32.mrb[7].mxu1 }
 0x621   :  { %v4291_v10 = vld [vmem:[%s13580_s6 + $0x20] sm:$0xff] }
 0x623   :  { %v4216_v14 = vpop.f32.mrb[8].mxu1 }
 0x624   :  { %v4275_v42 = vmax.f32 %v4030_v22, %v4216_v14  ;;  %v4218_v29 = vpop.f32.mrb[9].mxu1 }
 0x625   :  { %v7701_v29 = vld [vmem:[%s13581_s7 + $0x120] sm:$0xff] }
 0x627   :  { %v4221_v25 = vpop.f32.mrb[10].mxu1 }
 0x628   :  { %v4276_v20 = vmax.f32 %v4035_v55, %v4221_v25  ;;  %v4223_v23 = vpop.f32.mrb[11].mxu1  ;;  %v7684_v25 = vld [vmem:[%s13580_s6 + $0x68] sm:$0xff] }
 0x629   :  { %v7685_v23 = vld [vmem:[%s13580_s6 + $0x70] sm:$0xff] }
 0x62a   :  { %v12303_v63 = vpack.c.bf16 %v4276_v20, %v4275_v42  ;;  %v7699_v42 = vld [vmem:[%s13581_s7 + $0x110] sm:$0xff]  ;;  %v4292_v20 = vld [vmem:[%s13580_s6 + $0x28] sm:$0xff] }
 0x62b   :  { %v4226_v33 = vpop.f32.mrb[12].mxu1 }
 0x62c   :  { %v4277_v34 = vmax.f32 %v4040_v52, %v4226_v33  ;;  %8934 = vmatprep.subr.bf16.mxu0 %v12303_v63  ;;  %8958 = vmatprep.subr.bf16.mxu1 %v12303_v63  ;;  %v4228_v24 = vpop.f32.mrb[13].mxu1  ;;  %v4293_v33 = vld [vmem:[%s13580_s6 + $0x30] sm:$0xff] }
 0x62d   :  { %8936 = vmatpush3.bf16.msra.mxu0 %v12303_v63  ;;  %8960 = vmatpush3.bf16.msra.mxu1 %v12303_v63  ;;  %v7704_v24 = vld [vmem:[%s13581_s7 + $0x138] sm:$0xff] }
 0x62f   :  { %v4231_v48 = vpop.f32.mrb[14].mxu1 }
 0x630   :  { %v4278_v31 = vmax.f32 %v4045_v50, %v4231_v48  ;;  %v4233_v37 = vpop.f32.mrb[15].mxu1  ;;  %v7698_v50 = vld [vmem:[%s13581_s7 + $0x108] sm:$0xff] }
 0x631   :  { %v7706_v48 = vld [vmem:[%s13581_s7 + $0x148] sm:$0xff]  ;;  %v7703_v37 = vld [vmem:[%s13581_s7 + $0x130] sm:$0xff] }
 0x632   :  { %v12309_v40 = vpack.c.bf16 %v4278_v31, %v4277_v34  ;;  %v8987_v34 = vpack.c.bf16 %v7701_v29, %v7699_v42  ;;  %v7686_v31 = vld [vmem:[%s13580_s6 + $0x78] sm:$0xff]  ;;  %v7801_v42 = vld [vmem:[%s13580_s6 + $0xf0] sm:$0xff]  ;;  %v7849_v29 = vld [vmem:[%s13580_s6 + $0x100] sm:$0xff] }
 0x633   :  { %v4236_v49 = vpop.f32.mrb[16].mxu1 }
 0x634   :  { %v4279_v51 = vmax.f32 %v4050_v18, %v4236_v49  ;;  %8938 = vmatprep.subr.bf16.mxu0 %v12309_v40  ;;  %8962 = vmatprep.subr.bf16.mxu1 %v12309_v40  ;;  %v4238_v61 = vpop.f32.mrb[17].mxu1  ;;  %v7705_v49 = vld [vmem:[%s13581_s7 + $0x140] sm:$0xff] }
 0x635   :  { %8940 = vmatpush3.bf16.msra.mxu0 %v12309_v40  ;;  %8964 = vmatpush3.bf16.msra.mxu1 %v12309_v40  ;;  %v7708_v61 = vld [vmem:[%s13581_s7 + $0x158] sm:$0xff] }
 0x637   :  { %v4241_v38 = vpop.f32.mrb[18].mxu1 }
 0x638   :  { %v4280_v53 = vmax.f32 %v4055_v11, %v4241_v38  ;;  %v4243_v46 = vpop.f32.mrb[19].mxu1  ;;  %v8981_v11 = vpack.c.bf16 %v7698_v50, %v7696_v58  ;;  %v7710_v38 = vld [vmem:[%s13581_s7 + $0x168] sm:$0xff]  ;;  %v7720_v50 = vld [vmem:[%s13581_s7 + $0x1b8] sm:$0xff] }
 0x639   :  { %v8989_v46 = vpack.c.bf16 %v7706_v48, %v7704_v24  ;;  %v7742_v58 = vld [vmem:[%s13580_s6 + $0x88] sm:$0xff]  ;;  %v4427_v48 = vld [vmem:[%s13581_s7 + $0x18] sm:$0xff] }
 0x63a   :  { %v12315_v26 = vpack.c.bf16 %v4280_v53, %v4279_v51  ;;  %v4294_v51 = vld [vmem:[%s13580_s6 + $0x38] sm:$0xff]  ;;  %v7741_v53 = vld [vmem:[%s13580_s6 + $0x80] sm:$0xff]  ;;  %v4425_v24 = vld [vmem:[%s13581_s7 + $0x8] sm:$0xff] }
 0x63b   :  { %v4246_v1 = vpop.f32.mrb[20].mxu1 }
 0x63c   :  { %v4281_v30 = vmax.f32 %v4060_v45, %v4246_v1  ;;  %8942 = vmatprep.subr.bf16.mxu0 %v12315_v26  ;;  %8966 = vmatprep.subr.bf16.mxu1 %v12315_v26  ;;  %v4248_v43 = vpop.f32.mrb[21].mxu1  ;;  %v7697_v45 = vld [vmem:[%s13581_s7 + $0x100] sm:$0xff]  ;;  %v8991_v1 = vpack.c.bf16 %v7705_v49, %v7703_v37  ;;  %v4426_v49 = vld [vmem:[%s13581_s7 + $0x10] sm:$0xff] }
 0x63d   :  { %8944 = vmatpush3.bf16.msra.mxu0 %v12315_v26  ;;  %8968 = vmatpush3.bf16.msra.mxu1 %v12315_v26  ;;  %v8983_v21 = vpack.c.bf16 %v7697_v45, %v7695_v41  ;;  %v7707_v43 = vld [vmem:[%s13581_s7 + $0x150] sm:$0xff]  ;;  %v4424_v37 = vld [vmem:[%s13581_s7] sm:$0xff] }
 0x63e   :  { %v7719_v45 = vld [vmem:[%s13581_s7 + $0x1b0] sm:$0xff] }
 0x63f   :  { %v4251_v3 = vpop.f32.mrb[22].mxu1 }
 0x640   :  { %v4282_v16 = vmax.f32 %v4065_v19, %v4251_v3  ;;  %v4253_v60 = vpop.f32.mrb[23].mxu1  ;;  %v4288_v19 = vld [vmem:[%s13580_s6 + $0x8] sm:$0xff]  ;;  %v7709_v3 = vld [vmem:[%s13581_s7 + $0x160] sm:$0xff] }
 0x641   :  { %v7714_v60 = vld [vmem:[%s13581_s7 + $0x188] sm:$0xff] }
 0x642   :  { %v12321_v28 = vpack.c.bf16 %v4282_v16, %v4281_v30  ;;  %v8993_v30 = vpack.c.bf16 %v7710_v38, %v7708_v61  ;;  %v7712_v16 = vld [vmem:[%s13581_s7 + $0x178] sm:$0xff]  ;;  %v9011_v38 = vpack.c.bf16 %v4426_v49, %v4424_v37 }
 0x643   :  { %v4256_v7 = vpop.f32.mrb[24].mxu1  ;;  %v4431_v61 = vld [vmem:[%s13581_s7 + $0x38] sm:$0xff] }
 0x644   :  { %v4283_v56 = vmax.f32 %v4070_v13, %v4256_v7  ;;  %8946 = vmatprep.subr.bf16.mxu0 %v12321_v28  ;;  %8970 = vmatprep.subr.bf16.mxu1 %v12321_v28  ;;  %v4258_v27 = vpop.f32.mrb[25].mxu1  ;;  %v4289_v13 = vld [vmem:[%s13580_s6 + $0x10] sm:$0xff]  ;;  %v8995_v7 = vpack.c.bf16 %v7709_v3, %v7707_v43  ;;  %v7760_v37 = vld [vmem:[%s13581_s7 + $0x1f8] sm:$0xff] }
 0x645   :  { %8948 = vmatpush3.bf16.msra.mxu0 %v12321_v28  ;;  %8972 = vmatpush3.bf16.msra.mxu1 %v12321_v28  ;;  %v7711_v27 = vld [vmem:[%s13581_s7 + $0x170] sm:$0xff] }
 0x647   :  { %v4261_v2 = vpop.f32.mrb[26].mxu1 }
 0x648   :  { %v4284_v62 = vmax.f32 %v4075_v9, %v4261_v2  ;;  %v4263_v22 = vpop.f32.mrb[27].mxu1  ;;  %v7700_v9 = vld [vmem:[%s13581_s7 + $0x118] sm:$0xff]  ;;  %v7713_v2 = vld [vmem:[%s13581_s7 + $0x180] sm:$0xff] }
 0x649   :  { %v8985_v14 = vpack.c.bf16 %v7702_v12, %v7700_v9  ;;  %v7718_v22 = vld [vmem:[%s13581_s7 + $0x1a8] sm:$0xff]  ;;  %v7747_v9 = vld [vmem:[%s13580_s6 + $0xb0] sm:$0xff]  ;;  %v7748_v12 = vld [vmem:[%s13580_s6 + $0xb8] sm:$0xff] }
 0x64a   :  { %v12327_v15 = vpack.c.bf16 %v4284_v62, %v4283_v56  ;;  %v8997_v56 = vpack.c.bf16 %v7714_v60, %v7712_v16  ;;  %v7716_v62 = vld [vmem:[%s13581_s7 + $0x198] sm:$0xff]  ;;  %v4433_v16 = vld [vmem:[%s13581_s7 + $0x48] sm:$0xff] }
 0x64b   :  { %v4266_v8 = vpop.f32.mrb[28].mxu1  ;;  %v4435_v60 = vld [vmem:[%s13581_s7 + $0x58] sm:$0xff] }
 0x64c   :  { %v4285_v55 = vmax.f32 %v12299_v44, %v4266_v8  ;;  %8950 = vmatprep.subr.bf16.mxu0 %v12327_v15  ;;  %8974 = vmatprep.subr.bf16.mxu1 %v12327_v15  ;;  %v4268_v39 = vpop.f32.mrb[29].mxu1  ;;  %v7682_v44 = vld [vmem:[%s13580_s6 + $0x58] sm:$0xff]  ;;  %v8999_v8 = vpack.c.bf16 %v7713_v2, %v7711_v27  ;;  %v9017_v2 = vpack.c.bf16 %v4435_v60, %v4433_v16  ;;  %v7761_v16 = vld [vmem:[%s13581_s7 + $0x200] sm:$0xff]  ;;  %v7763_v60 = vld [vmem:[%s13581_s7 + $0x210] sm:$0xff] }
 0x64d   :  { %8952 = vmatpush3.bf16.msra.mxu0 %v12327_v15  ;;  %8976 = vmatpush3.bf16.msra.mxu1 %v12327_v15  ;;  %v7715_v39 = vld [vmem:[%s13581_s7 + $0x190] sm:$0xff] }
 0x64f   :  { %v4271_v52 = vpop.f32.mrb[30].mxu1 }
 0x650   :  { %v4286_v36 = vmax.f32 %v12301_v6, %v4271_v52  ;;  %v4273_v18 = vpop.f32.mrb[31].mxu1  ;;  %v7683_v6 = vld [vmem:[%s13580_s6 + $0x60] sm:$0xff] }
 0x651   :  { %v7717_v52 = vld [vmem:[%s13581_s7 + $0x1a0] sm:$0xff]  ;;  %v7743_v18 = vld [vmem:[%s13580_s6 + $0x90] sm:$0xff] }
 0x652   :  { %v12341_v54 = vpack.c.bf16 %v4286_v36, %v4285_v55  ;;  %v9001_v55 = vpack.c.bf16 %v7718_v22, %v7716_v62  ;;  %v7722_v36 = vld [vmem:[%s13581_s7 + $0x1c8] sm:$0xff]  ;;  %v4432_v62 = vld [vmem:[%s13581_s7 + $0x40] sm:$0xff]  ;;  %v4434_v22 = vld [vmem:[%s13581_s7 + $0x50] sm:$0xff] }
 0x653   :  { %v9005_v41 = vpack.c.bf16 %v7722_v36, %v7720_v50  ;;  %v9019_v50 = vpack.c.bf16 %v4434_v22, %v4432_v62  ;;  %v5911_v62 = vld [vmem:[%s13582_s9 + $0x18] sm:$0xff]  ;;  %v5908_v22 = vld [vmem:[%s13582_s9] sm:$0xff] }
 0x654   :  { %8954 = vmatprep.subr.bf16.mxu0 %v12341_v54  ;;  %8978 = vmatprep.subr.bf16.mxu1 %v12341_v54 }
 0x655   :  { %8956 = vmatpush3.bf16.msra.mxu0 %v12341_v54  ;;  %8980 = vmatpush3.bf16.msra.mxu1 %v12341_v54 }
 0x656   :  { %9038 = vmatprep.subr.bf16.mxu1 %v12303_v63  ;;  %8982 = vmatprep.subr.bf16.mxu0 %v8981_v11  ;;  %v9003_v11 = vpack.c.bf16 %v7717_v52, %v7715_v39  ;;  %v4437_v39 = vld [vmem:[%s13581_s7 + $0x68] sm:$0xff]  ;;  %v4439_v52 = vld [vmem:[%s13581_s7 + $0x78] sm:$0xff] }
 0x658   :  { %8225 = vmatmul.mubr.msk.f32.vlgmr.msra.gmra.mrb[32].mxu1 %vm129_vm0, %v7680_v17  ;;  %8189 = vmatmul.mubr.msk.f32.vlgmr.msra.gmra.mrb[96].mxu0 %vm129_vm0, %v4288_v19  ;;  %v7721_v17 = vld [vmem:[%s13581_s7 + $0x1c0] sm:$0xff]  ;;  %v7744_v19 = vld [vmem:[%s13580_s6 + $0x98] sm:$0xff] }
 0x659   :  { %9040 = vmatpush3.bf16.msra.mxu1 %v12303_v63  ;;  %8227 = vmatprep.mubr.msk.f32.mxu1 %vm129_vm0, %v7681_v59  ;;  %v7745_v59 = vld [vmem:[%s13580_s6 + $0xa0] sm:$0xff] }
 0x65a   :  { %9042 = vmatprep.subr.bf16.mxu1 %v12309_v40  ;;  %8191 = vmatprep.mubr.msk.f32.mxu0 %vm129_vm0, %v4289_v13  ;;  %v9007_v13 = vpack.c.bf16 %v7721_v17, %v7719_v45 }
 0x65b   :  { %8984 = vmatpush1.bf16.msra.mxu0 %v8983_v21  ;;  %v7746_v21 = vld [vmem:[%s13580_s6 + $0xa8] sm:$0xff] }
 0x65c   :  { %8228 = vmatmul.mubr.msk.f32.gmra.mrb[34].mxu1 %vm129_vm0, %v7682_v44  ;;  %8192 = vmatmul.mubr.msk.f32.gmra.mrb[98].mxu0 %vm129_vm0, %v4290_v47  ;;  %v7795_v44 = vld [vmem:[%s13580_s6 + $0xc0] sm:$0xff]  ;;  %v7796_v47 = vld [vmem:[%s13580_s6 + $0xc8] sm:$0xff] }
 0x65d   :  { %9044 = vmatpush3.bf16.msra.mxu1 %v12309_v40  ;;  %8230 = vmatprep.mubr.msk.f32.mxu1 %vm129_vm0, %v7683_v6  ;;  %v7797_v6 = vld [vmem:[%s13580_s6 + $0xd0] sm:$0xff] }
 0x65e   :  { %9046 = vmatprep.subr.bf16.mxu1 %v12315_v26  ;;  %8194 = vmatprep.mubr.msk.f32.mxu0 %vm129_vm0, %v4291_v10  ;;  %v7798_v10 = vld [vmem:[%s13580_s6 + $0xd8] sm:$0xff] }
 0x65f   :  { %8986 = vmatprep.subr.bf16.mxu0 %v8985_v14  ;;  %v7799_v14 = vld [vmem:[%s13580_s6 + $0xe0] sm:$0xff] }
 0x660   :  { %8231 = vmatmul.mubr.msk.f32.gmra.mrb[36].mxu1 %vm129_vm0, %v7684_v25  ;;  %8195 = vmatmul.mubr.msk.f32.gmra.mrb[100].mxu0 %vm129_vm0, %v4292_v20  ;;  %v7851_v25 = vld [vmem:[%s13580_s6 + $0x110] sm:$0xff] }
 0x661   :  { %9048 = vmatpush3.bf16.msra.mxu1 %v12315_v26  ;;  %8233 = vmatprep.mubr.msk.f32.mxu1 %vm129_vm0, %v7685_v23  ;;  %v7855_v20 = vld [vmem:[%s13580_s6 + $0x130] sm:$0xff]  ;;  %v7856_v23 = vld [vmem:[%s13580_s6 + $0x138] sm:$0xff] }
 0x662   :  { %9050 = vmatprep.subr.bf16.mxu1 %v12321_v28  ;;  %8197 = vmatprep.mubr.msk.f32.mxu0 %vm129_vm0, %v4293_v33  ;;  %v7724_v33 = vld [vmem:[%s13581_s7 + $0x1d8] sm:$0xff] }
 0x663   :  { %8988 = vmatpush1.bf16.msra.mxu0 %v8987_v34  ;;  %v7723_v34 = vld [vmem:[%s13581_s7 + $0x1d0] sm:$0xff] }
 0x664   :  { %8234 = vmatmul.mubr.msk.f32.gmra.mrb[38].mxu1 %vm129_vm0, %v7686_v31  ;;  %8198 = vmatmul.mubr.msk.f32.gmra.mrb[102].mxu0 %vm129_vm0, %v4294_v51  ;;  %v9009_v31 = vpack.c.bf16 %v4427_v48, %v4425_v24  ;;  %v4429_v51 = vld [vmem:[%s13581_s7 + $0x28] sm:$0xff] }
 0x665   :  { %9052 = vmatpush3.bf16.msra.mxu1 %v12321_v28  ;;  %8260 = vmatprep.mubr.msk.f32.mxu1 %vm129_vm0, %v7741_v53  ;;  %v4453_v48 = vld [vmem:[%s13581_s7 + $0xe8] sm:$0xff] }
 0x666   :  { %9054 = vmatprep.subr.bf16.mxu1 %v12327_v15  ;;  %8990 = vmatprep.subr.bf16.mxu0 %v8989_v46  ;;  %v9013_v46 = vpack.c.bf16 %v4431_v61, %v4429_v51  ;;  %v4452_v51 = vld [vmem:[%s13581_s7 + $0xe0] sm:$0xff] }
 0x667   :  { %8992 = vmatpush1.bf16.msra.mxu0 %v8991_v1  ;;  %4712 = vmatprep.mubr.f32.mxu0 %v9786_v57  ;;  %v4428_v1 = vld [vmem:[%s13581_s7 + $0x20] sm:$0xff] }
 0x668   :  { %8994 = vmatprep.subr.bf16.mxu0 %v8993_v30  ;;  %v4430_v30 = vld [vmem:[%s13581_s7 + $0x30] sm:$0xff] }
 0x669   :  { %9056 = vmatpush3.bf16.msra.mxu1 %v12327_v15 }
 0x66a   :  { %9058 = vmatprep.subr.bf16.mxu1 %v12341_v54 }
 0x66b   :  { %8996 = vmatpush1.bf16.msra.mxu0 %v8995_v7 }
 0x66c   :  { %8998 = vmatprep.subr.bf16.mxu0 %v8997_v56  ;;  %v9015_v56 = vpack.c.bf16 %v4430_v30, %v4428_v1  ;;  %v7762_v1 = vld [vmem:[%s13581_s7 + $0x208] sm:$0xff]  ;;  %v7764_v30 = vld [vmem:[%s13581_s7 + $0x218] sm:$0xff] }
 0x66d   :  { %9060 = vmatpush3.bf16.msra.mxu1 %v12341_v54 }
 0x66e   :  { %9090 = vmatprep.subr.bf16.mxu1 %v12303_v63 }
 0x66f   :  { %9000 = vmatpush1.bf16.msra.mxu0 %v8999_v8 }
 0x670   :  { %8261 = vmatmul.mubr.msk.f32.vlgmr.msra.gmra.mrb[40].mxu1 %vm129_vm0, %v7742_v58  ;;  %9002 = vmatprep.subr.bf16.mxu0 %v9001_v55 }
 0x671   :  { %9092 = vmatpush3.bf16.msra.mxu1 %v12303_v63  ;;  %8263 = vmatprep.mubr.msk.f32.mxu1 %vm129_vm0, %v7743_v18  ;;  %v9021_v18 = vpack.c.bf16 %v4439_v52, %v4437_v39 }
 0x672   :  { %9094 = vmatprep.subr.bf16.mxu1 %v12309_v40 }
 0x673   :  { %9004 = vmatpush1.bf16.msra.mxu0 %v9003_v11  ;;  %v4436_v11 = vld [vmem:[%s13581_s7 + $0x60] sm:$0xff] }
 0x674   :  { %8264 = vmatmul.mubr.msk.f32.gmra.mrb[42].mxu1 %vm129_vm0, %v7744_v19  ;;  %9006 = vmatprep.subr.bf16.mxu0 %v9005_v41  ;;  %v4438_v41 = vld [vmem:[%s13581_s7 + $0x70] sm:$0xff]  ;;  %v4441_v19 = vld [vmem:[%s13581_s7 + $0x88] sm:$0xff] }
 0x675   :  { %9096 = vmatpush3.bf16.msra.mxu1 %v12309_v40  ;;  %8266 = vmatprep.mubr.msk.f32.mxu1 %vm129_vm0, %v7745_v59  ;;  %v4443_v59 = vld [vmem:[%s13581_s7 + $0x98] sm:$0xff] }
 0x676   :  { %9098 = vmatprep.subr.bf16.mxu1 %v12315_v26 }
 0x677   :  { %9008 = vmatpush1.bf16.msra.mxu0 %v9007_v13 }
 0x678   :  { %8267 = vmatmul.mubr.msk.f32.gmra.mrb[44].mxu1 %vm129_vm0, %v7746_v21  ;;  %4676 = vmatprep.subr.mxu0 %v7724_v33  ;;  %v9023_v21 = vpack.c.bf16 %v4438_v41, %v4436_v11  ;;  %v4450_v33 = vld [vmem:[%s13581_s7 + $0xd0] sm:$0xff]  ;;  %v7768_v11 = vld [vmem:[%s13581_s7 + $0x238] sm:$0xff] }
 0x679   :  { %9100 = vmatpush3.bf16.msra.mxu1 %v12315_v26  ;;  %8269 = vmatprep.mubr.msk.f32.mxu1 %vm129_vm0, %v7747_v9  ;;  %v9025_v9 = vpack.c.bf16 %v4443_v59, %v4441_v19  ;;  %v5912_v59 = vld [vmem:[%s13582_s9 + $0x20] sm:$0xff] }
 0x67a   :  { %9102 = vmatprep.subr.bf16.mxu1 %v12321_v28 }
 0x67b   :  { %4677 = vmatpush1.msra.mxu0 %v7723_v34 }
 0x67c   :  { %8270 = vmatmul.mubr.msk.f32.gmra.mrb[46].mxu1 %vm129_vm0, %v7748_v12  ;;  %9010 = vmatprep.subr.bf16.mxu0 %v9009_v31  ;;  %v4440_v12 = vld [vmem:[%s13581_s7 + $0x80] sm:$0xff]  ;;  %v7758_v31 = vld [vmem:[%s13581_s7 + $0x1e8] sm:$0xff] }
 0x67d   :  { %9104 = vmatpush3.bf16.msra.mxu1 %v12321_v28  ;;  %8296 = vmatprep.mubr.msk.f32.mxu1 %vm129_vm0, %v7795_v44  ;;  %v4442_v44 = vld [vmem:[%s13581_s7 + $0x90] sm:$0xff]  ;;  %v9061_v61 = vpack.c.bf16 %v7760_v37, %v7758_v31  ;;  %v7776_v37 = vld [vmem:[%s13581_s7 + $0x278] sm:$0xff] }
 0x67e   :  { %9106 = vmatprep.subr.bf16.mxu1 %v12327_v15 }
 0x681   :  { %9108 = vmatpush3.bf16.msra.mxu1 %v12327_v15 }
 0x682   :  { %9110 = vmatprep.subr.bf16.mxu1 %v12341_v54 }
 0x685   :  { %9112 = vmatpush3.bf16.msra.mxu1 %v12341_v54 }
 0x686   :  { %9142 = vmatprep.subr.bf16.mxu1 %v12303_v63 }
 0x688   :  { %8297 = vmatmul.mubr.msk.f32.vlgmr.msra.gmra.mrb[48].mxu1 %vm129_vm0, %v7796_v47 }
 0x689   :  { %9144 = vmatpush3.bf16.msra.mxu1 %v12303_v63  ;;  %8299 = vmatprep.mubr.msk.f32.mxu1 %vm129_vm0, %v7797_v6  ;;  %v7800_v63 = vld [vmem:[%s13580_s6 + $0xe8] sm:$0xff] }
 0x68a   :  { %9146 = vmatprep.subr.bf16.mxu1 %v12309_v40 }
 0x68c   :  { %8300 = vmatmul.mubr.msk.f32.gmra.mrb[50].mxu1 %vm129_vm0, %v7798_v10  ;;  %v4445_v10 = vld [vmem:[%s13581_s7 + $0xa8] sm:$0xff] }
 0x68d   :  { %9148 = vmatpush3.bf16.msra.mxu1 %v12309_v40  ;;  %8302 = vmatprep.mubr.msk.f32.mxu1 %vm129_vm0, %v7799_v14  ;;  %v7802_v40 = vld [vmem:[%s13580_s6 + $0xf8] sm:$0xff] }
 0x68e   :  { %9150 = vmatprep.subr.bf16.mxu1 %v12315_v26  ;;  %v4447_v14 = vld [vmem:[%s13581_s7 + $0xb8] sm:$0xff] }
 0x690   :  { %8303 = vmatmul.mubr.msk.f32.gmra.mrb[52].mxu1 %vm129_vm0, %v7800_v63 }
 0x691   :  { %9152 = vmatpush3.bf16.msra.mxu1 %v12315_v26  ;;  %8305 = vmatprep.mubr.msk.f32.mxu1 %vm129_vm0, %v7801_v42  ;;  %v7850_v26 = vld [vmem:[%s13580_s6 + $0x108] sm:$0xff] }
 0x692   :  { %9154 = vmatprep.subr.bf16.mxu1 %v12321_v28 }
 0x694   :  { %8306 = vmatmul.mubr.msk.f32.gmra.mrb[54].mxu1 %vm129_vm0, %v7802_v40  ;;  %v9027_v40 = vpack.c.bf16 %v4442_v44, %v4440_v12  ;;  %v5919_v12 = vld [vmem:[%s13582_s9 + $0x58] sm:$0xff]  ;;  %v9067_v44 = vpack.c.bf16 %v7763_v60, %v7761_v16  ;;  %v7773_v60 = vld [vmem:[%s13581_s7 + $0x260] sm:$0xff] }
 0x695   :  { %9156 = vmatpush3.bf16.msra.mxu1 %v12321_v28  ;;  %8332 = vmatprep.mubr.msk.f32.mxu1 %vm129_vm0, %v7849_v29  ;;  %v7852_v28 = vld [vmem:[%s13580_s6 + $0x118] sm:$0xff]  ;;  %v9029_v29 = vpack.c.bf16 %v4447_v14, %v4445_v10  ;;  %v7765_v10 = vld [vmem:[%s13581_s7 + $0x220] sm:$0xff]  ;;  %v7770_v14 = vld [vmem:[%s13581_s7 + $0x248] sm:$0xff] }
 0x696   :  { %9158 = vmatprep.subr.bf16.mxu1 %v12327_v15 }
 0x699   :  { %9160 = vmatpush3.bf16.msra.mxu1 %v12327_v15  ;;  %v7853_v15 = vld [vmem:[%s13580_s6 + $0x120] sm:$0xff] }
 0x69a   :  { %9162 = vmatprep.subr.bf16.mxu1 %v12341_v54 }
 0x69d   :  { %9164 = vmatpush3.bf16.msra.mxu1 %v12341_v54  ;;  %v7854_v54 = vld [vmem:[%s13580_s6 + $0x128] sm:$0xff] }
 0x6a0   :  { %8333 = vmatmul.mubr.msk.f32.vlgmr.msra.gmra.mrb[56].mxu1 %vm129_vm0, %v7850_v26  ;;  %v4444_v26 = vld [vmem:[%s13581_s7 + $0xa0] sm:$0xff] }
 0x6a1   :  { %8335 = vmatprep.mubr.msk.f32.mxu1 %vm129_vm0, %v7851_v25  ;;  %v4446_v25 = vld [vmem:[%s13581_s7 + $0xb0] sm:$0xff] }
 0x6a4   :  { %8336 = vmatmul.mubr.msk.f32.gmra.mrb[58].mxu1 %vm129_vm0, %v7852_v28  ;;  %v4449_v28 = vld [vmem:[%s13581_s7 + $0xc8] sm:$0xff] }
 0x6a5   :  { %8338 = vmatprep.mubr.msk.f32.mxu1 %vm129_vm0, %v7853_v15  ;;  %v4451_v15 = vld [vmem:[%s13581_s7 + $0xd8] sm:$0xff] }
 0x6a8   :  { %8339 = vmatmul.mubr.msk.f32.gmra.mrb[60].mxu1 %vm129_vm0, %v7854_v54  ;;  %v9031_v54 = vpack.c.bf16 %v4446_v25, %v4444_v26 }
 0x6a9   :  { %8341 = vmatprep.mubr.msk.f32.mxu1 %vm129_vm0, %v7855_v20  ;;  %v9033_v20 = vpack.c.bf16 %v4451_v15, %v4449_v28  ;;  %v5916_v28 = vld [vmem:[%s13582_s9 + $0x40] sm:$0xff]  ;;  %v5918_v15 = vld [vmem:[%s13582_s9 + $0x50] sm:$0xff] }
 0x6aa   :  { %v9203_v31 = vpack.c.bf16 %v5918_v15, %v5916_v28 }
 0x6ac   :  { %8342 = vmatmul.mubr.msk.f32.gmra.mrb[62].mxu1 %vm129_vm0, %v7856_v23  ;;  %v4448_v23 = vld [vmem:[%s13581_s7 + $0xc0] sm:$0xff] }
 0x6ad   :  { %v9035_v34 = vpack.c.bf16 %v4450_v33, %v4448_v23 }
 0x72b   :  { %v8226_v53 = vpop.f32.mrb[32].mxu1  ;;  %v12644_v43 = vpop.f32.mrb[96].mxu0 }
 0x72c   :  { %v4553_v3 = vpop.f32.mrb[33].mxu1  ;;  %v12652_v7 = vpop.f32.mrb[97].mxu0 }
 0x72d   :  { %7725 = vmatmul.mubr.msk.f32.vlgmr.msra.gmra.mrb[104].mxu0 %vm4623_vm8, %v4553_v3 }
 0x72e   :  { %4718 = vmatprep.mubr.f32.mxu0 %v9786_v57  ;;  %9012 = vmatpush1.bf16.msra.mxu0 %v9011_v38  ;;  %v7757_v38 = vld [vmem:[%s13581_s7 + $0x1e0] sm:$0xff] }
 0x72f   :  { %v8229_v27 = vpop.f32.mrb[34].mxu1  ;;  %9014 = vmatprep.subr.bf16.mxu0 %v9013_v46  ;;  %v12662_v8 = vpop.f32.mrb[98].mxu0 }
 0x730   :  { %v4563_v55 = vpop.f32.mrb[35].mxu1  ;;  %v12670_v58 = vpop.f32.mrb[99].mxu0 }
 0x731   :  { %7726 = vmatmul.mubr.msk.f32.gmra.mrb[106].mxu0 %vm4623_vm8, %v8226_v53  ;;  %v7759_v53 = vld [vmem:[%s13581_s7 + $0x1f0] sm:$0xff] }
 0x732   :  { %4724 = vmatprep.mubr.f32.mxu0 %v9786_v57  ;;  %9016 = vmatpush1.bf16.msra.mxu0 %v9015_v56  ;;  %v9063_v56 = vpack.c.bf16 %v7759_v53, %v7757_v38  ;;  %v5922_v38 = vld [vmem:[%s13582_s9 + $0x70] sm:$0xff]  ;;  %v5925_v53 = vld [vmem:[%s13582_s9 + $0x88] sm:$0xff] }
 0x733   :  { %9018 = vmatprep.subr.bf16.mxu0 %v9017_v2  ;;  %v8232_v36 = vpop.f32.mrb[36].mxu1  ;;  %v12680_v45 = vpop.f32.mrb[100].mxu0  ;;  %v5909_v2 = vld [vmem:[%s13582_s9 + $0x8] sm:$0xff] }
 0x734   :  { %v4573_v17 = vpop.f32.mrb[37].mxu1  ;;  %v12688_v13 = vpop.f32.mrb[101].mxu0  ;;  %v9193_v52 = vpack.c.bf16 %v5911_v62, %v5909_v2  ;;  %v7780_v2 = vld [vmem:[%s13581_s7 + $0x298] sm:$0xff] }
 0x735   :  { %7727 = vmatmul.mubr.msk.f32.gmra.mrb[108].mxu0 %vm4623_vm8, %v4563_v55  ;;  %v9065_v55 = vpack.c.bf16 %v7764_v30, %v7762_v1  ;;  %v5927_v1 = vld [vmem:[%s13582_s9 + $0x98] sm:$0xff] }
 0x736   :  { %4730 = vmatprep.mubr.f32.mxu0 %v9786_v57  ;;  %9020 = vmatpush1.bf16.msra.mxu0 %v9019_v50  ;;  %v5910_v50 = vld [vmem:[%s13582_s9 + $0x10] sm:$0xff]  ;;  %v9209_v62 = vpack.c.bf16 %v5927_v1, %v5925_v53  ;;  %v5936_v53 = vld [vmem:[%s13582_s9 + $0xe0] sm:$0xff] }
 0x737   :  { %9022 = vmatprep.subr.bf16.mxu0 %v9021_v18  ;;  %v8235_v47 = vpop.f32.mrb[38].mxu1  ;;  %v12698_v6 = vpop.f32.mrb[102].mxu0  ;;  %v5915_v18 = vld [vmem:[%s13582_s9 + $0x38] sm:$0xff]  ;;  %9194 = vmatprep.subr.bf16.mxu1 %v9193_v52  ;;  %v5929_v52 = vld [vmem:[%s13582_s9 + $0xa8] sm:$0xff]  ;;  %v5938_v1 = vld [vmem:[%s13582_s9 + $0xf0] sm:$0xff] }
 0x738   :  { %v4583_v63 = vpop.f32.mrb[39].mxu1  ;;  %v12706_v42 = vpop.f32.mrb[103].mxu0 }
 0x739   :  { %7728 = vmatmul.mubr.msk.f32.gmra.mrb[110].mxu0 %vm4623_vm8, %v8229_v27  ;;  %v7766_v27 = vld [vmem:[%s13581_s7 + $0x228] sm:$0xff] }
 0x73a   :  { %4736 = vmatprep.mubr.f32.mxu0 %v9786_v57  ;;  %9024 = vmatpush1.bf16.msra.mxu0 %v9023_v21  ;;  %v5914_v21 = vld [vmem:[%s13582_s9 + $0x30] sm:$0xff] }
 0x73b   :  { %9026 = vmatprep.subr.bf16.mxu0 %v9025_v9  ;;  %v5917_v9 = vld [vmem:[%s13582_s9 + $0x48] sm:$0xff] }
 0x73c   :  { %v9201_v25 = vpack.c.bf16 %v5919_v12, %v5917_v9 }
 0x73d   :  { %7729 = vmatmul.mubr.msk.f32.gmra.mrb[112].mxu0 %vm4623_vm8, %v4573_v17  ;;  %v9195_v17 = vpack.c.bf16 %v5910_v50, %v5908_v22  ;;  %v5924_v22 = vld [vmem:[%s13582_s9 + $0x80] sm:$0xff]  ;;  %v5931_v50 = vld [vmem:[%s13582_s9 + $0xb8] sm:$0xff] }
 0x73e   :  { %4742 = vmatprep.mubr.f32.mxu0 %v9786_v57  ;;  %9028 = vmatpush1.bf16.msra.mxu0 %v9027_v40  ;;  %v9199_v40 = vpack.c.bf16 %v5914_v21, %v5912_v59  ;;  %v7784_v21 = vld [vmem:[%s13581_s7 + $0x2b8] sm:$0xff]  ;;  %v9213_v12 = vpack.c.bf16 %v5931_v50, %v5929_v52 }
 0x73f   :  { %9030 = vmatprep.subr.bf16.mxu0 %v9029_v29  ;;  %9196 = vmatpush1.bf16.msra.mxu1 %v9195_v17  ;;  %v7772_v29 = vld [vmem:[%s13581_s7 + $0x258] sm:$0xff]  ;;  %v7782_v17 = vld [vmem:[%s13581_s7 + $0x2a8] sm:$0xff] }
 0x740   :  { %v9073_v33 = vpack.c.bf16 %v7772_v29, %v7770_v14  ;;  %v7781_v29 = vld [vmem:[%s13581_s7 + $0x2a0] sm:$0xff] }
 0x741   :  { %7730 = vmatmul.mubr.msk.f32.gmra.mrb[114].mxu0 %vm4623_vm8, %v8232_v36  ;;  %v5913_v36 = vld [vmem:[%s13582_s9 + $0x28] sm:$0xff] }
 0x742   :  { %4748 = vmatprep.mubr.f32.mxu0 %v9786_v57  ;;  %9032 = vmatpush1.bf16.msra.mxu0 %v9031_v54  ;;  %v9197_v19 = vpack.c.bf16 %v5915_v18, %v5913_v36  ;;  %v5921_v54 = vld [vmem:[%s13582_s9 + $0x68] sm:$0xff] }
 0x743   :  { %9034 = vmatprep.subr.bf16.mxu0 %v9033_v20  ;;  %v12732_v24 = vpop.f32.mrb[40].mxu1  ;;  %v5923_v20 = vld [vmem:[%s13582_s9 + $0x78] sm:$0xff] }
 0x744   :  { %v12743_v49 = vpop.f32.mrb[41].mxu1  ;;  %9198 = vmatprep.subr.bf16.mxu1 %v9197_v19 }
 0x745   :  { %7731 = vmatmul.mubr.msk.f32.gmra.mrb[116].mxu0 %vm4623_vm8, %v4583_v63  ;;  %9200 = vmatpush1.bf16.msra.mxu1 %v9199_v40  ;;  %v9085_v40 = vpack.c.bf16 %v7784_v21, %v7782_v17  ;;  %v7819_v21 = vld [vmem:[%s13581_s7 + $0x310] sm:$0xff] }
 0x746   :  { %4754 = vmatprep.mubr.f32.mxu0 %v9786_v57  ;;  %9036 = vmatpush1.bf16.msra.mxu0 %v9035_v34  ;;  %v7769_v34 = vld [vmem:[%s13581_s7 + $0x240] sm:$0xff] }
 0x747   :  { %4813 = vmatprep.subr.mxu0 %v4453_v48  ;;  %v12756_v46 = vpop.f32.mrb[42].mxu1  ;;  %v7774_v48 = vld [vmem:[%s13581_s7 + $0x268] sm:$0xff]  ;;  %9202 = vmatprep.subr.bf16.mxu1 %v9201_v25 }
 0x748   :  { %v12764_v3 = vpop.f32.mrb[43].mxu1  ;;  %v9077_v16 = vpack.c.bf16 %v7776_v37, %v7774_v48  ;;  %v7786_v48 = vld [vmem:[%s13581_s7 + $0x2c8] sm:$0xff] }
 0x749   :  { %7732 = vmatmul.mubr.msk.f32.gmra.mrb[118].mxu0 %vm4623_vm8, %v8235_v47  ;;  %v9069_v47 = vpack.c.bf16 %v7768_v11, %v7766_v27  ;;  %9204 = vmatpush1.bf16.msra.mxu1 %v9203_v31  ;;  %v7777_v11 = vld [vmem:[%s13581_s7 + $0x280] sm:$0xff] }
 0x74a   :  { %4814 = vmatpush1.msra.mxu0 %v4452_v51  ;;  %4849 = vmatprep.mubr.f32.mxu0 %v9786_v57  ;;  %v9205_v51 = vpack.c.bf16 %v5923_v20, %v5921_v54  ;;  %v5932_v20 = vld [vmem:[%s13582_s9 + $0xc0] sm:$0xff] }
 0x74b   :  { %9062 = vmatprep.subr.bf16.mxu0 %v9061_v61  ;;  %v12786_v39 = vpop.f32.mrb[44].mxu1  ;;  %v5920_v61 = vld [vmem:[%s13582_s9 + $0x60] sm:$0xff] }
 0x74c   :  { %v12800_v41 = vpop.f32.mrb[45].mxu1  ;;  %v9207_v27 = vpack.c.bf16 %v5922_v38, %v5920_v61  ;;  %9206 = vmatprep.subr.bf16.mxu1 %v9205_v51  ;;  %v7814_v51 = vld [vmem:[%s13581_s7 + $0x2e8] sm:$0xff] }
 0x74d   :  { %7733 = vmatmul.mubr.msk.f32.vlgmr.msra.gmra.mrb[104].mxu0 %vm4623_vm8, %v12652_v7  ;;  %v7767_v7 = vld [vmem:[%s13581_s7 + $0x230] sm:$0xff] }
 0x74e   :  { %4855 = vmatprep.mubr.f32.mxu0 %v9786_v57  ;;  %9064 = vmatpush1.bf16.msra.mxu0 %v9063_v56  ;;  %v9071_v23 = vpack.c.bf16 %v7767_v7, %v7765_v10  ;;  %v7778_v56 = vld [vmem:[%s13581_s7 + $0x288] sm:$0xff]  ;;  %v5935_v7 = vld [vmem:[%s13582_s9 + $0xd8] sm:$0xff] }
 0x74f   :  { %9066 = vmatprep.subr.bf16.mxu0 %v9065_v55  ;;  %v12826_v63 = vpop.f32.mrb[46].mxu1  ;;  %v5926_v55 = vld [vmem:[%s13582_s9 + $0x90] sm:$0xff]  ;;  %v9081_v18 = vpack.c.bf16 %v7780_v2, %v7778_v56  ;;  %9208 = vmatpush1.bf16.msra.mxu1 %v9207_v27  ;;  %v5933_v10 = vld [vmem:[%s13582_s9 + $0xc8] sm:$0xff]  ;;  %v7813_v56 = vld [vmem:[%s13581_s7 + $0x2e0] sm:$0xff]  ;;  %v9223_v2 = vpack.c.bf16 %v5938_v1, %v5936_v53 }
 0x750   :  { %v12831_v26 = vpop.f32.mrb[47].mxu1  ;;  %v9211_v59 = vpack.c.bf16 %v5926_v55, %v5924_v22  ;;  %9210 = vmatprep.subr.bf16.mxu1 %v9209_v62  ;;  %v9217_v54 = vpack.c.bf16 %v5935_v7, %v5933_v10  ;;  %v7816_v62 = vld [vmem:[%s13581_s7 + $0x2f8] sm:$0xff]  ;;  %v7818_v22 = vld [vmem:[%s13581_s7 + $0x308] sm:$0xff]  ;;  %v7823_v7 = vld [vmem:[%s13581_s7 + $0x330] sm:$0xff] }
 0x751   :  { %7734 = vmatmul.mubr.msk.f32.gmra.mrb[106].mxu0 %vm4623_vm8, %v12644_v43  ;;  %v7771_v43 = vld [vmem:[%s13581_s7 + $0x250] sm:$0xff]  ;;  %v7838_v53 = vld [vmem:[%s13581_s7 + $0x3a8] sm:$0xff] }
 0x752   :  { %4861 = vmatprep.mubr.f32.mxu0 %v9786_v57  ;;  %9068 = vmatpush1.bf16.msra.mxu0 %v9067_v44  ;;  %v9075_v30 = vpack.c.bf16 %v7771_v43, %v7769_v34  ;;  %v5928_v44 = vld [vmem:[%s13582_s9 + $0xa0] sm:$0xff]  ;;  %v5939_v34 = vld [vmem:[%s13582_s9 + $0xf8] sm:$0xff] }
 0x753   :  { %9070 = vmatprep.subr.bf16.mxu0 %v9069_v47  ;;  %v5930_v47 = vld [vmem:[%s13582_s9 + $0xb0] sm:$0xff]  ;;  %9212 = vmatpush1.bf16.msra.mxu1 %v9211_v59 }
 0x754   :  { %v9215_v28 = vpack.c.bf16 %v5930_v47, %v5928_v44  ;;  %9214 = vmatprep.subr.bf16.mxu1 %v9213_v12  ;;  %v7821_v12 = vld [vmem:[%s13581_s7 + $0x320] sm:$0xff]  ;;  %v7824_v44 = vld [vmem:[%s13581_s7 + $0x338] sm:$0xff] }
 0x755   :  { %7735 = vmatmul.mubr.msk.f32.gmra.mrb[108].mxu0 %vm4623_vm8, %v12670_v58  ;;  %v7775_v58 = vld [vmem:[%s13581_s7 + $0x270] sm:$0xff]  ;;  %v9123_v47 = vpack.c.bf16 %v7821_v12, %v7819_v21 }
 0x756   :  { %4867 = vmatprep.mubr.f32.mxu0 %v9786_v57  ;;  %9072 = vmatpush1.bf16.msra.mxu0 %v9071_v23  ;;  %v9079_v36 = vpack.c.bf16 %v7775_v58, %v7773_v60  ;;  %v5934_v23 = vld [vmem:[%s13582_s9 + $0xd0] sm:$0xff]  ;;  %v7785_v60 = vld [vmem:[%s13581_s7 + $0x2c0] sm:$0xff] }
 0x757   :  { %9074 = vmatprep.subr.bf16.mxu0 %v9073_v33  ;;  %v5937_v33 = vld [vmem:[%s13582_s9 + $0xe8] sm:$0xff]  ;;  %9216 = vmatpush1.bf16.msra.mxu1 %v9215_v28  ;;  %v9219_v37 = vpack.c.bf16 %v5934_v23, %v5932_v20  ;;  %v7827_v20 = vld [vmem:[%s13581_s7 + $0x350] sm:$0xff]  ;;  %v7829_v23 = vld [vmem:[%s13581_s7 + $0x360] sm:$0xff] }
 0x758   :  { %9218 = vmatprep.subr.bf16.mxu1 %v9217_v54  ;;  %v9221_v38 = vpack.c.bf16 %v5939_v34, %v5937_v33  ;;  %v7834_v34 = vld [vmem:[%s13581_s7 + $0x388] sm:$0xff] }
 0x759   :  { %7736 = vmatmul.mubr.msk.f32.gmra.mrb[110].mxu0 %vm4623_vm8, %v12662_v8  ;;  %v7779_v8 = vld [vmem:[%s13581_s7 + $0x290] sm:$0xff] }
 0x75a   :  { %4873 = vmatprep.mubr.f32.mxu0 %v9786_v57  ;;  %9076 = vmatpush1.bf16.msra.mxu0 %v9075_v30  ;;  %v9083_v14 = vpack.c.bf16 %v7779_v8, %v7777_v11  ;;  %v5941_v30 = vld [vmem:[%s13582_s9 + $0x108] sm:$0xff]  ;;  %v7817_v11 = vld [vmem:[%s13581_s7 + $0x300] sm:$0xff]  ;;  %v7820_v8 = vld [vmem:[%s13581_s7 + $0x318] sm:$0xff] }
 0x75b   :  { %9078 = vmatprep.subr.bf16.mxu0 %v9077_v16  ;;  %v12911_v19 = vpop.f32.mrb[48].mxu1  ;;  %v5943_v16 = vld [vmem:[%s13582_s9 + $0x118] sm:$0xff]  ;;  %9220 = vmatpush1.bf16.msra.mxu1 %v9219_v37  ;;  %v7831_v37 = vld [vmem:[%s13581_s7 + $0x370] sm:$0xff] }
 0x75c   :  { %v12916_v9 = vpop.f32.mrb[49].mxu1  ;;  %9222 = vmatprep.subr.bf16.mxu1 %v9221_v38  ;;  %v9225_v52 = vpack.c.bf16 %v5943_v16, %v5941_v30 }
 0x75d   :  { %7737 = vmatmul.mubr.msk.f32.gmra.mrb[112].mxu0 %vm4623_vm8, %v12688_v13  ;;  %v7783_v13 = vld [vmem:[%s13581_s7 + $0x2b0] sm:$0xff] }
 0x75e   :  { %4879 = vmatprep.mubr.f32.mxu0 %v9786_v57  ;;  %9080 = vmatpush1.bf16.msra.mxu0 %v9079_v36  ;;  %v9087_v43 = vpack.c.bf16 %v7783_v13, %v7781_v29  ;;  %v9117_v36 = vpack.c.bf16 %v7818_v22, %v7816_v62  ;;  %v7830_v29 = vld [vmem:[%s13581_s7 + $0x368] sm:$0xff]  ;;  %v7868_v22 = vld [vmem:[%s13581_s7 + $0x3d8] sm:$0xff] }
 0x75f   :  { %9082 = vmatprep.subr.bf16.mxu0 %v9081_v18  ;;  %v12939_v25 = vpop.f32.mrb[50].mxu1  ;;  %v7815_v18 = vld [vmem:[%s13581_s7 + $0x2f0] sm:$0xff]  ;;  %9224 = vmatpush1.bf16.msra.mxu1 %v9223_v2  ;;  %v7840_v2 = vld [vmem:[%s13581_s7 + $0x3b8] sm:$0xff]  ;;  %v7866_v62 = vld [vmem:[%s13581_s7 + $0x3c8] sm:$0xff] }
 0x760   :  { %v12941_v15 = vpop.f32.mrb[51].mxu1  ;;  %9226 = vmatprep.subr.bf16.mxu1 %v9225_v52  ;;  %v9119_v17 = vpack.c.bf16 %v7817_v11, %v7815_v18  ;;  %v9165_v52 = vpack.c.bf16 %v7868_v22, %v7866_v62  ;;  %v7872_v18 = vld [vmem:[%s13581_s7 + $0x3f8] sm:$0xff] }
 0x761   :  { %7738 = vmatmul.mubr.msk.f32.gmra.mrb[114].mxu0 %vm4623_vm8, %v12680_v45  ;;  %v7812_v45 = vld [vmem:[%s13581_s7 + $0x2d8] sm:$0xff] }
 0x762   :  { %4885 = vmatprep.mubr.f32.mxu0 %v9786_v57  ;;  %9084 = vmatpush1.bf16.msra.mxu0 %v9083_v14  ;;  %v9113_v58 = vpack.c.bf16 %v7814_v51, %v7812_v45  ;;  %v7825_v14 = vld [vmem:[%s13581_s7 + $0x340] sm:$0xff] }
 0x763   :  { %9086 = vmatprep.subr.bf16.mxu0 %v9085_v40  ;;  %v12964_v31 = vpop.f32.mrb[52].mxu1  ;;  %v9127_v28 = vpack.c.bf16 %v7825_v14, %v7823_v7  ;;  %v7833_v51 = vld [vmem:[%s13581_s7 + $0x380] sm:$0xff] }
 0x764   :  { %v12969_v61 = vpop.f32.mrb[53].mxu1  ;;  %v9135_v30 = vpack.c.bf16 %v7833_v51, %v7831_v37  ;;  %v7877_v14 = vld [vmem:[%s13581_s7 + $0x420] sm:$0xff]  ;;  %v7887_v37 = vld [vmem:[%s13581_s7 + $0x470] sm:$0xff]  ;;  %v7890_v51 = vld [vmem:[%s13581_s7 + $0x488] sm:$0xff] }
 0x765   :  { %7739 = vmatmul.mubr.msk.f32.gmra.mrb[116].mxu0 %vm4623_vm8, %v12706_v42  ;;  %v7811_v42 = vld [vmem:[%s13581_s7 + $0x2d0] sm:$0xff] }
 0x766   :  { %4891 = vmatprep.mubr.f32.mxu0 %v9786_v57  ;;  %9088 = vmatpush1.bf16.msra.mxu0 %v9087_v43  ;;  %v9115_v50 = vpack.c.bf16 %v7813_v56, %v7811_v42 }
 0x767   :  { %5119 = vmatprep.subr.mxu0 %v7786_v48  ;;  %v12995_v27 = vpop.f32.mrb[54].mxu1  ;;  %v9131_v48 = vpack.c.bf16 %v7829_v23, %v7827_v20  ;;  %v7881_v20 = vld [vmem:[%s13581_s7 + $0x440] sm:$0xff]  ;;  %v7883_v23 = vld [vmem:[%s13581_s7 + $0x450] sm:$0xff] }
 0x768   :  { %v13003_v55 = vpop.f32.mrb[55].mxu1 }
 0x769   :  { %7740 = vmatmul.mubr.msk.f32.gmra.mrb[118].mxu0 %vm4623_vm8, %v12698_v6  ;;  %v7822_v6 = vld [vmem:[%s13581_s7 + $0x328] sm:$0xff] }
 0x76a   :  { %5120 = vmatpush1.msra.mxu0 %v7785_v60  ;;  %5155 = vmatprep.mubr.f32.mxu0 %v9786_v57  ;;  %v9121_v59 = vpack.c.bf16 %v7822_v6, %v7820_v8  ;;  %v7835_v60 = vld [vmem:[%s13581_s7 + $0x390] sm:$0xff]  ;;  %v7869_v6 = vld [vmem:[%s13581_s7 + $0x3e0] sm:$0xff] }
 0x76b   :  { %9114 = vmatprep.subr.bf16.mxu0 %v9113_v58  ;;  %v7837_v58 = vld [vmem:[%s13581_s7 + $0x3a0] sm:$0xff] }
 0x76d   :  { %7787 = vmatmul.mubr.msk.f32.vlgmr.msra.gmra.mrb[104].mxu0 %vm4623_vm8, %v12743_v49  ;;  %v7826_v49 = vld [vmem:[%s13581_s7 + $0x348] sm:$0xff] }
 0x76e   :  { %5161 = vmatprep.mubr.f32.mxu0 %v9786_v57  ;;  %9116 = vmatpush1.bf16.msra.mxu0 %v9115_v50  ;;  %v9125_v10 = vpack.c.bf16 %v7826_v49, %v7824_v44  ;;  %v7865_v50 = vld [vmem:[%s13581_s7 + $0x3c0] sm:$0xff]  ;;  %v7875_v49 = vld [vmem:[%s13581_s7 + $0x410] sm:$0xff] }
 0x76f   :  { %9118 = vmatprep.subr.bf16.mxu0 %v9117_v36  ;;  %v7867_v36 = vld [vmem:[%s13581_s7 + $0x3d0] sm:$0xff]  ;;  %v7873_v44 = vld [vmem:[%s13581_s7 + $0x400] sm:$0xff] }
 0x770   :  { %v9167_v11 = vpack.c.bf16 %v7867_v36, %v7865_v50 }
 0x771   :  { %7788 = vmatmul.mubr.msk.f32.gmra.mrb[106].mxu0 %vm4623_vm8, %v12732_v24  ;;  %v7828_v24 = vld [vmem:[%s13581_s7 + $0x358] sm:$0xff] }
 0x772   :  { %5167 = vmatprep.mubr.f32.mxu0 %v9786_v57  ;;  %9120 = vmatpush1.bf16.msra.mxu0 %v9119_v17  ;;  %v9129_v54 = vpack.c.bf16 %v7830_v29, %v7828_v24  ;;  %v7871_v17 = vld [vmem:[%s13581_s7 + $0x3f0] sm:$0xff]  ;;  %v7882_v29 = vld [vmem:[%s13581_s7 + $0x448] sm:$0xff] }
 0x773   :  { %9122 = vmatprep.subr.bf16.mxu0 %v9121_v59  ;;  %v13044_v40 = vpop.f32.mrb[56].mxu1  ;;  %v7874_v59 = vld [vmem:[%s13581_s7 + $0x408] sm:$0xff]  ;;  %v9171_v21 = vpack.c.bf16 %v7871_v17, %v7869_v6  ;;  %v7879_v24 = vld [vmem:[%s13581_s7 + $0x430] sm:$0xff] }
 0x774   :  { %v13052_v13 = vpop.f32.mrb[57].mxu1 }
 0x775   :  { %7789 = vmatmul.mubr.msk.f32.gmra.mrb[108].mxu0 %vm4623_vm8, %v12764_v3  ;;  %v7832_v3 = vld [vmem:[%s13581_s7 + $0x378] sm:$0xff] }
 0x776   :  { %5173 = vmatprep.mubr.f32.mxu0 %v9786_v57  ;;  %9124 = vmatpush1.bf16.msra.mxu0 %v9123_v47  ;;  %v9133_v45 = vpack.c.bf16 %v7834_v34, %v7832_v3  ;;  %v7878_v47 = vld [vmem:[%s13581_s7 + $0x428] sm:$0xff]  ;;  %v9183_v34 = vpack.c.bf16 %v7883_v23, %v7881_v20 }
 0x777   :  { %9126 = vmatprep.subr.bf16.mxu0 %v9125_v10  ;;  %v13063_v33 = vpop.f32.mrb[58].mxu1  ;;  %v9175_v10 = vpack.c.bf16 %v7875_v49, %v7873_v44  ;;  %v7886_v3 = vld [vmem:[%s13581_s7 + $0x468] sm:$0xff] }
 0x778   :  { %v13071_v43 = vpop.f32.mrb[59].mxu1 }
 0x779   :  { %7790 = vmatmul.mubr.msk.f32.gmra.mrb[110].mxu0 %vm4623_vm8, %v12756_v46  ;;  %v7836_v46 = vld [vmem:[%s13581_s7 + $0x398] sm:$0xff] }
 0x77a   :  { %5179 = vmatprep.mubr.f32.mxu0 %v9786_v57  ;;  %9128 = vmatpush1.bf16.msra.mxu0 %v9127_v28  ;;  %v9137_v16 = vpack.c.bf16 %v7838_v53, %v7836_v46  ;;  %v9179_v28 = vpack.c.bf16 %v7879_v24, %v7877_v14 }
 0x77b   :  { %9130 = vmatprep.subr.bf16.mxu0 %v9129_v54  ;;  %v13082_v38 = vpop.f32.mrb[60].mxu1 }
 0x77c   :  { %v13090_v1 = vpop.f32.mrb[61].mxu1 }
 0x77d   :  { %7791 = vmatmul.mubr.msk.f32.gmra.mrb[112].mxu0 %vm4623_vm8, %v12800_v41  ;;  %v9139_v41 = vpack.c.bf16 %v7837_v58, %v7835_v60  ;;  %v7894_v60 = vld [vmem:[%s13581_s7 + $0x4a8] sm:$0xff] }
 0x77e   :  { %5185 = vmatprep.mubr.f32.mxu0 %v9786_v57  ;;  %9132 = vmatpush1.bf16.msra.mxu0 %v9131_v48 }
 0x77f   :  { %9134 = vmatprep.subr.bf16.mxu0 %v9133_v45  ;;  %v13101_v42 = vpop.f32.mrb[62].mxu1  ;;  %v7885_v45 = vld [vmem:[%s13581_s7 + $0x460] sm:$0xff] }
 0x780   :  { %v13103_v56 = vpop.f32.mrb[63].mxu1  ;;  %v9187_v46 = vpack.c.bf16 %v7887_v37, %v7885_v45 }
 0x781   :  { %7792 = vmatmul.mubr.msk.f32.gmra.mrb[114].mxu0 %vm4623_vm8, %v12786_v39  ;;  %v7839_v39 = vld [vmem:[%s13581_s7 + $0x3b0] sm:$0xff] }
 0x782   :  { %5191 = vmatprep.mubr.f32.mxu0 %v9786_v57  ;;  %9136 = vmatpush1.bf16.msra.mxu0 %v9135_v30  ;;  %v7889_v30 = vld [vmem:[%s13581_s7 + $0x480] sm:$0xff] }
 0x783   :  { %9138 = vmatprep.subr.bf16.mxu0 %v9137_v16  ;;  %v7891_v16 = vld [vmem:[%s13581_s7 + $0x490] sm:$0xff] }
 0x785   :  { %7793 = vmatmul.mubr.msk.f32.gmra.mrb[116].mxu0 %vm4623_vm8, %v12831_v26  ;;  %v7870_v26 = vld [vmem:[%s13581_s7 + $0x3e8] sm:$0xff] }
 0x786   :  { %5197 = vmatprep.mubr.f32.mxu0 %v9786_v57  ;;  %9140 = vmatpush1.bf16.msra.mxu0 %v9139_v41  ;;  %v9169_v8 = vpack.c.bf16 %v7872_v18, %v7870_v26 }
 0x787   :  { %5441 = vmatprep.subr.mxu0 %v7840_v2 }
 0x789   :  { %7794 = vmatmul.mubr.msk.f32.gmra.mrb[118].mxu0 %vm4623_vm8, %v12826_v63  ;;  %v7876_v63 = vld [vmem:[%s13581_s7 + $0x418] sm:$0xff] }
 0x78a   :  { %5442 = vmatpush1.msra.mxu0 %v7839_v39  ;;  %5477 = vmatprep.mubr.f32.mxu0 %v9786_v57  ;;  %v9173_v12 = vpack.c.bf16 %v7876_v63, %v7874_v59 }
 0x78b   :  { %9166 = vmatprep.subr.bf16.mxu0 %v9165_v52 }
 0x78d   :  { %7841 = vmatmul.mubr.msk.f32.vlgmr.msra.gmra.mrb[104].mxu0 %vm4623_vm8, %v12916_v9  ;;  %v7880_v9 = vld [vmem:[%s13581_s7 + $0x438] sm:$0xff] }
 0x78e   :  { %5483 = vmatprep.mubr.f32.mxu0 %v9786_v57  ;;  %9168 = vmatpush1.bf16.msra.mxu0 %v9167_v11  ;;  %v9177_v7 = vpack.c.bf16 %v7880_v9, %v7878_v47 }
 0x78f   :  { %9170 = vmatprep.subr.bf16.mxu0 %v9169_v8 }
 0x791   :  { %7842 = vmatmul.mubr.msk.f32.gmra.mrb[106].mxu0 %vm4623_vm8, %v12911_v19  ;;  %v7884_v19 = vld [vmem:[%s13581_s7 + $0x458] sm:$0xff] }
 0x792   :  { %5489 = vmatprep.mubr.f32.mxu0 %v9786_v57  ;;  %9172 = vmatpush1.bf16.msra.mxu0 %v9171_v21  ;;  %v9181_v54 = vpack.c.bf16 %v7884_v19, %v7882_v29 }
 0x793   :  { %9174 = vmatprep.subr.bf16.mxu0 %v9173_v12 }
 0x795   :  { %7843 = vmatmul.mubr.msk.f32.gmra.mrb[108].mxu0 %vm4623_vm8, %v12941_v15  ;;  %v7888_v15 = vld [vmem:[%s13581_s7 + $0x478] sm:$0xff] }
 0x796   :  { %5495 = vmatprep.mubr.f32.mxu0 %v9786_v57  ;;  %9176 = vmatpush1.bf16.msra.mxu0 %v9175_v10  ;;  %v9185_v48 = vpack.c.bf16 %v7888_v15, %v7886_v3 }
 0x797   :  { %9178 = vmatprep.subr.bf16.mxu0 %v9177_v7 }
 0x799   :  { %7844 = vmatmul.mubr.msk.f32.gmra.mrb[110].mxu0 %vm4623_vm8, %v12939_v25  ;;  %v7892_v25 = vld [vmem:[%s13581_s7 + $0x498] sm:$0xff] }
 0x79a   :  { %5501 = vmatprep.mubr.f32.mxu0 %v9786_v57  ;;  %9180 = vmatpush1.bf16.msra.mxu0 %v9179_v28  ;;  %v9189_v53 = vpack.c.bf16 %v7892_v25, %v7890_v51 }
 0x79b   :  { %9182 = vmatprep.subr.bf16.mxu0 %v9181_v54 }
 0x79d   :  { %7845 = vmatmul.mubr.msk.f32.gmra.mrb[112].mxu0 %vm4623_vm8, %v12969_v61  ;;  %v9191_v61 = vpack.c.bf16 %v7891_v16, %v7889_v30 }
 0x79e   :  { %5507 = vmatprep.mubr.f32.mxu0 %v9786_v57  ;;  %9184 = vmatpush1.bf16.msra.mxu0 %v9183_v34 }
 0x79f   :  { %9186 = vmatprep.subr.bf16.mxu0 %v9185_v48 }
 0x7a1   :  { %7846 = vmatmul.mubr.msk.f32.gmra.mrb[114].mxu0 %vm4623_vm8, %v12964_v31  ;;  %v7893_v31 = vld [vmem:[%s13581_s7 + $0x4a0] sm:$0xff] }
 0x7a2   :  { %5513 = vmatprep.mubr.f32.mxu0 %v9786_v57  ;;  %9188 = vmatpush1.bf16.msra.mxu0 %v9187_v46 }
 0x7a3   :  { %9190 = vmatprep.subr.bf16.mxu0 %v9189_v53 }
 0x7a5   :  { %7847 = vmatmul.mubr.msk.f32.gmra.mrb[116].mxu0 %vm4623_vm8, %v13003_v55  ;;  %v5942_v55 = vld [vmem:[%s13582_s9 + $0x110] sm:$0xff] }
 0x7a6   :  { %5519 = vmatprep.mubr.f32.mxu0 %v9786_v57  ;;  %9192 = vmatpush1.bf16.msra.mxu0 %v9191_v61 }
 0x7a7   :  { %5763 = vmatprep.subr.mxu0 %v7894_v60 }
 0x7a9   :  { %7848 = vmatmul.mubr.msk.f32.gmra.mrb[118].mxu0 %vm4623_vm8, %v12995_v27  ;;  %v5940_v27 = vld [vmem:[%s13582_s9 + $0x100] sm:$0xff] }
 0x7aa   :  { %5764 = vmatpush1.msra.mxu0 %v7893_v31  ;;  %5799 = vmatprep.mubr.f32.mxu0 %v9786_v57 }
 0x7ab   :  { %9277 = vmatprep.subr.bf16.mxu0 %v9784_v0 }
 0x7ad   :  { %7895 = vmatmul.mubr.msk.f32.vlgmr.msra.gmra.mrb[104].mxu0 %vm4623_vm8, %v13052_v13  ;;  %v5945_v13 = vld [vmem:[%s13582_s9 + $0x128] sm:$0xff] }
 0x7ae   :  { %5805 = vmatprep.mubr.f32.mxu0 %v9786_v57 }
 0x7b1   :  { %7896 = vmatmul.mubr.msk.f32.gmra.mrb[106].mxu0 %vm4623_vm8, %v13044_v40  ;;  %v9227_v40 = vpack.c.bf16 %v5942_v55, %v5940_v27 }
 0x7b2   :  { %5811 = vmatprep.mubr.f32.mxu0 %v9786_v57 }
 0x7b3   :  { %9228 = vmatpush1.bf16.msra.mxu1 %v9227_v40 }
 0x7b5   :  { %7897 = vmatmul.mubr.msk.f32.gmra.mrb[108].mxu0 %vm4623_vm8, %v13071_v43 }
 0x7b6   :  { %5817 = vmatprep.mubr.f32.mxu0 %v9786_v57 }
 0x7b9   :  { %7898 = vmatmul.mubr.msk.f32.gmra.mrb[110].mxu0 %vm4623_vm8, %v13063_v33  ;;  %v5947_v33 = vld [vmem:[%s13582_s9 + $0x138] sm:$0xff] }
 0x7ba   :  { %5823 = vmatprep.mubr.f32.mxu0 %v9786_v57  ;;  %v9229_v43 = vpack.c.bf16 %v5947_v33, %v5945_v13 }
 0x7bc   :  { %9230 = vmatprep.subr.bf16.mxu1 %v9229_v43 }
 0x7bd   :  { %7899 = vmatmul.mubr.msk.f32.gmra.mrb[112].mxu0 %vm4623_vm8, %v13090_v1  ;;  %v5946_v1 = vld [vmem:[%s13582_s9 + $0x130] sm:$0xff] }
 0x7be   :  { %5829 = vmatprep.mubr.f32.mxu0 %v9786_v57 }
 0x7c1   :  { %7900 = vmatmul.mubr.msk.f32.gmra.mrb[114].mxu0 %vm4623_vm8, %v13082_v38  ;;  %v5944_v38 = vld [vmem:[%s13582_s9 + $0x120] sm:$0xff] }
 0x7c2   :  { %5835 = vmatprep.mubr.f32.mxu0 %v9786_v57  ;;  %v9231_v58 = vpack.c.bf16 %v5946_v1, %v5944_v38 }
 0x7c4   :  { %9232 = vmatpush1.bf16.msra.mxu1 %v9231_v58 }
 0x7c5   :  { %7901 = vmatmul.mubr.msk.f32.gmra.mrb[116].mxu0 %vm4623_vm8, %v13103_v56 }
 0x7c6   :  { %5841 = vmatprep.mubr.f32.mxu0 %v9786_v57 }
 0x7c9   :  { %7902 = vmatmul.mubr.msk.f32.gmra.mrb[118].mxu0 %vm4623_vm8, %v13101_v42  ;;  %v5864_v42 = vld [vmem:[%s13583_s8] sm:$0x3]  ;;  %s9788_s8 = smov 48  }
 0x7ca   :  { %v5869_v56 = vrot.slane %v5864_v42, %v3240_v35  ;;  %v5873_v41 = vrot.slane %v5864_v42, %v3244_v5  ;;  %8430 = vmatprep.mubr.msk.f32.mxu0 %vm9789_vm11, %v9786_v57 }
 0x880   :  { %v5801_v2 = vpop.f32.mrb[104].mxu0 }
 0x881   :  { %v5876_v62 = vadd.f32 %v5869_v56, %v5801_v2  ;;  %v5803_v22 = vpop.f32.mrb[105].mxu0 }
 0x882   :  { %v5877_v39 = vadd.f32 %v5873_v41, %v5803_v22 }
 0x883   :  { %v5892_v36 = vmax.f32 %v5876_v62, 0.0 }
 0x884   :  { %v5893_v52 = vmax.f32 %v5877_v39, 0.0  ;;  %v5807_v50 = vpop.f32.mrb[106].mxu0 }
 0x885   :  { %v5878_v26 = vadd.f32 %v5869_v56, %v5807_v50  ;;  %v5809_v18 = vpop.f32.mrb[107].mxu0 }
 0x886   :  { %v5879_v11 = vadd.f32 %v5873_v41, %v5809_v18  ;;  %7903 = vmatprep.mubr.msk.f32.mxu1 %vm5948_vm9, %v5893_v52 }
 0x887   :  { %6038 = vmatmul.mubr.f32.vlgmr.msra.gmra.mrb[64].mxu1 %v5892_v36  ;;  %v5894_v35 = vmax.f32 %v5878_v26, 0.0 }
 0x888   :  { %v5895_v8 = vmax.f32 %v5879_v11, 0.0  ;;  %v5813_v6 = vpop.f32.mrb[108].mxu0  ;;  %v6159_v11 = vld [vmem:[%s13584_s10] sm:$0xff] }
 0x889   :  { %v5880_v17 = vadd.f32 %v5869_v56, %v5813_v6  ;;  %v5815_v32 = vpop.f32.mrb[109].mxu0 }
 0x88a   :  { %v5881_v5 = vadd.f32 %v5873_v41, %v5815_v32  ;;  %7904 = vmatprep.mubr.msk.f32.mxu1 %vm5948_vm9, %v5895_v8 }
 0x88b   :  { %6044 = vmatmul.mubr.f32.gmra.mrb[66].mxu1 %v5894_v35  ;;  %v5896_v21 = vmax.f32 %v5880_v17, 0.0 }
 0x88c   :  { %v5897_v59 = vmax.f32 %v5881_v5, 0.0  ;;  %v5819_v63 = vpop.f32.mrb[110].mxu0 }
 0x88d   :  { %v5882_v12 = vadd.f32 %v5869_v56, %v5819_v63  ;;  %v5821_v44 = vpop.f32.mrb[111].mxu0 }
 0x88e   :  { %v5883_v49 = vadd.f32 %v5873_v41, %v5821_v44  ;;  %7905 = vmatprep.mubr.msk.f32.mxu1 %vm5948_vm9, %v5897_v59 }
 0x88f   :  { %6050 = vmatmul.mubr.f32.gmra.mrb[68].mxu1 %v5896_v21  ;;  %v5898_v10 = vmax.f32 %v5882_v12, 0.0 }
 0x890   :  { %v5899_v47 = vmax.f32 %v5883_v49, 0.0  ;;  %v5825_v9 = vpop.f32.mrb[112].mxu0 }
 0x891   :  { %v5884_v7 = vadd.f32 %v5869_v56, %v5825_v9  ;;  %v5827_v14 = vpop.f32.mrb[113].mxu0 }
 0x892   :  { %v5885_v24 = vadd.f32 %v5873_v41, %v5827_v14  ;;  %7906 = vmatprep.mubr.msk.f32.mxu1 %vm5948_vm9, %v5899_v47 }
 0x893   :  { %6056 = vmatmul.mubr.f32.gmra.mrb[70].mxu1 %v5898_v10  ;;  %v5900_v28 = vmax.f32 %v5884_v7, 0.0 }
 0x894   :  { %v5901_v29 = vmax.f32 %v5885_v24, 0.0  ;;  %v5831_v19 = vpop.f32.mrb[114].mxu0 }
 0x895   :  { %v5886_v54 = vadd.f32 %v5869_v56, %v5831_v19  ;;  %v5833_v20 = vpop.f32.mrb[115].mxu0 }
 0x896   :  { %v5887_v23 = vadd.f32 %v5873_v41, %v5833_v20  ;;  %7907 = vmatprep.mubr.msk.f32.mxu1 %vm5948_vm9, %v5901_v29 }
 0x897   :  { %6062 = vmatmul.mubr.f32.gmra.mrb[72].mxu1 %v5900_v28  ;;  %v5902_v34 = vmax.f32 %v5886_v54, 0.0 }
 0x898   :  { %v5903_v3 = vmax.f32 %v5887_v23, 0.0  ;;  %v5837_v15 = vpop.f32.mrb[116].mxu0 }
 0x899   :  { %v5888_v48 = vadd.f32 %v5869_v56, %v5837_v15  ;;  %v5839_v45 = vpop.f32.mrb[117].mxu0 }
 0x89a   :  { %v5889_v37 = vadd.f32 %v5873_v41, %v5839_v45  ;;  %7908 = vmatprep.mubr.msk.f32.mxu1 %vm5948_vm9, %v5903_v3 }
 0x89b   :  { %6068 = vmatmul.mubr.f32.gmra.mrb[74].mxu1 %v5902_v34  ;;  %v5904_v46 = vmax.f32 %v5888_v48, 0.0 }
 0x89c   :  { %v5905_v51 = vmax.f32 %v5889_v37, 0.0  ;;  %v5843_v25 = vpop.f32.mrb[118].mxu0 }
 0x89d   :  { %v5890_v53 = vadd.f32 %v5869_v56, %v5843_v25  ;;  %v5845_v30 = vpop.f32.mrb[119].mxu0 }
 0x89e   :  { %v5891_v16 = vadd.f32 %v5873_v41, %v5845_v30  ;;  %7909 = vmatprep.mubr.msk.f32.mxu1 %vm5948_vm9, %v5905_v51 }
 0x89f   :  { %6074 = vmatmul.mubr.f32.gmra.mrb[76].mxu1 %v5904_v46  ;;  %v5906_v60 = vmax.f32 %v5890_v53, 0.0 }
 0x8a0   :  { %v5907_v61 = vmax.f32 %v5891_v16, 0.0 }
 0x8a2   :  { %7910 = vmatprep.mubr.msk.f32.mxu1 %vm5948_vm9, %v5907_v61 }
 0x8a3   :  { %6080 = vmatmul.mubr.f32.gmra.mrb[78].mxu1 %v5906_v60 }
 0x8a4   :  { %8360 = vmatprep.mubr.msk.f32.mxu1 %vm3927_vm6, %v6159_v11  ;;  %v7931_v11 = vld [vmem:[%s13585_s12 + $0x78] sm:$0xff] }
 0x95a   :  { %v6039_v31 = vpop.f32.mrb[64].mxu1 }
 0x95b   :  { %v6041_v27 = vpop.f32.mrb[65].mxu1 }
 0x95c   :  { %v9740_v55 = vpack.i.bf16 %v6041_v27, %v6039_v31 }
 0x95e   :  { %9741 = vrot.lane.b32.xlu0 %v9740_v55, %s9788_s8  ;;  %v6045_v40 = vpop.f32.mrb[66].mxu1 }
 0x95f   :  { %v6047_v13 = vpop.f32.mrb[67].mxu1 }
 0x960   :  { %v9745_v33 = vpack.i.bf16 %v6047_v13, %v6045_v40 }
 0x962   :  { %9746 = vrot.lane.b32.xlu1 %v9745_v33, %s9788_s8  ;;  %v6051_v43 = vpop.f32.mrb[68].mxu1 }
 0x963   :  { %v6053_v38 = vpop.f32.mrb[69].mxu1 }
 0x964   :  { %v9750_v1 = vpack.i.bf16 %v6053_v38, %v6051_v43 }
 0x966   :  { %9751 = vrot.lane.b32.xlu0 %v9750_v1, %s9788_s8  ;;  %v6057_v58 = vpop.f32.mrb[70].mxu1  ;;  %v6160_v1 = vld [vmem:[%s13584_s10 + $0x8] sm:$0xff] }
 0x967   :  { %v6059_v42 = vpop.f32.mrb[71].mxu1 }
 0x968   :  { %v9755_v56 = vpack.i.bf16 %v6059_v42, %v6057_v58  ;;  %v6162_v42 = vld [vmem:[%s13584_s10 + $0x18] sm:$0xff] }
 0x96a   :  { %9756 = vrot.lane.b32.xlu1 %v9755_v56, %s9788_s8  ;;  %v6063_v41 = vpop.f32.mrb[72].mxu1  ;;  %v7915_v56 = vld [vmem:[%s13584_s10 + $0x20] sm:$0xff] }
 0x96b   :  { %v6065_v2 = vpop.f32.mrb[73].mxu1 }
 0x96c   :  { %v9760_v62 = vpack.i.bf16 %v6065_v2, %v6063_v41  ;;  %v7917_v2 = vld [vmem:[%s13584_s10 + $0x30] sm:$0xff] }
 0x96e   :  { %9761 = vrot.lane.b32.xlu0 %v9760_v62, %s9788_s8  ;;  %v6069_v22 = vpop.f32.mrb[74].mxu1  ;;  %v7918_v62 = vld [vmem:[%s13584_s10 + $0x38] sm:$0xff] }
 0x96f   :  { %v6071_v39 = vpop.f32.mrb[75].mxu1 }
 0x970   :  { %v9765_v52 = vpack.i.bf16 %v6071_v39, %v6069_v22  ;;  %v7927_v39 = vld [vmem:[%s13585_s12 + $0x58] sm:$0xff] }
 0x972   :  { %9766 = vrot.lane.b32.xlu1 %v9765_v52, %s9788_s8  ;;  %v6075_v50 = vpop.f32.mrb[76].mxu1  ;;  %v7928_v52 = vld [vmem:[%s13585_s12 + $0x60] sm:$0xff] }
 0x973   :  { %v6077_v36 = vpop.f32.mrb[77].mxu1 }
 0x974   :  { %v9770_v26 = vpack.i.bf16 %v6077_v36, %v6075_v50  ;;  %v7929_v36 = vld [vmem:[%s13585_s12 + $0x68] sm:$0xff] }
 0x976   :  { %9771 = vrot.lane.b32.xlu0 %v9770_v26, %s9788_s8  ;;  %v6081_v18 = vpop.f32.mrb[78].mxu1  ;;  %v9281_v26 = vpack.c.bf16 %v7929_v36, %v7928_v52  ;;  %v7953_v52 = vld [vmem:[%s13585_s12 + $0xf0] sm:$0xff]  ;;  %v7951_v36 = vld [vmem:[%s13586_s11 + $0x18] sm:$0xff] }
 0x977   :  { %v6083_v8 = vpop.f32.mrb[79].mxu1 }
 0x978   :  { %v9775_v6 = vpack.i.bf16 %v6083_v8, %v6081_v18 }
 0x97a   :  { %9776 = vrot.lane.b32.xlu1 %v9775_v6, %s9788_s8  ;;  %v7932_v6 = vld [vmem:[%s13585_s12 + $0x80] sm:$0xff] }
 0x9d0   :  { %v9742_v35 = vpop.permute.xlu0 %9741 }
 0x9d1   :  { %v9744_v17 = vunpack.i.h.bf16 %v9742_v35  ;;  %v9743_v32 = vunpack.i.l.bf16 %v9742_v35  ;;  %v7933_v35 = vld [vmem:[%s13585_s12 + $0x88] sm:$0xff] }
 0x9d3   :  { %v6135_v59 = vsel %vm6134_vm10, %v9743_v32, %v9744_v17  ;;  %v9287_v17 = vpack.c.bf16 %v7933_v35, %v7932_v6  ;;  %v7934_v32 = vld [vmem:[%s13585_s12 + $0x90] sm:$0xff]  ;;  %v7948_v6 = vld [vmem:[%s13585_s12 + $0xe0] sm:$0xff]  ;;  %v7949_v35 = vld [vmem:[%s13585_s12 + $0xe8] sm:$0xff] }
 0x9d4   :  { %v9747_v5 = vpop.permute.xlu1 %9746  ;;  %v6151_v44 = vmax.f32 %v6039_v31, %v6135_v59 }
 0x9d5   :  { %v9749_v63 = vunpack.i.h.bf16 %v9747_v5  ;;  %v9748_v21 = vunpack.i.l.bf16 %v9747_v5  ;;  %v7935_v5 = vld [vmem:[%s13585_s12 + $0x98] sm:$0xff] }
 0x9d6   :  { %v9290_v59 = vpack.c.bf16 %v7935_v5, %v7934_v32  ;;  %v9326_v32 = vpack.c.bf16 %v7949_v35, %v7948_v6  ;;  %v7958_v5 = vld [vmem:[%s13585_s12 + $0x118] sm:$0xff] }
 0x9d7   :  { %v6136_v12 = vsel %vm6134_vm10, %v9748_v21, %v9749_v63 }
 0x9d8   :  { %v6152_v49 = vmax.f32 %v6045_v40, %v6136_v12  ;;  %v9752_v47 = vpop.permute.xlu0 %9751 }
 0x9d9   :  { %v9754_v9 = vunpack.i.h.bf16 %v9752_v47  ;;  %v9753_v10 = vunpack.i.l.bf16 %v9752_v47 }
 0x9da   :  { %v9233_v7 = vpack.c.bf16 %v6152_v49, %v6151_v44 }
 0x9db   :  { %v6137_v24 = vsel %vm6134_vm10, %v9753_v10, %v9754_v9 }
 0x9dc   :  { %9234 = vmatprep.subr.bf16.mxu1 %v9233_v7  ;;  %v9757_v14 = vpop.permute.xlu1 %9756  ;;  %v6153_v54 = vmax.f32 %v6051_v43, %v6137_v24 }
 0x9dd   :  { %v9759_v29 = vunpack.i.h.bf16 %v9757_v14  ;;  %v9758_v19 = vunpack.i.l.bf16 %v9757_v14  ;;  %9236 = vmatpush3.bf16.msra.mxu1 %v9233_v7 }
 0x9df   :  { %v6138_v28 = vsel %vm6134_vm10, %v9758_v19, %v9759_v29 }
 0x9e0   :  { %v6154_v20 = vmax.f32 %v6057_v58, %v6138_v28  ;;  %v9762_v23 = vpop.permute.xlu0 %9761  ;;  %v6161_v58 = vld [vmem:[%s13584_s10 + $0x10] sm:$0xff] }
 0x9e1   :  { %v9764_v3 = vunpack.i.h.bf16 %v9762_v23  ;;  %v9763_v15 = vunpack.i.l.bf16 %v9762_v23  ;;  %v6441_v23 = vld [vmem:[%s13585_s12 + $0x8] sm:$0xff] }
 0x9e2   :  { %v9237_v34 = vpack.c.bf16 %v6154_v20, %v6153_v54  ;;  %v6366_v54 = vld [vmem:[%s13586_s11] sm:$0xff] }
 0x9e3   :  { %v6139_v45 = vsel %vm6134_vm10, %v9763_v15, %v9764_v3  ;;  %v6440_v20 = vld [vmem:[%s13585_s12] sm:$0xff]  ;;  %v7924_v3 = vld [vmem:[%s13586_s11 + $0x8] sm:$0xff] }
 0x9e4   :  { %9238 = vmatprep.subr.bf16.mxu1 %v9237_v34  ;;  %v9767_v48 = vpop.permute.xlu1 %9766  ;;  %v6155_v46 = vmax.f32 %v6063_v41, %v6139_v45  ;;  %v7916_v41 = vld [vmem:[%s13584_s10 + $0x28] sm:$0xff]  ;;  %v9293_v15 = vpack.c.bf16 %v6441_v23, %v6440_v20  ;;  %v7012_v20 = vld [vmem:[%s13587_s14] sm:$0xff] }
 0x9e5   :  { %v9769_v37 = vunpack.i.h.bf16 %v9767_v48  ;;  %v9768_v51 = vunpack.i.l.bf16 %v9767_v48  ;;  %9240 = vmatpush3.bf16.msra.mxu1 %v9237_v34  ;;  %v6443_v48 = vld [vmem:[%s13585_s12 + $0x18] sm:$0xff]  ;;  %v7013_v23 = vld [vmem:[%s13587_s14 + $0x8] sm:$0xff] }
 0x9e7   :  { %v6140_v25 = vsel %vm6134_vm10, %v9768_v51, %v9769_v37  ;;  %v6444_v37 = vld [vmem:[%s13585_s12 + $0x20] sm:$0xff]  ;;  %v6445_v51 = vld [vmem:[%s13585_s12 + $0x28] sm:$0xff] }
 0x9e8   :  { %v6156_v53 = vmax.f32 %v6069_v22, %v6140_v25  ;;  %v9772_v30 = vpop.permute.xlu0 %9771  ;;  %v7926_v22 = vld [vmem:[%s13585_s12 + $0x50] sm:$0xff]  ;;  %v9299_v25 = vpack.c.bf16 %v6445_v51, %v6444_v37  ;;  %v7017_v37 = vld [vmem:[%s13587_s14 + $0x28] sm:$0xff] }
 0x9e9   :  { %v9774_v16 = vunpack.i.h.bf16 %v9772_v30  ;;  %v9773_v61 = vunpack.i.l.bf16 %v9772_v30 }
 0x9ea   :  { %v9241_v60 = vpack.c.bf16 %v6156_v53, %v6155_v46  ;;  %v6446_v46 = vld [vmem:[%s13585_s12 + $0x30] sm:$0xff]  ;;  %v6447_v53 = vld [vmem:[%s13585_s12 + $0x38] sm:$0xff] }
 0x9eb   :  { %v6141_v27 = vsel %vm6134_vm10, %v9773_v61, %v9774_v16  ;;  %v9302_v30 = vpack.c.bf16 %v6447_v53, %v6446_v46  ;;  %v6448_v16 = vld [vmem:[%s13585_s12 + $0x40] sm:$0xff]  ;;  %v6449_v61 = vld [vmem:[%s13585_s12 + $0x48] sm:$0xff] }
 0x9ec   :  { %9242 = vmatprep.subr.bf16.mxu1 %v9241_v60  ;;  %v9777_v31 = vpop.permute.xlu1 %9776  ;;  %v6157_v33 = vmax.f32 %v6075_v50, %v6141_v27  ;;  %v9278_v50 = vpack.c.bf16 %v7927_v39, %v7926_v22  ;;  %v7941_v27 = vld [vmem:[%s13585_s12 + $0xa8] sm:$0xff]  ;;  %v7938_v39 = vld [vmem:[%s13586_s11 + $0x10] sm:$0xff] }
 0x9ed   :  { %v9779_v55 = vunpack.i.h.bf16 %v9777_v31  ;;  %v9778_v40 = vunpack.i.l.bf16 %v9777_v31  ;;  %9244 = vmatpush3.bf16.msra.mxu1 %v9241_v60  ;;  %v7940_v31 = vld [vmem:[%s13585_s12 + $0xa0] sm:$0xff] }
 0x9ee   :  { %9279 = vmatpush3.bf16.msra.mxu0 %v9278_v50  ;;  %v7954_v50 = vld [vmem:[%s13585_s12 + $0xf8] sm:$0xff] }
 0x9ef   :  { %v6142_v13 = vsel %vm6134_vm10, %v9778_v40, %v9779_v55  ;;  %9280 = vmatprep.subr.bf16.mxu0 %v9784_v0  ;;  %v9314_v55 = vpack.c.bf16 %v7941_v27, %v7940_v31  ;;  %v7942_v40 = vld [vmem:[%s13585_s12 + $0xb0] sm:$0xff] }
 0x9f0   :  { %v6158_v43 = vmax.f32 %v6081_v18, %v6142_v13  ;;  %v7930_v18 = vld [vmem:[%s13585_s12 + $0x70] sm:$0xff]  ;;  %v7943_v13 = vld [vmem:[%s13585_s12 + $0xb8] sm:$0xff] }
 0x9f1   :  { %v9284_v8 = vpack.c.bf16 %v7931_v11, %v7930_v18  ;;  %v7955_v18 = vld [vmem:[%s13585_s12 + $0x100] sm:$0xff]  ;;  %v7956_v11 = vld [vmem:[%s13585_s12 + $0x108] sm:$0xff] }
 0x9f2   :  { %v9245_v38 = vpack.c.bf16 %v6158_v43, %v6157_v33  ;;  %9282 = vmatpush3.bf16.msra.mxu0 %v9281_v26  ;;  %v9335_v26 = vpack.c.bf16 %v7954_v50, %v7953_v52 }
 0x9f3   :  { %9283 = vmatprep.subr.bf16.mxu0 %v9784_v0 }
 0x9f4   :  { %9246 = vmatprep.subr.bf16.mxu1 %v9245_v38 }
 0x9f5   :  { %9248 = vmatpush3.bf16.msra.mxu1 %v9245_v38 }
 0x9f6   :  { %9250 = vmatprep.subr.bf16.mxu1 %v9233_v7  ;;  %9285 = vmatpush3.bf16.msra.mxu0 %v9284_v8  ;;  %v9338_v8 = vpack.c.bf16 %v7956_v11, %v7955_v18 }
 0x9f7   :  { %9286 = vmatprep.subr.bf16.mxu0 %v9784_v0 }
 0x9f8   :  { %8361 = vmatmul.mubr.msk.f32.vlgmr.msra.gmra.mrb[80].mxu1 %vm3927_vm6, %v6160_v1  ;;  %v7944_v1 = vld [vmem:[%s13585_s12 + $0xc0] sm:$0xff] }
 0x9f9   :  { %9252 = vmatpush3.bf16.msra.mxu1 %v9233_v7  ;;  %8363 = vmatprep.mubr.msk.f32.mxu1 %vm3927_vm6, %v6161_v58  ;;  %v7945_v58 = vld [vmem:[%s13585_s12 + $0xc8] sm:$0xff] }
 0x9fa   :  { %9254 = vmatprep.subr.bf16.mxu1 %v9237_v34  ;;  %9288 = vmatpush3.bf16.msra.mxu0 %v9287_v17  ;;  %v7957_v17 = vld [vmem:[%s13585_s12 + $0x110] sm:$0xff] }
 0x9fb   :  { %9289 = vmatprep.subr.bf16.mxu0 %v9784_v0 }
 0x9fc   :  { %8364 = vmatmul.mubr.msk.f32.gmra.mrb[82].mxu1 %vm3927_vm6, %v6162_v42  ;;  %v9320_v42 = vpack.c.bf16 %v7945_v58, %v7944_v1 }
 0x9fd   :  { %9256 = vmatpush3.bf16.msra.mxu1 %v9237_v34  ;;  %8382 = vmatprep.mubr.msk.f32.mxu1 %vm3927_vm6, %v7915_v56  ;;  %v6442_v34 = vld [vmem:[%s13585_s12 + $0x10] sm:$0xff] }
 0x9fe   :  { %9258 = vmatprep.subr.bf16.mxu1 %v9241_v60  ;;  %9291 = vmatpush3.bf16.msra.mxu0 %v9290_v59  ;;  %v9296_v45 = vpack.c.bf16 %v6443_v48, %v6442_v34  ;;  %v9341_v59 = vpack.c.bf16 %v7958_v5, %v7957_v17  ;;  %v7015_v34 = vld [vmem:[%s13587_s14 + $0x18] sm:$0xff] }
 0x9ff   :  { %9307 = vmatprep.subr.bf16.mxu0 %v9784_v0 }
 0xa01   :  { %9260 = vmatpush3.bf16.msra.mxu1 %v9241_v60  ;;  %v9305_v60 = vpack.c.bf16 %v6449_v61, %v6448_v16  ;;  %v7964_v16 = vld [vmem:[%s13588_s13] ss:$0 sm:$0xff] }
 0xa02   :  { %9262 = vmatprep.subr.bf16.mxu1 %v9245_v38 }
 0xa05   :  { %9264 = vmatpush3.bf16.msra.mxu1 %v9245_v38  ;;  %v9317_v38 = vpack.c.bf16 %v7943_v13, %v7942_v40 }
 0xa06   :  { %9265 = vmatprep.subr.bf16.mxu1 %v9784_v0 }
 0xa08   :  { %8383 = vmatmul.mubr.msk.f32.vlgmr.msra.gmra.mrb[84].mxu1 %vm3927_vm6, %v7916_v41  ;;  %v7946_v41 = vld [vmem:[%s13585_s12 + $0xd0] sm:$0xff] }
 0xa09   :  { %8385 = vmatprep.mubr.msk.f32.mxu1 %vm3927_vm6, %v7917_v2  ;;  %v7947_v2 = vld [vmem:[%s13585_s12 + $0xd8] sm:$0xff] }
 0xa0a   :  { %v9323_v22 = vpack.c.bf16 %v7947_v2, %v7946_v41 }
 0xa0c   :  { %8386 = vmatmul.mubr.msk.f32.gmra.mrb[86].mxu1 %vm3927_vm6, %v7918_v62 }
 0xa0d   :  { %8396 = vmatprep.mubr.msk.f32.mxu1 %vm9789_vm11, %v9786_v57 }
 0xacb   :  { %v8362_v63 = vpop.f32.mrb[80].mxu1 }
 0xacc   :  { %v6241_v21 = vpop.f32.mrb[81].mxu1 }
 0xacf   :  { %v8365_v12 = vpop.f32.mrb[82].mxu1 }
 0xad0   :  { %v6251_v44 = vpop.f32.mrb[83].mxu1 }
 0xadb   :  { %v8384_v49 = vpop.f32.mrb[84].mxu1 }
 0xadc   :  { %v6363_v47 = vmax.f32 %v8362_v63, %v8384_v49  ;;  %v6343_v9 = vpop.f32.mrb[85].mxu1  ;;  %v7959_v63 = vld [vmem:[%s13585_s12 + $0x120] sm:$0xff]  ;;  %v7962_v49 = vld [vmem:[%s13585_s12 + $0x138] sm:$0xff] }
 0xadd   :  { %v6362_v10 = vmax.f32 %v6241_v21, %v6343_v9  ;;  %v7960_v21 = vld [vmem:[%s13585_s12 + $0x128] sm:$0xff] }
 0xadf   :  { %v13379_v7 = vpack.c.bf16 %v6363_v47, %v6362_v10  ;;  %v8387_v14 = vpop.f32.mrb[86].mxu1 }
 0xae0   :  { %v6365_v24 = vmax.f32 %v8365_v12, %v8387_v14  ;;  %v6353_v29 = vpop.f32.mrb[87].mxu1  ;;  %v9344_v12 = vpack.c.bf16 %v7960_v21, %v7959_v63 }
 0xae1   :  { %v6364_v19 = vmax.f32 %v6251_v44, %v6353_v29  ;;  %9267 = vmatpush3.bf16.msra.mxu1 %v13379_v7  ;;  %v7961_v44 = vld [vmem:[%s13585_s12 + $0x130] sm:$0xff] }
 0xae2   :  { %9268 = vmatprep.subr.bf16.mxu1 %v9784_v0  ;;  %v9347_v47 = vpack.c.bf16 %v7962_v49, %v7961_v44 }
 0xae3   :  { %v13383_v28 = vpack.c.bf16 %v6365_v24, %v6364_v19 }
 0xae5   :  { %9270 = vmatpush3.bf16.msra.mxu1 %v13383_v28 }
 0xae6   :  { %9271 = vmatprep.subr.bf16.mxu1 %v9784_v0 }
 0xae8   :  { %8397 = vmatmul.mubr.msk.f32.vlgmr.msra.gmra.mrb[88].mxu1 %vm5948_vm9, %v6366_v54 }
 0xae9   :  { %9273 = vmatpush3.bf16.msra.mxu1 %v13379_v7  ;;  %8407 = vmatprep.mubr.msk.f32.mxu1 %vm9789_vm11, %v9786_v57 }
 0xaea   :  { %9274 = vmatprep.subr.bf16.mxu1 %v9784_v0 }
 0xaed   :  { %9276 = vmatpush3.bf16.msra.mxu1 %v13383_v28 }
 0xaee   :  { %9292 = vmatprep.subr.bf16.mxu1 %v9784_v0 }
 0xaf0   :  { %8408 = vmatmul.mubr.msk.f32.vlgmr.msra.gmra.mrb[90].mxu1 %vm5948_vm9, %v7924_v3  ;;  %v9350_v3 = vpack.c.bf16 %v7013_v23, %v7012_v20 }
 0xaf1   :  { %9294 = vmatpush3.bf16.msra.mxu1 %v9293_v15  ;;  %8453 = vmatprep.mubr.msk.f32.mxu1 %vm9789_vm11, %v9786_v57  ;;  %v7014_v15 = vld [vmem:[%s13587_s14 + $0x10] sm:$0xff] }
 0xaf2   :  { %9295 = vmatprep.subr.bf16.mxu1 %v9784_v0  ;;  %v9353_v48 = vpack.c.bf16 %v7015_v34, %v7014_v15 }
 0xaf5   :  { %9297 = vmatpush3.bf16.msra.mxu1 %v9296_v45  ;;  %v7016_v45 = vld [vmem:[%s13587_s14 + $0x20] sm:$0xff] }
 0xaf6   :  { %9298 = vmatprep.subr.bf16.mxu1 %v9784_v0  ;;  %v9356_v51 = vpack.c.bf16 %v7017_v37, %v7016_v45 }
 0xaf9   :  { %9300 = vmatpush3.bf16.msra.mxu1 %v9299_v25  ;;  %v7018_v25 = vld [vmem:[%s13587_s14 + $0x30] sm:$0x3] }
 0xafa   :  { %9301 = vmatprep.subr.bf16.mxu1 %v9784_v0 }
 0xafd   :  { %9303 = vmatpush3.bf16.msra.mxu1 %v9302_v30 }
 0xafe   :  { %9304 = vmatprep.subr.bf16.mxu1 %v9784_v0 }
 0xb01   :  { %9306 = vmatpush3.bf16.msra.mxu1 %v9305_v60 }
 0xb02   :  { %9313 = vmatprep.subr.bf16.mxu1 %v9784_v0 }
 0xbbb   :  { %v6436_v33 = vpop.f32.mrb[88].mxu1 }
 0xbbc   :  { %v8398_v43 = vpop.f32.mrb[89].mxu1  ;;  %8454 = vmatmul.mubr.msk.f32.vlgmr.msra.gmra.mrb[92].mxu1 %vm6536_vm12, %v6436_v33 }
 0xbbd   :  { %9315 = vmatpush3.bf16.msra.mxu1 %v9314_v55  ;;  %8487 = vmatprep.mubr.msk.f32.mxu1 %vm9789_vm11, %v9786_v57  ;;  %v7965_v55 = vld [vmem:[%s13589_s15] ss:$0 sm:$0xff] }
 0xbbe   :  { %9316 = vmatprep.subr.bf16.mxu1 %v9784_v0 }
 0xbc1   :  { %9318 = vmatpush3.bf16.msra.mxu1 %v9317_v38 }
 0xbc2   :  { %9319 = vmatprep.subr.bf16.mxu1 %v9784_v0 }
 0xbc3   :  { %v6521_v56 = vpop.f32.mrb[90].mxu1 }
 0xbc4   :  { %8431 = vmatmul.mubr.msk.f32.vlgmr.msra.gmra.mrb[120].mxu0 %vm6536_vm12, %v6521_v56  ;;  %v8409_v62 = vpop.f32.mrb[91].mxu1 }
 0xbc5   :  { %9309 = vmatpush3.bf16.msra.mxu0 %v13379_v7  ;;  %8464 = vmatprep.mubr.msk.f32.mxu0 %vm9789_vm11, %v9786_v57 }
 0xbc6   :  { %9310 = vmatprep.subr.bf16.mxu0 %v9784_v0  ;;  %9321 = vmatpush3.bf16.msra.mxu1 %v9320_v42 }
 0xbc7   :  { %9322 = vmatprep.subr.bf16.mxu1 %v9784_v0 }
 0xbc9   :  { %9312 = vmatpush3.bf16.msra.mxu0 %v13383_v28 }
 0xbca   :  { %9328 = vmatprep.subr.bf16.mxu0 %v9784_v0  ;;  %9324 = vmatpush3.bf16.msra.mxu1 %v9323_v22 }
 0xbcb   :  { %9325 = vmatprep.subr.bf16.mxu1 %v9784_v0 }
 0xbcc   :  { %8465 = vmatmul.mubr.msk.f32.vlgmr.msra.gmra.mrb[122].mxu0 %vm5948_vm9, %v7938_v39 }
 0xbcd   :  { %9330 = vmatpush3.bf16.msra.mxu0 %v13379_v7  ;;  %8498 = vmatprep.mubr.msk.f32.mxu0 %vm9789_vm11, %v9786_v57 }
 0xbce   :  { %9331 = vmatprep.subr.bf16.mxu0 %v9784_v0  ;;  %9327 = vmatpush3.bf16.msra.mxu1 %v9326_v32 }
 0xbcf   :  { %9349 = vmatprep.subr.bf16.mxu1 %v9784_v0 }
 0xbd1   :  { %9333 = vmatpush3.bf16.msra.mxu0 %v13383_v28 }
 0xbd2   :  { %9334 = vmatprep.subr.bf16.mxu0 %v9784_v0 }
 0xbd4   :  { %8499 = vmatmul.mubr.msk.f32.vlgmr.msra.gmra.mrb[124].mxu0 %vm5948_vm9, %v7951_v36 }
 0xbd5   :  { %9336 = vmatpush3.bf16.msra.mxu0 %v9335_v26  ;;  %8521 = vmatprep.mubr.msk.f32.mxu0 %vm9789_vm11, %v9786_v57 }
 0xbd6   :  { %9337 = vmatprep.subr.bf16.mxu0 %v9784_v0 }
 0xbd9   :  { %9339 = vmatpush3.bf16.msra.mxu0 %v9338_v8 }
 0xbda   :  { %9340 = vmatprep.subr.bf16.mxu0 %v9784_v0 }
 0xbdd   :  { %9342 = vmatpush3.bf16.msra.mxu0 %v9341_v59 }
 0xbde   :  { %9343 = vmatprep.subr.bf16.mxu0 %v9784_v0 }
 0xbe1   :  { %9345 = vmatpush3.bf16.msra.mxu0 %v9344_v12 }
 0xbe2   :  { %9346 = vmatprep.subr.bf16.mxu0 %v9784_v0 }
 0xbe5   :  { %9348 = vmatpush3.bf16.msra.mxu0 %v9347_v47 }
 0xc8f   :  { %v6679_v9 = vpop.f32.mrb[92].mxu1 }
 0xc90   :  { %v8455_v10 = vpop.f32.mrb[93].mxu1 }
 0xc97   :  { %v6606_v7 = vpop.f32.mrb[120].mxu0 }
 0xc98   :  { %v8432_v14 = vpop.f32.mrb[121].mxu0  ;;  %v6680_v24 = vadd.f32 %v6679_v9, %v6606_v7 }
 0xc9f   :  { %v6754_v29 = vpop.f32.mrb[122].mxu0 }
 0xca0   :  { %8488 = vmatmul.mubr.msk.f32.vlgmr.msra.gmra.mrb[94].mxu1 %vm6536_vm12, %v6754_v29  ;;  %v8466_v19 = vpop.f32.mrb[123].mxu0 }
 0xca1   :  { %8538 = vmatprep.mubr.msk.f32.mxu1 %vm9789_vm11, %v9786_v57  ;;  %9351 = vmatpush3.bf16.msra.mxu1 %v9350_v3 }
 0xca2   :  { %9352 = vmatprep.subr.bf16.mxu1 %v9784_v0 }
 0xca5   :  { %9354 = vmatpush3.bf16.msra.mxu1 %v9353_v48 }
 0xca6   :  { %9355 = vmatprep.subr.bf16.mxu1 %v9784_v0 }
 0xca7   :  { %v6914_v28 = vpop.f32.mrb[124].mxu0 }
 0xca8   :  { %8522 = vmatmul.mubr.msk.f32.vlgmr.msra.gmra.mrb[126].mxu0 %vm6536_vm12, %v6914_v28  ;;  %v8500_v54 = vpop.f32.mrb[125].mxu0 }
 0xca9   :  { %9357 = vmatpush3.bf16.msra.mxu1 %v9356_v51 }
 0xcaa   :  { %8536 = vmatprep.subr.mxu1 %v9786_v57  ;;  %v7105_v57 = vand.u32 127, %v3238_v4 }
 0xcac   :  { %vm7106_vm15 = vcmp.lt.s32.totalorder %v7105_v57, 10 }
 0xcad   :  { %8537 = vmatpush3.msk.msra.mxu1 %vm7030_vm13, %v7018_v25 }
 0xd73   :  { %v6838_v46 = vpop.f32.mrb[94].mxu1 }
 0xd74   :  { %v6842_v0 = vadd.f32 %v6838_v46, %v6680_v24  ;;  %v8489_v53 = vpop.f32.mrb[95].mxu1 }
 0xd7b   :  { %v6998_v30 = vpop.f32.mrb[126].mxu0 }
 0xd7c   :  { %v7002_v61 = vadd.f32 %v6998_v30, %v6842_v0  ;;  %v8523_v60 = vpop.f32.mrb[127].mxu0 }
 0xd7e   :  { %v7010_v31 = vadd.f32 %v7964_v16, %v7002_v61 }
 0xd80   :  { %v7011_v27 = vmax.f32 %v7010_v31, 0.0 }
 0xd82   :  { %8539 = vmatmul.mubr.msk.f32.vlgmr.msra.gmra.mrb[96].mxu1 %vm7026_vm14, %v7011_v27 }
 0xe55   :  { %v7100_v40 = vpop.f32.mrb[96].mxu1 }
 0xe56   :  { %v7101_v13 = vadd.f32 %v7965_v55, %v7100_v40  ;;  %v8540_v33 = vpop.f32.mrb[97].mxu1 }
 0xe58   :  { %v7107_v43 = vsel %vm7106_vm15, %v7101_v13, -1e+30 }
 0xe59   :  { %7108 = vmax.xlane.f32.xlu0 %v7107_v43 }
 0xee6   :  { %v7109_v38 = vpop.xlane.xlu0 %7108 }
 0xee7   :  { %v7110_v1 = vsub.f32 %v7107_v43, %v7109_v38 }
 0xee9   :  { %v7111_v58 = vmul.f32 1.442695, %v7110_v1 }
 0xeeb   :  { %9780 = vpow2.f32 %v7111_v58 }
 0xef5   :  { %v9781_v42 = vpop.eup %9780 }
 0xef6   :  { %v7113_v56 = vsel %vm7106_vm15, %v9781_v42, 0.0 }
 0xef7   :  { %7114 = vadd.xlane.f32.xlu1 %v7113_v56 }
 0xf84   :  { %v7115_v4 = vpop.xlane.xlu1 %7114 }
 0xf85   :  { %9782 = vlog2.f32 %v7115_v4 }
 0xf8f   :  { %v9783_v41 = vpop.eup %9782 }
 0xf90   :  { %v7117_v2 = vmul.f32 0.6931472, %v9783_v41 }
 0xf92   :  { %v7118_v62 = vsub.f32 %v7110_v1, %v7117_v2 }
 0xf94   :  { %v7119_v22 = vsel %vm7106_vm15, %v7118_v62, 0.0 }
 0xf95   :  { %7120 = vst [vmem:[%s13590_s16] sm:$0xff] %v7119_v22 }

</bundles_post_ra>
